<compile_context>
chip_gen: v7x
topology: tpu7x:2x2x1
jax: 0.10.0
libtpu: 0.0.40
codegen_flags: <defaults>
</compile_context>

<pallas_src>
import functools
import math

import jax
import jax.numpy as jnp
from jax.experimental import pallas as pl
from jax.experimental.pallas import tpu as pltpu

INF = 1e10
EPS = 1e-6


# ----------------------------------------------------------------------------
# In-kernel helpers
# ----------------------------------------------------------------------------
def _layer_norm(y, gamma, beta, d):
    """Reference LayerNorm: gamma * (y - mean) / (unbiased_std + eps) + beta."""
    mean = jnp.mean(y, axis=-1, keepdims=True)
    var = jnp.sum((y - mean) ** 2, axis=-1, keepdims=True) * (1.0 / (d - 1))
    inv = pl.reciprocal(jnp.sqrt(var) + EPS, approx=False)
    return gamma * ((y - mean) * inv) + beta


def _mha(q, k, v, bias, n_heads, compute_dtype):
    """Multi-head attention over packed projections (scale already folded in q).

    q: (..., Tq, D) f32, k/v: (..., Tk, D) f32,
    bias: additive mask bias broadcastable to (..., Tq, Tk) (0 or -INF).
    Heads are a small static loop; each head's contraction is batched over the
    leading dim by a single dot_general (einsum), avoiding per-word matmuls.
    (Full head-batched dot_general would need a sublane<->major transpose at
    d_head=8, so the static head loop is kept.)
    """
    d_model = q.shape[-1]
    dh = d_model // n_heads
    if q.ndim == 3:
        eq_s, eq_o = "wqd,wkd->wqk", "wqk,wkd->wqd"
    else:
        eq_s, eq_o = "qd,kd->qk", "qk,kd->qd"
    outs = []
    for h in range(n_heads):                       # static, n_heads is small
        lo = h * dh
        qh = q[..., lo:lo + dh].astype(compute_dtype)
        kh = k[..., lo:lo + dh].astype(compute_dtype)
        vh = v[..., lo:lo + dh].astype(compute_dtype)
        s = jnp.einsum(eq_s, qh, kh, preferred_element_type=jnp.float32) + bias
        s = s - jnp.max(s, axis=-1, keepdims=True)
        e = jnp.exp(s)
        p = e * pl.reciprocal(jnp.sum(e, axis=-1, keepdims=True), approx=True)
        outs.append(jnp.einsum(eq_o, p.astype(compute_dtype), vh,
                               preferred_element_type=jnp.float32))
    return jnp.concatenate(outs, axis=-1)


# ----------------------------------------------------------------------------
# Fused kernel: one batch row per grid step
# ----------------------------------------------------------------------------
def _char_word_kernel(x_ref, m_ref, wm_ref,
                      c_wqkv_ref, c_bqkv_ref, c_wo_ref, c_obg_ref,
                      w_wq_ref, w_bq_ref, w_wkv_ref, w_bkv_ref, w_wo_ref, w_obg_ref,
                      f_w1_ref, f_b1_ref, f_w2_ref, f_obg_ref,
                      out_ref, *, n_heads, causal, compute_dtype):
    f32 = jnp.float32
    cd = compute_dtype
    W, S, D = x_ref.shape
    Nc = W * S

    x2 = x_ref[...].astype(f32).reshape(Nc, D)            # (Nc, D) residual input
    mask = m_ref[...].astype(f32)                          # (W, S) 1 = valid char

    # ---------------- 1. selfcharattn: chars attend within their word ----------
    qkv = (jnp.dot(x2.astype(cd), c_wqkv_ref[...], preferred_element_type=f32)
           + c_bqkv_ref[...])                              # (Nc, 3D), q pre-scaled
    q3 = qkv[:, 0:D].reshape(W, S, D)
    k3 = qkv[:, D:2 * D].reshape(W, S, D)
    v3 = qkv[:, 2 * D:3 * D].reshape(W, S, D)

    bias_c = (-INF) * (1.0 - mask)[:, None, :]             # (W, 1, S) key padding
    if causal:
        r = jax.lax.broadcasted_iota(jnp.int32, (S, S), 0)
        c = jax.lax.broadcasted_iota(jnp.int32, (S, S), 1)
        bias_c = bias_c + jnp.where(c > r, -INF, 0.0)[None, :, :]   # (W, S, S)

    attn_c = _mha(q3, k3, v3, bias_c, n_heads, cd).reshape(Nc, D)
    c_obg = c_obg_ref[...]                                 # rows: [bo, gamma, beta]
    proj_c = (jnp.dot(attn_c.astype(cd), c_wo_ref[...], preferred_element_type=f32)
              + c_obg[0:1, :])
    # ResidualBlock order 'tdan': transform -> dropout(id) -> add -> norm
    xc = _layer_norm(x2 + proj_c, c_obg[1:2, :], c_obg[2:3, :], D)   # (Nc, D) = data1d
    # TODO(synk): Message.to1d_/to2d_ source not provided; assumed word-major reshape.

    # ---------------- 2. selfwordattn: chars attend last-char word vectors -----
    # words[w] = xc[w*S + S-1]; gathered via a one-hot selection matmul (MXU,
    # avoids sublane gathers/transposes).
    ci = jax.lax.broadcasted_iota(jnp.int32, (W, Nc), 1)
    wi = jax.lax.broadcasted_iota(jnp.int32, (W, Nc), 0) * S + (S - 1)
    sel = (ci == wi).astype(f32)                           # (W, Nc)
    words = jnp.dot(sel, xc, preferred_element_type=f32)   # (W, D)

    m_w = wm_ref[...].astype(f32)                          # (1, W) word validity
    if causal:
        # TODO(synk): Message.causal_mask not provided; assume char position c may
        # attend word w iff word w is fully emitted (its last char index <= c).
        cp = jax.lax.broadcasted_iota(jnp.int32, (Nc, W), 0)
        we = jax.lax.broadcasted_iota(jnp.int32, (Nc, W), 1) * S + (S - 1)
        m_w = jnp.where(we <= cp, 1.0, 0.0) * m_w          # (Nc, W)
    bias_w = (-INF) * (1.0 - m_w)

    qw = (jnp.dot(xc.astype(cd), w_wq_ref[...], preferred_element_type=f32)
          + w_bq_ref[...])                                 # (Nc, D), pre-scaled
    kv = (jnp.dot(words.astype(cd), w_wkv_ref[...], preferred_element_type=f32)
          + w_bkv_ref[...])                                # (W, 2D)
    attn_w = _mha(qw, kv[:, 0:D], kv[:, D:2 * D], bias_w, n_heads, cd)   # (Nc, D)
    w_obg = w_obg_ref[...]
    proj_w = (jnp.dot(attn_w.astype(cd), w_wo_ref[...], preferred_element_type=f32)
              + w_obg[0:1, :])
    d1 = _layer_norm(xc + proj_w, w_obg[1:2, :], w_obg[2:3, :], D)

    # TODO(synk): crosswordattn (cross=True) branch not instantiated here.

    # ---------------- 3. feedforward -------------------------------------------
    h1 = jnp.maximum(jnp.dot(d1.astype(cd), f_w1_ref[...],
                             preferred_element_type=f32) + f_b1_ref[...], 0.0)
    f_obg = f_obg_ref[...]
    y = (jnp.dot(h1.astype(cd), f_w2_ref[...], preferred_element_type=f32)
         + f_obg[0:1, :])
    out = _layer_norm(d1 + y, f_obg[1:2, :], f_obg[2:3, :], D)

    out_ref[...] = out.astype(out_ref.dtype)


# ----------------------------------------------------------------------------
# Wrapper: pack weights once, grid over the batch
# ----------------------------------------------------------------------------
def char_word_block_forward(data2d, mask2d, params, n_heads, causal=False,
                            compute_dtype=jnp.float32):
    """Forward of CharWordBlock. Returns (data2d_out, data1d_out); data2d_out is
    the word-major reshape of data1d_out (to2d_ assumed to be a reshape).
    Set compute_dtype=jnp.bfloat16 on v6e/v7x to run the MXU matmuls in bf16."""
    B, W, S, D = data2d.shape
    Nc = W * S
    assert D % n_heads == 0
    scale = math.sqrt(D)                 # MultiHead2 scales by sqrt(d_model)
    cd = compute_dtype

    ca, wa, ff = params["selfcharattn"], params["selfwordattn"], params["feedforward"]
    # selfcharattn: pack [wq/scale | wk | wv]; the scale is folded into q.
    c_wqkv = jnp.concatenate([ca["wq"] / scale, ca["wk"], ca["wv"]], axis=1).astype(cd)
    c_bqkv = jnp.concatenate([ca["bq"] / scale, ca["bk"], ca["bv"]], axis=1)
    c_wo = ca["wo"].astype(cd)
    c_obg = jnp.concatenate([ca["bo"], ca["gamma"], ca["beta"]], axis=0)    # (3, D)
    # selfwordattn: q projected from chars, k/v from word vectors.
    w_wq = (wa["wq"] / scale).astype(cd)
    w_bq = wa["bq"] / scale
    w_wkv = jnp.concatenate([wa["wk"], wa["wv"]], axis=1).astype(cd)        # (D, 2D)
    w_bkv = jnp.concatenate([wa["bk"], wa["bv"]], axis=1)                   # (1, 2D)
    w_wo = wa["wo"].astype(cd)
    w_obg = jnp.concatenate([wa["bo"], wa["gamma"], wa["beta"]], axis=0)
    # feedforward
    f_w1, f_b1, f_w2 = ff["w1"].astype(cd), ff["b1"], ff["w2"].astype(cd)
    f_obg = jnp.concatenate([ff["b2"], ff["gamma"], ff["beta"]], axis=0)

    weights = (c_wqkv, c_bqkv, c_wo, c_obg,
               w_wq, w_bq, w_wkv, w_bkv, w_wo, w_obg,
               f_w1, f_b1, f_w2, f_obg)

    mask2d_f = mask2d.astype(jnp.float32)
    wmask = mask2d_f[:, :, -1][:, None, :]                 # (B, 1, W) word validity

    kernel = functools.partial(_char_word_kernel, n_heads=n_heads,
                               causal=causal, compute_dtype=cd)
    in_specs = (
        [pl.BlockSpec((None, W, S, D), lambda i: (i, 0, 0, 0)),   # data2d row
         pl.BlockSpec((None, W, S), lambda i: (i, 0, 0)),          # char mask row
         pl.BlockSpec((None, 1, W), lambda i: (i, 0, 0))]          # word mask row
        + [pl.BlockSpec(w.shape, lambda i, n=w.ndim: (0,) * n) for w in weights]
    )
    data1d = pl.pallas_call(
        kernel,
        out_shape=jax.ShapeDtypeStruct((B, Nc, D), data2d.dtype),
        grid=(B,),
        in_specs=in_specs,
        out_specs=pl.BlockSpec((None, Nc, D), lambda i: (i, 0, 0)),
        compiler_params=pltpu.CompilerParams(dimension_semantics=("parallel",)),
    )(data2d, mask2d_f, wmask, *weights)

    data2d_out = data1d.reshape(B, W, S, D)
    return data2d_out, data1d


# ----------------------------------------------------------------------------
# Deterministic parameter construction
# ----------------------------------------------------------------------------
def init_params(key, d_model, d_hidden):
    def lin(k, din, dout):
        return jax.random.normal(k, (din, dout), jnp.float32) / math.sqrt(din)

    def attn_params(k):
        ks = jax.random.split(k, 8)
        return {
            "wq": lin(ks[0], d_model, d_model), "bq": 0.01 * jax.random.normal(ks[1], (1, d_model)),
            "wk": lin(ks[2], d_model, d_model), "bk": 0.01 * jax.random.normal(ks[3], (1, d_model)),
            "wv": lin(ks[4], d_model, d_model), "bv": 0.01 * jax.random.normal(ks[5], (1, d_model)),
            "wo": lin(ks[6], d_model, d_model), "bo": 0.01 * jax.random.normal(ks[7], (1, d_model)),
            "gamma": jnp.ones((1, d_model), jnp.float32),
            "beta": jnp.zeros((1, d_model), jnp.float32),
        }

    def ffn_params(k):
        ks = jax.random.split(k, 4)
        return {
            "w1": lin(ks[0], d_model, d_hidden), "b1": 0.01 * jax.random.normal(ks[1], (1, d_hidden)),
            "w2": lin(ks[2], d_hidden, d_model), "b2": 0.01 * jax.random.normal(ks[3], (1, d_model)),
            "gamma": jnp.ones((1, d_model), jnp.float32),
            "beta": jnp.zeros((1, d_model), jnp.float32),
        }

    k1, k2, k3 = jax.random.split(key, 3)
    return {
        "selfcharattn": attn_params(k1),
        "selfwordattn": attn_params(k2),
        "feedforward": ffn_params(k3),
    }


# ----------------------------------------------------------------------------
if __name__ == "__main__":
    B, W, S, D = 2, 4, 8, 32          # batch, max_num_word, max_size_word, d_model
    n_heads, d_hidden = 4, 64

    root = jax.random.PRNGKey(0)
    k_data, k_mask, k_params = jax.random.split(root, 3)

    data2d = jax.random.normal(k_data, (B, W, S, D), jnp.float32)
    mask2d = (jax.random.uniform(k_mask, (B, W, S)) > 0.2).astype(jnp.float32)
    mask2d = mask2d.at[:, :, -1].set(1.0)   # last char of every word is valid

    params = init_params(k_params, D, d_hidden)

    out2d, out1d = char_word_block_forward(data2d, mask2d, params,
                                           n_heads=n_heads, causal=True)
    jax.block_until_ready((out2d, out1d))
    assert out2d.shape == (B, W, S, D) and out1d.shape == (B, W * S, D)
    assert bool(jnp.all(jnp.isfinite(out2d))) and bool(jnp.all(jnp.isfinite(out1d)))
    print("KERNEL_OK")
</pallas_src>

<mosaic_0001>
module attributes {stable_mosaic.version = 11 : i64} {
  func.func @_char_word_kernel(%arg0: i32, %arg1: memref<1x4x8x32xf32, #tpu.memory_space<vmem>>, %arg2: memref<1x4x8xf32, #tpu.memory_space<vmem>>, %arg3: memref<1x1x4xf32, #tpu.memory_space<vmem>>, %arg4: memref<32x96xf32, #tpu.memory_space<vmem>>, %arg5: memref<1x96xf32, #tpu.memory_space<vmem>>, %arg6: memref<32x32xf32, #tpu.memory_space<vmem>>, %arg7: memref<3x32xf32, #tpu.memory_space<vmem>>, %arg8: memref<32x32xf32, #tpu.memory_space<vmem>>, %arg9: memref<1x32xf32, #tpu.memory_space<vmem>>, %arg10: memref<32x64xf32, #tpu.memory_space<vmem>>, %arg11: memref<1x64xf32, #tpu.memory_space<vmem>>, %arg12: memref<32x32xf32, #tpu.memory_space<vmem>>, %arg13: memref<3x32xf32, #tpu.memory_space<vmem>>, %arg14: memref<32x64xf32, #tpu.memory_space<vmem>>, %arg15: memref<1x64xf32, #tpu.memory_space<vmem>>, %arg16: memref<64x32xf32, #tpu.memory_space<vmem>>, %arg17: memref<3x32xf32, #tpu.memory_space<vmem>>, %arg18: memref<1x32x32xf32, #tpu.memory_space<vmem>>) attributes {dimension_semantics = [#tpu.dimension_semantics<parallel>], iteration_bounds = array<i64: 2>, scalar_prefetch = 0 : i64, scratch_operands = 0 : i64, tpu.core_type = #tpu.core_type<tc>, window_params = [{transform_indices = @transform_0, window_bounds = array<i64: 1, 4, 8, 32>}, {transform_indices = @transform_1, window_bounds = array<i64: 1, 4, 8>}, {transform_indices = @transform_2, window_bounds = array<i64: 1, 1, 4>}, {pipeline_mode = #tpu.pipeline_mode<synchronous>, transform_indices = @transform_3, window_bounds = array<i64: 32, 96>}, {pipeline_mode = #tpu.pipeline_mode<synchronous>, transform_indices = @transform_4, window_bounds = array<i64: 1, 96>}, {pipeline_mode = #tpu.pipeline_mode<synchronous>, transform_indices = @transform_5, window_bounds = array<i64: 32, 32>}, {pipeline_mode = #tpu.pipeline_mode<synchronous>, transform_indices = @transform_6, window_bounds = array<i64: 3, 32>}, {pipeline_mode = #tpu.pipeline_mode<synchronous>, transform_indices = @transform_7, window_bounds = array<i64: 32, 32>}, {pipeline_mode = #tpu.pipeline_mode<synchronous>, transform_indices = @transform_8, window_bounds = array<i64: 1, 32>}, {pipeline_mode = #tpu.pipeline_mode<synchronous>, transform_indices = @transform_9, window_bounds = array<i64: 32, 64>}, {pipeline_mode = #tpu.pipeline_mode<synchronous>, transform_indices = @transform_10, window_bounds = array<i64: 1, 64>}, {pipeline_mode = #tpu.pipeline_mode<synchronous>, transform_indices = @transform_11, window_bounds = array<i64: 32, 32>}, {pipeline_mode = #tpu.pipeline_mode<synchronous>, transform_indices = @transform_12, window_bounds = array<i64: 3, 32>}, {pipeline_mode = #tpu.pipeline_mode<synchronous>, transform_indices = @transform_13, window_bounds = array<i64: 32, 64>}, {pipeline_mode = #tpu.pipeline_mode<synchronous>, transform_indices = @transform_14, window_bounds = array<i64: 1, 64>}, {pipeline_mode = #tpu.pipeline_mode<synchronous>, transform_indices = @transform_15, window_bounds = array<i64: 64, 32>}, {pipeline_mode = #tpu.pipeline_mode<synchronous>, transform_indices = @transform_16, window_bounds = array<i64: 3, 32>}, {transform_indices = @transform_17, window_bounds = array<i64: 1, 32, 32>}]} {
    %c0 = arith.constant 0 : index
    %c0_0 = arith.constant 0 : index
    %c0_1 = arith.constant 0 : index
    %c0_2 = arith.constant 0 : index
    %0 = vector.load %arg1[%c0, %c0_0, %c0_1, %c0_2] : memref<1x4x8x32xf32, #tpu.memory_space<vmem>>, vector<1x4x8x32xf32>
    %1 = vector.shape_cast %0 : vector<1x4x8x32xf32> to vector<4x8x32xf32>
    %2 = vector.shape_cast %1 : vector<4x8x32xf32> to vector<32x32xf32>
    %c0_3 = arith.constant 0 : index
    %c0_4 = arith.constant 0 : index
    %c0_5 = arith.constant 0 : index
    %3 = vector.load %arg2[%c0_3, %c0_4, %c0_5] : memref<1x4x8xf32, #tpu.memory_space<vmem>>, vector<1x4x8xf32>
    %4 = vector.shape_cast %3 : vector<1x4x8xf32> to vector<4x8xf32>
    %c0_6 = arith.constant 0 : index
    %c0_7 = arith.constant 0 : index
    %5 = vector.load %arg4[%c0_6, %c0_7] : memref<32x96xf32, #tpu.memory_space<vmem>>, vector<32x96xf32>
    %cst = arith.constant dense<0.000000e+00> : vector<32x96xf32>
    %6 = tpu.matmul %2, %5, %cst {dimension_numbers = #tpu.dot_dimension_numbers<[1], [0], [0], [1], [0, 0, 1, 1], [], []>} : vector<32x32xf32>, vector<32x96xf32>, vector<32x96xf32> -> vector<32x96xf32>
    %c0_8 = arith.constant 0 : index
    %c0_9 = arith.constant 0 : index
    %7 = vector.load %arg5[%c0_8, %c0_9] : memref<1x96xf32, #tpu.memory_space<vmem>>, vector<1x96xf32>
    %8 = vector.broadcast %7 : vector<1x96xf32> to vector<32x96xf32>
    %9 = arith.addf %6, %8 : vector<32x96xf32>
    %10 = vector.extract_strided_slice %9 {offsets = [0, 0], sizes = [32, 32], strides = [1, 1]} : vector<32x96xf32> to vector<32x32xf32>
    %11 = vector.shape_cast %10 : vector<32x32xf32> to vector<4x8x32xf32>
    %12 = vector.extract_strided_slice %9 {offsets = [0, 32], sizes = [32, 32], strides = [1, 1]} : vector<32x96xf32> to vector<32x32xf32>
    %13 = vector.shape_cast %12 : vector<32x32xf32> to vector<4x8x32xf32>
    %14 = vector.extract_strided_slice %9 {offsets = [0, 64], sizes = [32, 32], strides = [1, 1]} : vector<32x96xf32> to vector<32x32xf32>
    %15 = vector.shape_cast %14 : vector<32x32xf32> to vector<4x8x32xf32>
    %cst_10 = arith.constant 1.000000e+00 : f32
    %16 = vector.broadcast %cst_10 : f32 to vector<4x8xf32>
    %17 = arith.subf %16, %4 : vector<4x8xf32>
    %18 = vector.shape_cast %17 : vector<4x8xf32> to vector<4x1x8xf32>
    %cst_11 = arith.constant -1.000000e+10 : f32
    %19 = vector.broadcast %cst_11 : f32 to vector<4x1x8xf32>
    %20 = arith.mulf %19, %18 : vector<4x1x8xf32>
    %21 = tpu.iota {dimensions = array<i32: 0>} : vector<8x8xi32>
    %22 = tpu.iota {dimensions = array<i32: 1>} : vector<8x8xi32>
    %23 = arith.cmpi sgt, %22, %21 : vector<8x8xi32>
    %cst_12 = arith.constant -1.000000e+10 : f32
    %cst_13 = arith.constant 0.000000e+00 : f32
    %24 = vector.broadcast %cst_12 : f32 to vector<8x8xf32>
    %25 = vector.broadcast %cst_13 : f32 to vector<8x8xf32>
    %26 = arith.select %23, %24, %25 : vector<8x8xi1>, vector<8x8xf32>
    %27 = vector.shape_cast %26 : vector<8x8xf32> to vector<1x8x8xf32>
    %28 = vector.broadcast %20 : vector<4x1x8xf32> to vector<4x8x8xf32>
    %29 = vector.broadcast %27 : vector<1x8x8xf32> to vector<4x8x8xf32>
    %30 = arith.addf %28, %29 : vector<4x8x8xf32>
    %31 = vector.extract_strided_slice %11 {offsets = [0, 0, 0], sizes = [4, 8, 8], strides = [1, 1, 1]} : vector<4x8x32xf32> to vector<4x8x8xf32>
    %32 = vector.extract_strided_slice %13 {offsets = [0, 0, 0], sizes = [4, 8, 8], strides = [1, 1, 1]} : vector<4x8x32xf32> to vector<4x8x8xf32>
    %33 = vector.extract_strided_slice %15 {offsets = [0, 0, 0], sizes = [4, 8, 8], strides = [1, 1, 1]} : vector<4x8x32xf32> to vector<4x8x8xf32>
    "tpu.trace_start"() <{level = 10 : i32, message = "wqd,wkd->wqk"}> : () -> ()
    %cst_14 = arith.constant dense<0.000000e+00> : vector<4x8x8xf32>
    %34 = tpu.matmul %31, %32, %cst_14 {dimension_numbers = #tpu.dot_dimension_numbers<[2], [2], [1], [1], [0, 0, 0, 1, 1, 1], [0], [0]>} : vector<4x8x8xf32>, vector<4x8x8xf32>, vector<4x8x8xf32> -> vector<4x8x8xf32>
    "tpu.trace_stop"() : () -> ()
    %35 = arith.addf %34, %30 : vector<4x8x8xf32>
    %cst_15 = arith.constant dense<0xFF800000> : vector<4x8xf32>
    %36 = vector.multi_reduction <maximumf>, %35, %cst_15 [2] : vector<4x8x8xf32> to vector<4x8xf32>
    %37 = vector.shape_cast %36 : vector<4x8xf32> to vector<4x8x1xf32>
    %38 = vector.broadcast %37 : vector<4x8x1xf32> to vector<4x8x8xf32>
    %39 = arith.subf %35, %38 : vector<4x8x8xf32>
    %40 = math.exp %39 : vector<4x8x8xf32>
    %cst_16 = arith.constant dense<0.000000e+00> : vector<4x8xf32>
    %41 = vector.multi_reduction <add>, %40, %cst_16 [2] : vector<4x8x8xf32> to vector<4x8xf32>
    %42 = vector.shape_cast %41 : vector<4x8xf32> to vector<4x8x1xf32>
    %43 = tpu.reciprocal %42 {approx = true} : vector<4x8x1xf32> -> vector<4x8x1xf32>
    %44 = vector.broadcast %43 : vector<4x8x1xf32> to vector<4x8x8xf32>
    %45 = arith.mulf %40, %44 : vector<4x8x8xf32>
    "tpu.trace_start"() <{level = 10 : i32, message = "wqk,wkd->wqd"}> : () -> ()
    %cst_17 = arith.constant dense<0.000000e+00> : vector<4x8x8xf32>
    %46 = tpu.matmul %45, %33, %cst_17 {dimension_numbers = #tpu.dot_dimension_numbers<[2], [1], [1], [2], [0, 0, 0, 1, 1, 2], [0], [0]>} : vector<4x8x8xf32>, vector<4x8x8xf32>, vector<4x8x8xf32> -> vector<4x8x8xf32>
    "tpu.trace_stop"() : () -> ()
    %47 = vector.extract_strided_slice %11 {offsets = [0, 0, 8], sizes = [4, 8, 8], strides = [1, 1, 1]} : vector<4x8x32xf32> to vector<4x8x8xf32>
    %48 = vector.extract_strided_slice %13 {offsets = [0, 0, 8], sizes = [4, 8, 8], strides = [1, 1, 1]} : vector<4x8x32xf32> to vector<4x8x8xf32>
    %49 = vector.extract_strided_slice %15 {offsets = [0, 0, 8], sizes = [4, 8, 8], strides = [1, 1, 1]} : vector<4x8x32xf32> to vector<4x8x8xf32>
    "tpu.trace_start"() <{level = 10 : i32, message = "wqd,wkd->wqk"}> : () -> ()
    %cst_18 = arith.constant dense<0.000000e+00> : vector<4x8x8xf32>
    %50 = tpu.matmul %47, %48, %cst_18 {dimension_numbers = #tpu.dot_dimension_numbers<[2], [2], [1], [1], [0, 0, 0, 1, 1, 1], [0], [0]>} : vector<4x8x8xf32>, vector<4x8x8xf32>, vector<4x8x8xf32> -> vector<4x8x8xf32>
    "tpu.trace_stop"() : () -> ()
    %51 = arith.addf %50, %30 : vector<4x8x8xf32>
    %cst_19 = arith.constant dense<0xFF800000> : vector<4x8xf32>
    %52 = vector.multi_reduction <maximumf>, %51, %cst_19 [2] : vector<4x8x8xf32> to vector<4x8xf32>
    %53 = vector.shape_cast %52 : vector<4x8xf32> to vector<4x8x1xf32>
    %54 = vector.broadcast %53 : vector<4x8x1xf32> to vector<4x8x8xf32>
    %55 = arith.subf %51, %54 : vector<4x8x8xf32>
    %56 = math.exp %55 : vector<4x8x8xf32>
    %cst_20 = arith.constant dense<0.000000e+00> : vector<4x8xf32>
    %57 = vector.multi_reduction <add>, %56, %cst_20 [2] : vector<4x8x8xf32> to vector<4x8xf32>
    %58 = vector.shape_cast %57 : vector<4x8xf32> to vector<4x8x1xf32>
    %59 = tpu.reciprocal %58 {approx = true} : vector<4x8x1xf32> -> vector<4x8x1xf32>
    %60 = vector.broadcast %59 : vector<4x8x1xf32> to vector<4x8x8xf32>
    %61 = arith.mulf %56, %60 : vector<4x8x8xf32>
    "tpu.trace_start"() <{level = 10 : i32, message = "wqk,wkd->wqd"}> : () -> ()
    %cst_21 = arith.constant dense<0.000000e+00> : vector<4x8x8xf32>
    %62 = tpu.matmul %61, %49, %cst_21 {dimension_numbers = #tpu.dot_dimension_numbers<[2], [1], [1], [2], [0, 0, 0, 1, 1, 2], [0], [0]>} : vector<4x8x8xf32>, vector<4x8x8xf32>, vector<4x8x8xf32> -> vector<4x8x8xf32>
    "tpu.trace_stop"() : () -> ()
    %63 = vector.extract_strided_slice %11 {offsets = [0, 0, 16], sizes = [4, 8, 8], strides = [1, 1, 1]} : vector<4x8x32xf32> to vector<4x8x8xf32>
    %64 = vector.extract_strided_slice %13 {offsets = [0, 0, 16], sizes = [4, 8, 8], strides = [1, 1, 1]} : vector<4x8x32xf32> to vector<4x8x8xf32>
    %65 = vector.extract_strided_slice %15 {offsets = [0, 0, 16], sizes = [4, 8, 8], strides = [1, 1, 1]} : vector<4x8x32xf32> to vector<4x8x8xf32>
    "tpu.trace_start"() <{level = 10 : i32, message = "wqd,wkd->wqk"}> : () -> ()
    %cst_22 = arith.constant dense<0.000000e+00> : vector<4x8x8xf32>
    %66 = tpu.matmul %63, %64, %cst_22 {dimension_numbers = #tpu.dot_dimension_numbers<[2], [2], [1], [1], [0, 0, 0, 1, 1, 1], [0], [0]>} : vector<4x8x8xf32>, vector<4x8x8xf32>, vector<4x8x8xf32> -> vector<4x8x8xf32>
    "tpu.trace_stop"() : () -> ()
    %67 = arith.addf %66, %30 : vector<4x8x8xf32>
    %cst_23 = arith.constant dense<0xFF800000> : vector<4x8xf32>
    %68 = vector.multi_reduction <maximumf>, %67, %cst_23 [2] : vector<4x8x8xf32> to vector<4x8xf32>
    %69 = vector.shape_cast %68 : vector<4x8xf32> to vector<4x8x1xf32>
    %70 = vector.broadcast %69 : vector<4x8x1xf32> to vector<4x8x8xf32>
    %71 = arith.subf %67, %70 : vector<4x8x8xf32>
    %72 = math.exp %71 : vector<4x8x8xf32>
    %cst_24 = arith.constant dense<0.000000e+00> : vector<4x8xf32>
    %73 = vector.multi_reduction <add>, %72, %cst_24 [2] : vector<4x8x8xf32> to vector<4x8xf32>
    %74 = vector.shape_cast %73 : vector<4x8xf32> to vector<4x8x1xf32>
    %75 = tpu.reciprocal %74 {approx = true} : vector<4x8x1xf32> -> vector<4x8x1xf32>
    %76 = vector.broadcast %75 : vector<4x8x1xf32> to vector<4x8x8xf32>
    %77 = arith.mulf %72, %76 : vector<4x8x8xf32>
    "tpu.trace_start"() <{level = 10 : i32, message = "wqk,wkd->wqd"}> : () -> ()
    %cst_25 = arith.constant dense<0.000000e+00> : vector<4x8x8xf32>
    %78 = tpu.matmul %77, %65, %cst_25 {dimension_numbers = #tpu.dot_dimension_numbers<[2], [1], [1], [2], [0, 0, 0, 1, 1, 2], [0], [0]>} : vector<4x8x8xf32>, vector<4x8x8xf32>, vector<4x8x8xf32> -> vector<4x8x8xf32>
    "tpu.trace_stop"() : () -> ()
    %79 = vector.extract_strided_slice %11 {offsets = [0, 0, 24], sizes = [4, 8, 8], strides = [1, 1, 1]} : vector<4x8x32xf32> to vector<4x8x8xf32>
    %80 = vector.extract_strided_slice %13 {offsets = [0, 0, 24], sizes = [4, 8, 8], strides = [1, 1, 1]} : vector<4x8x32xf32> to vector<4x8x8xf32>
    %81 = vector.extract_strided_slice %15 {offsets = [0, 0, 24], sizes = [4, 8, 8], strides = [1, 1, 1]} : vector<4x8x32xf32> to vector<4x8x8xf32>
    "tpu.trace_start"() <{level = 10 : i32, message = "wqd,wkd->wqk"}> : () -> ()
    %cst_26 = arith.constant dense<0.000000e+00> : vector<4x8x8xf32>
    %82 = tpu.matmul %79, %80, %cst_26 {dimension_numbers = #tpu.dot_dimension_numbers<[2], [2], [1], [1], [0, 0, 0, 1, 1, 1], [0], [0]>} : vector<4x8x8xf32>, vector<4x8x8xf32>, vector<4x8x8xf32> -> vector<4x8x8xf32>
    "tpu.trace_stop"() : () -> ()
    %83 = arith.addf %82, %30 : vector<4x8x8xf32>
    %cst_27 = arith.constant dense<0xFF800000> : vector<4x8xf32>
    %84 = vector.multi_reduction <maximumf>, %83, %cst_27 [2] : vector<4x8x8xf32> to vector<4x8xf32>
    %85 = vector.shape_cast %84 : vector<4x8xf32> to vector<4x8x1xf32>
    %86 = vector.broadcast %85 : vector<4x8x1xf32> to vector<4x8x8xf32>
    %87 = arith.subf %83, %86 : vector<4x8x8xf32>
    %88 = math.exp %87 : vector<4x8x8xf32>
    %cst_28 = arith.constant dense<0.000000e+00> : vector<4x8xf32>
    %89 = vector.multi_reduction <add>, %88, %cst_28 [2] : vector<4x8x8xf32> to vector<4x8xf32>
    %90 = vector.shape_cast %89 : vector<4x8xf32> to vector<4x8x1xf32>
    %91 = tpu.reciprocal %90 {approx = true} : vector<4x8x1xf32> -> vector<4x8x1xf32>
    %92 = vector.broadcast %91 : vector<4x8x1xf32> to vector<4x8x8xf32>
    %93 = arith.mulf %88, %92 : vector<4x8x8xf32>
    "tpu.trace_start"() <{level = 10 : i32, message = "wqk,wkd->wqd"}> : () -> ()
    %cst_29 = arith.constant dense<0.000000e+00> : vector<4x8x8xf32>
    %94 = tpu.matmul %93, %81, %cst_29 {dimension_numbers = #tpu.dot_dimension_numbers<[2], [1], [1], [2], [0, 0, 0, 1, 1, 2], [0], [0]>} : vector<4x8x8xf32>, vector<4x8x8xf32>, vector<4x8x8xf32> -> vector<4x8x8xf32>
    "tpu.trace_stop"() : () -> ()
    %95 = tpu.concatenate %46, %62, %78, %94 in 2 : vector<4x8x8xf32>, vector<4x8x8xf32>, vector<4x8x8xf32>, vector<4x8x8xf32> -> vector<4x8x32xf32>
    %96 = vector.shape_cast %95 : vector<4x8x32xf32> to vector<32x32xf32>
    %c0_30 = arith.constant 0 : index
    %c0_31 = arith.constant 0 : index
    %97 = vector.load %arg7[%c0_30, %c0_31] : memref<3x32xf32, #tpu.memory_space<vmem>>, vector<3x32xf32>
    %c0_32 = arith.constant 0 : index
    %c0_33 = arith.constant 0 : index
    %98 = vector.load %arg6[%c0_32, %c0_33] : memref<32x32xf32, #tpu.memory_space<vmem>>, vector<32x32xf32>
    %cst_34 = arith.constant dense<0.000000e+00> : vector<32x32xf32>
    %99 = tpu.matmul %96, %98, %cst_34 {dimension_numbers = #tpu.dot_dimension_numbers<[1], [0], [0], [1], [0, 0, 1, 1], [], []>} : vector<32x32xf32>, vector<32x32xf32>, vector<32x32xf32> -> vector<32x32xf32>
    %100 = vector.extract_strided_slice %97 {offsets = [0, 0], sizes = [1, 32], strides = [1, 1]} : vector<3x32xf32> to vector<1x32xf32>
    %101 = vector.broadcast %100 : vector<1x32xf32> to vector<32x32xf32>
    %102 = arith.addf %99, %101 : vector<32x32xf32>
    %103 = arith.addf %2, %102 : vector<32x32xf32>
    %104 = vector.extract_strided_slice %97 {offsets = [1, 0], sizes = [1, 32], strides = [1, 1]} : vector<3x32xf32> to vector<1x32xf32>
    %105 = vector.extract_strided_slice %97 {offsets = [2, 0], sizes = [1, 32], strides = [1, 1]} : vector<3x32xf32> to vector<1x32xf32>
    %cst_35 = arith.constant dense<0.000000e+00> : vector<32xf32>
    %106 = vector.multi_reduction <add>, %103, %cst_35 [1] : vector<32x32xf32> to vector<32xf32>
    %107 = vector.shape_cast %106 : vector<32xf32> to vector<32x1xf32>
    %cst_36 = arith.constant 3.200000e+01 : f32
    %108 = vector.broadcast %cst_36 : f32 to vector<32x1xf32>
    %109 = arith.divf %107, %108 : vector<32x1xf32>
    %110 = vector.broadcast %109 : vector<32x1xf32> to vector<32x32xf32>
    %111 = arith.subf %103, %110 : vector<32x32xf32>
    %112 = arith.mulf %111, %111 : vector<32x32xf32>
    %cst_37 = arith.constant dense<0.000000e+00> : vector<32xf32>
    %113 = vector.multi_reduction <add>, %112, %cst_37 [1] : vector<32x32xf32> to vector<32xf32>
    %114 = vector.shape_cast %113 : vector<32xf32> to vector<32x1xf32>
    %cst_38 = arith.constant 0.0322580636 : f32
    %115 = vector.broadcast %cst_38 : f32 to vector<32x1xf32>
    %116 = arith.mulf %114, %115 : vector<32x1xf32>
    %117 = math.sqrt %116 : vector<32x1xf32>
    %cst_39 = arith.constant 9.99999997E-7 : f32
    %118 = vector.broadcast %cst_39 : f32 to vector<32x1xf32>
    %119 = arith.addf %117, %118 : vector<32x1xf32>
    %120 = tpu.reciprocal %119 : vector<32x1xf32> -> vector<32x1xf32>
    %121 = vector.broadcast %109 : vector<32x1xf32> to vector<32x32xf32>
    %122 = arith.subf %103, %121 : vector<32x32xf32>
    %123 = vector.broadcast %120 : vector<32x1xf32> to vector<32x32xf32>
    %124 = arith.mulf %122, %123 : vector<32x32xf32>
    %125 = vector.broadcast %104 : vector<1x32xf32> to vector<32x32xf32>
    %126 = arith.mulf %125, %124 : vector<32x32xf32>
    %127 = vector.broadcast %105 : vector<1x32xf32> to vector<32x32xf32>
    %128 = arith.addf %126, %127 : vector<32x32xf32>
    %129 = tpu.iota {dimensions = array<i32: 1>} : vector<4x32xi32>
    %130 = tpu.iota {dimensions = array<i32: 0>} : vector<4x32xi32>
    %c8_i32 = arith.constant 8 : i32
    %131 = vector.broadcast %c8_i32 : i32 to vector<4x32xi32>
    %132 = arith.muli %130, %131 : vector<4x32xi32>
    %c7_i32 = arith.constant 7 : i32
    %133 = vector.broadcast %c7_i32 : i32 to vector<4x32xi32>
    %134 = arith.addi %132, %133 : vector<4x32xi32>
    %135 = arith.cmpi eq, %129, %134 : vector<4x32xi32>
    %136 = arith.extui %135 : vector<4x32xi1> to vector<4x32xi32>
    %137 = arith.sitofp %136 : vector<4x32xi32> to vector<4x32xf32>
    %cst_40 = arith.constant dense<0.000000e+00> : vector<4x32xf32>
    %138 = tpu.matmul %137, %128, %cst_40 {dimension_numbers = #tpu.dot_dimension_numbers<[1], [0], [0], [1], [0, 0, 1, 1], [], []>} : vector<4x32xf32>, vector<32x32xf32>, vector<4x32xf32> -> vector<4x32xf32>
    %c0_41 = arith.constant 0 : index
    %c0_42 = arith.constant 0 : index
    %c0_43 = arith.constant 0 : index
    %139 = vector.load %arg3[%c0_41, %c0_42, %c0_43] : memref<1x1x4xf32, #tpu.memory_space<vmem>>, vector<1x1x4xf32>
    %140 = vector.shape_cast %139 : vector<1x1x4xf32> to vector<1x4xf32>
    %141 = tpu.iota {dimensions = array<i32: 0>} : vector<32x4xi32>
    %142 = tpu.iota {dimensions = array<i32: 1>} : vector<32x4xi32>
    %c8_i32_44 = arith.constant 8 : i32
    %143 = vector.broadcast %c8_i32_44 : i32 to vector<32x4xi32>
    %144 = arith.muli %142, %143 : vector<32x4xi32>
    %c7_i32_45 = arith.constant 7 : i32
    %145 = vector.broadcast %c7_i32_45 : i32 to vector<32x4xi32>
    %146 = arith.addi %144, %145 : vector<32x4xi32>
    %147 = arith.cmpi sle, %146, %141 : vector<32x4xi32>
    %cst_46 = arith.constant 1.000000e+00 : f32
    %cst_47 = arith.constant 0.000000e+00 : f32
    %148 = vector.broadcast %cst_46 : f32 to vector<32x4xf32>
    %149 = vector.broadcast %cst_47 : f32 to vector<32x4xf32>
    %150 = arith.select %147, %148, %149 : vector<32x4xi1>, vector<32x4xf32>
    %151 = vector.broadcast %140 : vector<1x4xf32> to vector<32x4xf32>
    %152 = arith.mulf %150, %151 : vector<32x4xf32>
    %cst_48 = arith.constant 1.000000e+00 : f32
    %153 = vector.broadcast %cst_48 : f32 to vector<32x4xf32>
    %154 = arith.subf %153, %152 : vector<32x4xf32>
    %cst_49 = arith.constant -1.000000e+10 : f32
    %155 = vector.broadcast %cst_49 : f32 to vector<32x4xf32>
    %156 = arith.mulf %155, %154 : vector<32x4xf32>
    %c0_50 = arith.constant 0 : index
    %c0_51 = arith.constant 0 : index
    %157 = vector.load %arg8[%c0_50, %c0_51] : memref<32x32xf32, #tpu.memory_space<vmem>>, vector<32x32xf32>
    %cst_52 = arith.constant dense<0.000000e+00> : vector<32x32xf32>
    %158 = tpu.matmul %128, %157, %cst_52 {dimension_numbers = #tpu.dot_dimension_numbers<[1], [0], [0], [1], [0, 0, 1, 1], [], []>} : vector<32x32xf32>, vector<32x32xf32>, vector<32x32xf32> -> vector<32x32xf32>
    %c0_53 = arith.constant 0 : index
    %c0_54 = arith.constant 0 : index
    %159 = vector.load %arg9[%c0_53, %c0_54] : memref<1x32xf32, #tpu.memory_space<vmem>>, vector<1x32xf32>
    %160 = vector.broadcast %159 : vector<1x32xf32> to vector<32x32xf32>
    %161 = arith.addf %158, %160 : vector<32x32xf32>
    %c0_55 = arith.constant 0 : index
    %c0_56 = arith.constant 0 : index
    %162 = vector.load %arg10[%c0_55, %c0_56] : memref<32x64xf32, #tpu.memory_space<vmem>>, vector<32x64xf32>
    %cst_57 = arith.constant dense<0.000000e+00> : vector<4x64xf32>
    %163 = tpu.matmul %138, %162, %cst_57 {dimension_numbers = #tpu.dot_dimension_numbers<[1], [0], [0], [1], [0, 0, 1, 1], [], []>} : vector<4x32xf32>, vector<32x64xf32>, vector<4x64xf32> -> vector<4x64xf32>
    %c0_58 = arith.constant 0 : index
    %c0_59 = arith.constant 0 : index
    %164 = vector.load %arg11[%c0_58, %c0_59] : memref<1x64xf32, #tpu.memory_space<vmem>>, vector<1x64xf32>
    %165 = vector.broadcast %164 : vector<1x64xf32> to vector<4x64xf32>
    %166 = arith.addf %163, %165 : vector<4x64xf32>
    %167 = vector.extract_strided_slice %166 {offsets = [0, 0], sizes = [4, 32], strides = [1, 1]} : vector<4x64xf32> to vector<4x32xf32>
    %168 = vector.extract_strided_slice %166 {offsets = [0, 32], sizes = [4, 32], strides = [1, 1]} : vector<4x64xf32> to vector<4x32xf32>
    %169 = vector.extract_strided_slice %161 {offsets = [0, 0], sizes = [32, 8], strides = [1, 1]} : vector<32x32xf32> to vector<32x8xf32>
    %170 = vector.extract_strided_slice %167 {offsets = [0, 0], sizes = [4, 8], strides = [1, 1]} : vector<4x32xf32> to vector<4x8xf32>
    %171 = vector.extract_strided_slice %168 {offsets = [0, 0], sizes = [4, 8], strides = [1, 1]} : vector<4x32xf32> to vector<4x8xf32>
    "tpu.trace_start"() <{level = 10 : i32, message = "qd,kd->qk"}> : () -> ()
    %cst_60 = arith.constant dense<0.000000e+00> : vector<32x4xf32>
    %172 = tpu.matmul %169, %170, %cst_60 {dimension_numbers = #tpu.dot_dimension_numbers<[1], [1], [0], [0], [0, 0, 1, 0], [], []>} : vector<32x8xf32>, vector<4x8xf32>, vector<32x4xf32> -> vector<32x4xf32>
    "tpu.trace_stop"() : () -> ()
    %173 = arith.addf %172, %156 : vector<32x4xf32>
    %cst_61 = arith.constant dense<0xFF800000> : vector<32xf32>
    %174 = vector.multi_reduction <maximumf>, %173, %cst_61 [1] : vector<32x4xf32> to vector<32xf32>
    %175 = vector.shape_cast %174 : vector<32xf32> to vector<32x1xf32>
    %176 = vector.broadcast %175 : vector<32x1xf32> to vector<32x4xf32>
    %177 = arith.subf %173, %176 : vector<32x4xf32>
    %178 = math.exp %177 : vector<32x4xf32>
    %cst_62 = arith.constant dense<0.000000e+00> : vector<32xf32>
    %179 = vector.multi_reduction <add>, %178, %cst_62 [1] : vector<32x4xf32> to vector<32xf32>
    %180 = vector.shape_cast %179 : vector<32xf32> to vector<32x1xf32>
    %181 = tpu.reciprocal %180 {approx = true} : vector<32x1xf32> -> vector<32x1xf32>
    %182 = vector.broadcast %181 : vector<32x1xf32> to vector<32x4xf32>
    %183 = arith.mulf %178, %182 : vector<32x4xf32>
    "tpu.trace_start"() <{level = 10 : i32, message = "qk,kd->qd"}> : () -> ()
    %cst_63 = arith.constant dense<0.000000e+00> : vector<32x8xf32>
    %184 = tpu.matmul %183, %171, %cst_63 {dimension_numbers = #tpu.dot_dimension_numbers<[1], [0], [0], [1], [0, 0, 1, 1], [], []>} : vector<32x4xf32>, vector<4x8xf32>, vector<32x8xf32> -> vector<32x8xf32>
    "tpu.trace_stop"() : () -> ()
    %185 = vector.extract_strided_slice %161 {offsets = [0, 8], sizes = [32, 8], strides = [1, 1]} : vector<32x32xf32> to vector<32x8xf32>
    %186 = vector.extract_strided_slice %167 {offsets = [0, 8], sizes = [4, 8], strides = [1, 1]} : vector<4x32xf32> to vector<4x8xf32>
    %187 = vector.extract_strided_slice %168 {offsets = [0, 8], sizes = [4, 8], strides = [1, 1]} : vector<4x32xf32> to vector<4x8xf32>
    "tpu.trace_start"() <{level = 10 : i32, message = "qd,kd->qk"}> : () -> ()
    %cst_64 = arith.constant dense<0.000000e+00> : vector<32x4xf32>
    %188 = tpu.matmul %185, %186, %cst_64 {dimension_numbers = #tpu.dot_dimension_numbers<[1], [1], [0], [0], [0, 0, 1, 0], [], []>} : vector<32x8xf32>, vector<4x8xf32>, vector<32x4xf32> -> vector<32x4xf32>
    "tpu.trace_stop"() : () -> ()
    %189 = arith.addf %188, %156 : vector<32x4xf32>
    %cst_65 = arith.constant dense<0xFF800000> : vector<32xf32>
    %190 = vector.multi_reduction <maximumf>, %189, %cst_65 [1] : vector<32x4xf32> to vector<32xf32>
    %191 = vector.shape_cast %190 : vector<32xf32> to vector<32x1xf32>
    %192 = vector.broadcast %191 : vector<32x1xf32> to vector<32x4xf32>
    %193 = arith.subf %189, %192 : vector<32x4xf32>
    %194 = math.exp %193 : vector<32x4xf32>
    %cst_66 = arith.constant dense<0.000000e+00> : vector<32xf32>
    %195 = vector.multi_reduction <add>, %194, %cst_66 [1] : vector<32x4xf32> to vector<32xf32>
    %196 = vector.shape_cast %195 : vector<32xf32> to vector<32x1xf32>
    %197 = tpu.reciprocal %196 {approx = true} : vector<32x1xf32> -> vector<32x1xf32>
    %198 = vector.broadcast %197 : vector<32x1xf32> to vector<32x4xf32>
    %199 = arith.mulf %194, %198 : vector<32x4xf32>
    "tpu.trace_start"() <{level = 10 : i32, message = "qk,kd->qd"}> : () -> ()
    %cst_67 = arith.constant dense<0.000000e+00> : vector<32x8xf32>
    %200 = tpu.matmul %199, %187, %cst_67 {dimension_numbers = #tpu.dot_dimension_numbers<[1], [0], [0], [1], [0, 0, 1, 1], [], []>} : vector<32x4xf32>, vector<4x8xf32>, vector<32x8xf32> -> vector<32x8xf32>
    "tpu.trace_stop"() : () -> ()
    %201 = vector.extract_strided_slice %161 {offsets = [0, 16], sizes = [32, 8], strides = [1, 1]} : vector<32x32xf32> to vector<32x8xf32>
    %202 = vector.extract_strided_slice %167 {offsets = [0, 16], sizes = [4, 8], strides = [1, 1]} : vector<4x32xf32> to vector<4x8xf32>
    %203 = vector.extract_strided_slice %168 {offsets = [0, 16], sizes = [4, 8], strides = [1, 1]} : vector<4x32xf32> to vector<4x8xf32>
    "tpu.trace_start"() <{level = 10 : i32, message = "qd,kd->qk"}> : () -> ()
    %cst_68 = arith.constant dense<0.000000e+00> : vector<32x4xf32>
    %204 = tpu.matmul %201, %202, %cst_68 {dimension_numbers = #tpu.dot_dimension_numbers<[1], [1], [0], [0], [0, 0, 1, 0], [], []>} : vector<32x8xf32>, vector<4x8xf32>, vector<32x4xf32> -> vector<32x4xf32>
    "tpu.trace_stop"() : () -> ()
    %205 = arith.addf %204, %156 : vector<32x4xf32>
    %cst_69 = arith.constant dense<0xFF800000> : vector<32xf32>
    %206 = vector.multi_reduction <maximumf>, %205, %cst_69 [1] : vector<32x4xf32> to vector<32xf32>
    %207 = vector.shape_cast %206 : vector<32xf32> to vector<32x1xf32>
    %208 = vector.broadcast %207 : vector<32x1xf32> to vector<32x4xf32>
    %209 = arith.subf %205, %208 : vector<32x4xf32>
    %210 = math.exp %209 : vector<32x4xf32>
    %cst_70 = arith.constant dense<0.000000e+00> : vector<32xf32>
    %211 = vector.multi_reduction <add>, %210, %cst_70 [1] : vector<32x4xf32> to vector<32xf32>
    %212 = vector.shape_cast %211 : vector<32xf32> to vector<32x1xf32>
    %213 = tpu.reciprocal %212 {approx = true} : vector<32x1xf32> -> vector<32x1xf32>
    %214 = vector.broadcast %213 : vector<32x1xf32> to vector<32x4xf32>
    %215 = arith.mulf %210, %214 : vector<32x4xf32>
    "tpu.trace_start"() <{level = 10 : i32, message = "qk,kd->qd"}> : () -> ()
    %cst_71 = arith.constant dense<0.000000e+00> : vector<32x8xf32>
    %216 = tpu.matmul %215, %203, %cst_71 {dimension_numbers = #tpu.dot_dimension_numbers<[1], [0], [0], [1], [0, 0, 1, 1], [], []>} : vector<32x4xf32>, vector<4x8xf32>, vector<32x8xf32> -> vector<32x8xf32>
    "tpu.trace_stop"() : () -> ()
    %217 = vector.extract_strided_slice %161 {offsets = [0, 24], sizes = [32, 8], strides = [1, 1]} : vector<32x32xf32> to vector<32x8xf32>
    %218 = vector.extract_strided_slice %167 {offsets = [0, 24], sizes = [4, 8], strides = [1, 1]} : vector<4x32xf32> to vector<4x8xf32>
    %219 = vector.extract_strided_slice %168 {offsets = [0, 24], sizes = [4, 8], strides = [1, 1]} : vector<4x32xf32> to vector<4x8xf32>
    "tpu.trace_start"() <{level = 10 : i32, message = "qd,kd->qk"}> : () -> ()
    %cst_72 = arith.constant dense<0.000000e+00> : vector<32x4xf32>
    %220 = tpu.matmul %217, %218, %cst_72 {dimension_numbers = #tpu.dot_dimension_numbers<[1], [1], [0], [0], [0, 0, 1, 0], [], []>} : vector<32x8xf32>, vector<4x8xf32>, vector<32x4xf32> -> vector<32x4xf32>
    "tpu.trace_stop"() : () -> ()
    %221 = arith.addf %220, %156 : vector<32x4xf32>
    %cst_73 = arith.constant dense<0xFF800000> : vector<32xf32>
    %222 = vector.multi_reduction <maximumf>, %221, %cst_73 [1] : vector<32x4xf32> to vector<32xf32>
    %223 = vector.shape_cast %222 : vector<32xf32> to vector<32x1xf32>
    %224 = vector.broadcast %223 : vector<32x1xf32> to vector<32x4xf32>
    %225 = arith.subf %221, %224 : vector<32x4xf32>
    %226 = math.exp %225 : vector<32x4xf32>
    %cst_74 = arith.constant dense<0.000000e+00> : vector<32xf32>
    %227 = vector.multi_reduction <add>, %226, %cst_74 [1] : vector<32x4xf32> to vector<32xf32>
    %228 = vector.shape_cast %227 : vector<32xf32> to vector<32x1xf32>
    %229 = tpu.reciprocal %228 {approx = true} : vector<32x1xf32> -> vector<32x1xf32>
    %230 = vector.broadcast %229 : vector<32x1xf32> to vector<32x4xf32>
    %231 = arith.mulf %226, %230 : vector<32x4xf32>
    "tpu.trace_start"() <{level = 10 : i32, message = "qk,kd->qd"}> : () -> ()
    %cst_75 = arith.constant dense<0.000000e+00> : vector<32x8xf32>
    %232 = tpu.matmul %231, %219, %cst_75 {dimension_numbers = #tpu.dot_dimension_numbers<[1], [0], [0], [1], [0, 0, 1, 1], [], []>} : vector<32x4xf32>, vector<4x8xf32>, vector<32x8xf32> -> vector<32x8xf32>
    "tpu.trace_stop"() : () -> ()
    %233 = tpu.concatenate %184, %200, %216, %232 in 1 : vector<32x8xf32>, vector<32x8xf32>, vector<32x8xf32>, vector<32x8xf32> -> vector<32x32xf32>
    %c0_76 = arith.constant 0 : index
    %c0_77 = arith.constant 0 : index
    %234 = vector.load %arg13[%c0_76, %c0_77] : memref<3x32xf32, #tpu.memory_space<vmem>>, vector<3x32xf32>
    %c0_78 = arith.constant 0 : index
    %c0_79 = arith.constant 0 : index
    %235 = vector.load %arg12[%c0_78, %c0_79] : memref<32x32xf32, #tpu.memory_space<vmem>>, vector<32x32xf32>
    %cst_80 = arith.constant dense<0.000000e+00> : vector<32x32xf32>
    %236 = tpu.matmul %233, %235, %cst_80 {dimension_numbers = #tpu.dot_dimension_numbers<[1], [0], [0], [1], [0, 0, 1, 1], [], []>} : vector<32x32xf32>, vector<32x32xf32>, vector<32x32xf32> -> vector<32x32xf32>
    %237 = vector.extract_strided_slice %234 {offsets = [0, 0], sizes = [1, 32], strides = [1, 1]} : vector<3x32xf32> to vector<1x32xf32>
    %238 = vector.broadcast %237 : vector<1x32xf32> to vector<32x32xf32>
    %239 = arith.addf %236, %238 : vector<32x32xf32>
    %240 = arith.addf %128, %239 : vector<32x32xf32>
    %241 = vector.extract_strided_slice %234 {offsets = [1, 0], sizes = [1, 32], strides = [1, 1]} : vector<3x32xf32> to vector<1x32xf32>
    %242 = vector.extract_strided_slice %234 {offsets = [2, 0], sizes = [1, 32], strides = [1, 1]} : vector<3x32xf32> to vector<1x32xf32>
    %cst_81 = arith.constant dense<0.000000e+00> : vector<32xf32>
    %243 = vector.multi_reduction <add>, %240, %cst_81 [1] : vector<32x32xf32> to vector<32xf32>
    %244 = vector.shape_cast %243 : vector<32xf32> to vector<32x1xf32>
    %cst_82 = arith.constant 3.200000e+01 : f32
    %245 = vector.broadcast %cst_82 : f32 to vector<32x1xf32>
    %246 = arith.divf %244, %245 : vector<32x1xf32>
    %247 = vector.broadcast %246 : vector<32x1xf32> to vector<32x32xf32>
    %248 = arith.subf %240, %247 : vector<32x32xf32>
    %249 = arith.mulf %248, %248 : vector<32x32xf32>
    %cst_83 = arith.constant dense<0.000000e+00> : vector<32xf32>
    %250 = vector.multi_reduction <add>, %249, %cst_83 [1] : vector<32x32xf32> to vector<32xf32>
    %251 = vector.shape_cast %250 : vector<32xf32> to vector<32x1xf32>
    %cst_84 = arith.constant 0.0322580636 : f32
    %252 = vector.broadcast %cst_84 : f32 to vector<32x1xf32>
    %253 = arith.mulf %251, %252 : vector<32x1xf32>
    %254 = math.sqrt %253 : vector<32x1xf32>
    %cst_85 = arith.constant 9.99999997E-7 : f32
    %255 = vector.broadcast %cst_85 : f32 to vector<32x1xf32>
    %256 = arith.addf %254, %255 : vector<32x1xf32>
    %257 = tpu.reciprocal %256 : vector<32x1xf32> -> vector<32x1xf32>
    %258 = vector.broadcast %246 : vector<32x1xf32> to vector<32x32xf32>
    %259 = arith.subf %240, %258 : vector<32x32xf32>
    %260 = vector.broadcast %257 : vector<32x1xf32> to vector<32x32xf32>
    %261 = arith.mulf %259, %260 : vector<32x32xf32>
    %262 = vector.broadcast %241 : vector<1x32xf32> to vector<32x32xf32>
    %263 = arith.mulf %262, %261 : vector<32x32xf32>
    %264 = vector.broadcast %242 : vector<1x32xf32> to vector<32x32xf32>
    %265 = arith.addf %263, %264 : vector<32x32xf32>
    %c0_86 = arith.constant 0 : index
    %c0_87 = arith.constant 0 : index
    %266 = vector.load %arg14[%c0_86, %c0_87] : memref<32x64xf32, #tpu.memory_space<vmem>>, vector<32x64xf32>
    %cst_88 = arith.constant dense<0.000000e+00> : vector<32x64xf32>
    %267 = tpu.matmul %265, %266, %cst_88 {dimension_numbers = #tpu.dot_dimension_numbers<[1], [0], [0], [1], [0, 0, 1, 1], [], []>} : vector<32x32xf32>, vector<32x64xf32>, vector<32x64xf32> -> vector<32x64xf32>
    %c0_89 = arith.constant 0 : index
    %c0_90 = arith.constant 0 : index
    %268 = vector.load %arg15[%c0_89, %c0_90] : memref<1x64xf32, #tpu.memory_space<vmem>>, vector<1x64xf32>
    %269 = vector.broadcast %268 : vector<1x64xf32> to vector<32x64xf32>
    %270 = arith.addf %267, %269 : vector<32x64xf32>
    %cst_91 = arith.constant 0.000000e+00 : f32
    %271 = vector.broadcast %cst_91 : f32 to vector<32x64xf32>
    %272 = arith.maximumf %270, %271 : vector<32x64xf32>
    %c0_92 = arith.constant 0 : index
    %c0_93 = arith.constant 0 : index
    %273 = vector.load %arg17[%c0_92, %c0_93] : memref<3x32xf32, #tpu.memory_space<vmem>>, vector<3x32xf32>
    %c0_94 = arith.constant 0 : index
    %c0_95 = arith.constant 0 : index
    %274 = vector.load %arg16[%c0_94, %c0_95] : memref<64x32xf32, #tpu.memory_space<vmem>>, vector<64x32xf32>
    %cst_96 = arith.constant dense<0.000000e+00> : vector<32x32xf32>
    %275 = tpu.matmul %272, %274, %cst_96 {dimension_numbers = #tpu.dot_dimension_numbers<[1], [0], [0], [1], [0, 0, 1, 1], [], []>} : vector<32x64xf32>, vector<64x32xf32>, vector<32x32xf32> -> vector<32x32xf32>
    %276 = vector.extract_strided_slice %273 {offsets = [0, 0], sizes = [1, 32], strides = [1, 1]} : vector<3x32xf32> to vector<1x32xf32>
    %277 = vector.broadcast %276 : vector<1x32xf32> to vector<32x32xf32>
    %278 = arith.addf %275, %277 : vector<32x32xf32>
    %279 = arith.addf %265, %278 : vector<32x32xf32>
    %280 = vector.extract_strided_slice %273 {offsets = [1, 0], sizes = [1, 32], strides = [1, 1]} : vector<3x32xf32> to vector<1x32xf32>
    %281 = vector.extract_strided_slice %273 {offsets = [2, 0], sizes = [1, 32], strides = [1, 1]} : vector<3x32xf32> to vector<1x32xf32>
    %cst_97 = arith.constant dense<0.000000e+00> : vector<32xf32>
    %282 = vector.multi_reduction <add>, %279, %cst_97 [1] : vector<32x32xf32> to vector<32xf32>
    %283 = vector.shape_cast %282 : vector<32xf32> to vector<32x1xf32>
    %cst_98 = arith.constant 3.200000e+01 : f32
    %284 = vector.broadcast %cst_98 : f32 to vector<32x1xf32>
    %285 = arith.divf %283, %284 : vector<32x1xf32>
    %286 = vector.broadcast %285 : vector<32x1xf32> to vector<32x32xf32>
    %287 = arith.subf %279, %286 : vector<32x32xf32>
    %288 = arith.mulf %287, %287 : vector<32x32xf32>
    %cst_99 = arith.constant dense<0.000000e+00> : vector<32xf32>
    %289 = vector.multi_reduction <add>, %288, %cst_99 [1] : vector<32x32xf32> to vector<32xf32>
    %290 = vector.shape_cast %289 : vector<32xf32> to vector<32x1xf32>
    %cst_100 = arith.constant 0.0322580636 : f32
    %291 = vector.broadcast %cst_100 : f32 to vector<32x1xf32>
    %292 = arith.mulf %290, %291 : vector<32x1xf32>
    %293 = math.sqrt %292 : vector<32x1xf32>
    %cst_101 = arith.constant 9.99999997E-7 : f32
    %294 = vector.broadcast %cst_101 : f32 to vector<32x1xf32>
    %295 = arith.addf %293, %294 : vector<32x1xf32>
    %296 = tpu.reciprocal %295 : vector<32x1xf32> -> vector<32x1xf32>
    %297 = vector.broadcast %285 : vector<32x1xf32> to vector<32x32xf32>
    %298 = arith.subf %279, %297 : vector<32x32xf32>
    %299 = vector.broadcast %296 : vector<32x1xf32> to vector<32x32xf32>
    %300 = arith.mulf %298, %299 : vector<32x32xf32>
    %301 = vector.broadcast %280 : vector<1x32xf32> to vector<32x32xf32>
    %302 = arith.mulf %301, %300 : vector<32x32xf32>
    %303 = vector.broadcast %281 : vector<1x32xf32> to vector<32x32xf32>
    %304 = arith.addf %302, %303 : vector<32x32xf32>
    %c0_102 = arith.constant 0 : index
    %c0_103 = arith.constant 0 : index
    %c0_104 = arith.constant 0 : index
    %305 = vector.load %arg18[%c0_102, %c0_103, %c0_104] : memref<1x32x32xf32, #tpu.memory_space<vmem>>, vector<1x32x32xf32>
    %306 = vector.shape_cast %305 : vector<1x32x32xf32> to vector<32x32xf32>
    %307 = vector.shape_cast %304 : vector<32x32xf32> to vector<1x32x32xf32>
    tpu.vector_store %arg18[%c0_102, %c0_103, %c0_104], %307 {strides = array<i32>} : memref<1x32x32xf32, #tpu.memory_space<vmem>>, vector<1x32x32xf32>,
    return
  }
  func.func @transform_0(%arg0: i32) -> (i32, i32, i32, i32) {
    %c0_i32 = arith.constant 0 : i32
    %c0_i32_0 = arith.constant 0 : i32
    %c0_i32_1 = arith.constant 0 : i32
    %c0_i32_2 = arith.constant 0 : i32
    return %arg0, %c0_i32, %c0_i32_0, %c0_i32_1 : i32, i32, i32, i32
  }
  func.func @transform_1(%arg0: i32) -> (i32, i32, i32) {
    %c0_i32 = arith.constant 0 : i32
    %c0_i32_0 = arith.constant 0 : i32
    %c0_i32_1 = arith.constant 0 : i32
    return %arg0, %c0_i32, %c0_i32_0 : i32, i32, i32
  }
  func.func @transform_2(%arg0: i32) -> (i32, i32, i32) {
    %c0_i32 = arith.constant 0 : i32
    %c0_i32_0 = arith.constant 0 : i32
    %c0_i32_1 = arith.constant 0 : i32
    return %arg0, %c0_i32, %c0_i32_0 : i32, i32, i32
  }
  func.func @transform_3(%arg0: i32) -> (i32, i32) {
    %c0_i32 = arith.constant 0 : i32
    %c0_i32_0 = arith.constant 0 : i32
    %c0_i32_1 = arith.constant 0 : i32
    return %c0_i32, %c0_i32_0 : i32, i32
  }
  func.func @transform_4(%arg0: i32) -> (i32, i32) {
    %c0_i32 = arith.constant 0 : i32
    %c0_i32_0 = arith.constant 0 : i32
    %c0_i32_1 = arith.constant 0 : i32
    return %c0_i32, %c0_i32_0 : i32, i32
  }
  func.func @transform_5(%arg0: i32) -> (i32, i32) {
    %c0_i32 = arith.constant 0 : i32
    %c0_i32_0 = arith.constant 0 : i32
    %c0_i32_1 = arith.constant 0 : i32
    return %c0_i32, %c0_i32_0 : i32, i32
  }
  func.func @transform_6(%arg0: i32) -> (i32, i32) {
    %c0_i32 = arith.constant 0 : i32
    %c0_i32_0 = arith.constant 0 : i32
    %c0_i32_1 = arith.constant 0 : i32
    return %c0_i32, %c0_i32_0 : i32, i32
  }
  func.func @transform_7(%arg0: i32) -> (i32, i32) {
    %c0_i32 = arith.constant 0 : i32
    %c0_i32_0 = arith.constant 0 : i32
    %c0_i32_1 = arith.constant 0 : i32
    return %c0_i32, %c0_i32_0 : i32, i32
  }
  func.func @transform_8(%arg0: i32) -> (i32, i32) {
    %c0_i32 = arith.constant 0 : i32
    %c0_i32_0 = arith.constant 0 : i32
    %c0_i32_1 = arith.constant 0 : i32
    return %c0_i32, %c0_i32_0 : i32, i32
  }
  func.func @transform_9(%arg0: i32) -> (i32, i32) {
    %c0_i32 = arith.constant 0 : i32
    %c0_i32_0 = arith.constant 0 : i32
    %c0_i32_1 = arith.constant 0 : i32
    return %c0_i32, %c0_i32_0 : i32, i32
  }
  func.func @transform_10(%arg0: i32) -> (i32, i32) {
    %c0_i32 = arith.constant 0 : i32
    %c0_i32_0 = arith.constant 0 : i32
    %c0_i32_1 = arith.constant 0 : i32
    return %c0_i32, %c0_i32_0 : i32, i32
  }
  func.func @transform_11(%arg0: i32) -> (i32, i32) {
    %c0_i32 = arith.constant 0 : i32
    %c0_i32_0 = arith.constant 0 : i32
    %c0_i32_1 = arith.constant 0 : i32
    return %c0_i32, %c0_i32_0 : i32, i32
  }
  func.func @transform_12(%arg0: i32) -> (i32, i32) {
    %c0_i32 = arith.constant 0 : i32
    %c0_i32_0 = arith.constant 0 : i32
    %c0_i32_1 = arith.constant 0 : i32
    return %c0_i32, %c0_i32_0 : i32, i32
  }
  func.func @transform_13(%arg0: i32) -> (i32, i32) {
    %c0_i32 = arith.constant 0 : i32
    %c0_i32_0 = arith.constant 0 : i32
    %c0_i32_1 = arith.constant 0 : i32
    return %c0_i32, %c0_i32_0 : i32, i32
  }
  func.func @transform_14(%arg0: i32) -> (i32, i32) {
    %c0_i32 = arith.constant 0 : i32
    %c0_i32_0 = arith.constant 0 : i32
    %c0_i32_1 = arith.constant 0 : i32
    return %c0_i32, %c0_i32_0 : i32, i32
  }
  func.func @transform_15(%arg0: i32) -> (i32, i32) {
    %c0_i32 = arith.constant 0 : i32
    %c0_i32_0 = arith.constant 0 : i32
    %c0_i32_1 = arith.constant 0 : i32
    return %c0_i32, %c0_i32_0 : i32, i32
  }
  func.func @transform_16(%arg0: i32) -> (i32, i32) {
    %c0_i32 = arith.constant 0 : i32
    %c0_i32_0 = arith.constant 0 : i32
    %c0_i32_1 = arith.constant 0 : i32
    return %c0_i32, %c0_i32_0 : i32, i32
  }
  func.func @transform_17(%arg0: i32) -> (i32, i32, i32) {
    %c0_i32 = arith.constant 0 : i32
    %c0_i32_0 = arith.constant 0 : i32
    %c0_i32_1 = arith.constant 0 : i32
    return %arg0, %c0_i32, %c0_i32_0 : i32, i32, i32
  }
}

</mosaic_0001>

<bundles_post_ra>
// kernel: tpu_custom_call.1
= control target key start
LH: loop header
LB: loop body
LE: loop exit
PB: predicated region body
PF: predicated region fallthrough
CT: control target
= control target key end

     0   :  { %s8394_s0 = inlined_call_operand.vmem [shape: f32[2,4,8,32], index: 0, kind: input, shape index: {}]   ;;  %s8395_s1 = inlined_call_operand.hbm [shape: f32[2,4,8], index: 1, kind: input, shape index: {}]   ;;  %s8396_s2 = inlined_call_operand.vmem [shape: f32[2,1,4], index: 2, kind: input, shape index: {}]   ;;  %s8397_s3 = inlined_call_operand.vmem [shape: f32[32,96], index: 3, kind: input, shape index: {}]   ;;  %s8398_s4 = inlined_call_operand.vmem [shape: f32[1,96], index: 4, kind: input, shape index: {}]   ;;  %s8399_s5 = inlined_call_operand.hbm [shape: f32[32,32], index: 5, kind: input, shape index: {}]   ;;  %s8400_s6 = inlined_call_operand.vmem [shape: f32[3,32], index: 6, kind: input, shape index: {}]   ;;  %s8401_s7 = inlined_call_operand.hbm [shape: f32[32,32], index: 7, kind: input, shape index: {}]   ;;  %s8402_s8 = inlined_call_operand.vmem [shape: f32[1,32], index: 8, kind: input, shape index: {}]   ;;  %s8403_s9 = inlined_call_operand.hbm [shape: f32[32,64], index: 9, kind: input, shape index: {}]   ;;  %s8404_s10 = inlined_call_operand.vmem [shape: f32[1,64], index: 10, kind: input, shape index: {}]   ;;  %s8405_s11 = inlined_call_operand.hbm [shape: f32[32,32], index: 11, kind: input, shape index: {}]   ;;  %s8406_s12 = inlined_call_operand.vmem [shape: f32[3,32], index: 12, kind: input, shape index: {}]   ;;  %s8407_s13 = inlined_call_operand.hbm [shape: f32[32,64], index: 13, kind: input, shape index: {}]   ;;  %s8408_s14 = inlined_call_operand.vmem [shape: f32[1,64], index: 14, kind: input, shape index: {}]   ;;  %s8409_s15 = inlined_call_operand.vmem [shape: f32[64,32], index: 15, kind: input, shape index: {}]   ;;  %s8410_s16 = inlined_call_operand.vmem [shape: f32[3,32], index: 16, kind: input, shape index: {}]   ;;  %s8411_s17 = inlined_call_operand.hbm [shape: f32[2,32,32], index: 17, kind: output, shape index: {}]  }
   0x1   :  { %8420 = sst [smem:[#allocation19_spill]] %s8394_s0 }
   0x2   :  { %8421 = sst [smem:[#allocation20_spill]] %s8395_s1 }
   0x3   :  { %8422 = sst [smem:[#allocation21_spill]] %s8396_s2 }
   0x4   :  { %8423 = sst [smem:[#allocation22_spill]] %s8399_s5 }
   0x5   :  { %8424 = sst [smem:[#allocation23_spill]] %s8401_s7 }
   0x6   :  { %8425 = sst [smem:[#allocation24_spill]] %s8404_s10 }
   0x7   :  { %8426 = sst [smem:[#allocation25_spill]] %s8406_s12 }
   0x8   :  { %8427 = sst [smem:[#allocation26_spill]] %s8408_s14 }
   0x9   :  { %8428 = sst [smem:[#allocation27_spill]] %s8409_s15 }
   0xa   :  { %8429 = sst [smem:[#allocation28_spill]] %s8410_s16 }
   0xb   :  { %8430 = sst [smem:[#allocation29_spill]] %s8411_s17 }
   0xc   :  { %22 = vsyncpa [#allocation3], 0 }
   0xd   :  { %24 = vsyncpa [#allocation3 + $0x1], 0 }
   0xe   :  { %25 = vsyncpa [#allocation6], 0 }
   0xf   :  { %26 = vsyncpa [#allocation9], 0 }
  0x10   :  { %27 = vsyncpa [#allocation12], 0 }
  0x11   :  { %28 = vsyncpa [#allocation4], 0 }
  0x12   :  { %30 = vsyncpa [#allocation4 + $0x1], 0  ;;  %s7192_s24 = smov 0   ;;  %s7194_s25 = smov 0  }
  0x13   :  { %s7196_s26 = smov 0   ;;  %s7198_s27 = smov 0  }
  0x14 LB: > { %s7074_s28 = smov [#allocation5]   ;;  %s7213_s0 = sadd.s32 4294967295, %s7072_s27   ;;  %s7072_s27 = sphi %s7198_s27, %s8464_s27   ;;  %s7068_s26 = sphi %s7196_s26, %s8463_s26   ;;  %s7064_s25 = sphi %s7194_s25, %s8462_s25   ;;  %s7060_s24 = sphi %s7192_s24, %s8461_s24  }
  0x15   : > { %s457_s29 = sshll.u32 %s7074_s28, 4  ;;  %p5808_p0 = scmp.ge.s32.totalorder %s7072_s27, 1  ;;  %s7218_s29 = int_to_ptr.vmem [resolvable:$true] %s457_s29 }
  0x16   : > { %p8415_p1 = scmp.eq.s32.totalorder %s7213_s0, 0  ;;  %p439_p2 = scmp.lt.s32.totalorder %s7072_s27, 3 }
  0x17   : > { %s7075_s18 = smov [#allocation8]   ;;  %s7076_s20 = smov [#allocation7]  }
  0x18   : > { %p7220_p3 = pnand %p5808_p0, %p439_p2  ;;  %s489_s19 = sshll.u32 %s7075_s18, 4  ;;  %s7233_s19 = int_to_ptr.vmem [resolvable:$true] %s489_s19 }
  0x19   : > { %s473_s21 = sshll.u32 %s7076_s20, 4  ;;  %s8433_s5 = sld [smem:[#allocation22_spill]]  ;;  %s7235_s21 = int_to_ptr.vmem [resolvable:$true] %s473_s21 }
  0x1a   : > { %s8431_s30 = scalar_select %p7220_p3, 1, 0 }
  0x1b   : > { %p6550_p5 = pneg %p7220_p3 }
  0x1d   : > { %p7229_p6 = pnand %p6550_p5, %p8415_p1 }
  0x1f   : > { %s6824_s28 = scalar_lea.hbm %s8433_s5, 512  ;;  %p7245_p8 = pneg %p7229_p6 }
  0x20   : > { %p6825_p7 = scmp.ne.s32.totalorder %s8433_s5, %s6824_s28  ;;  %p6831_p11 = scmp.lt.u32.totalorder %s6824_s28, %s8433_s5 }
  0x22   : > { %p6827_p9 = pnand %p7245_p8, %p6825_p7 }
  0x24   : > { %p6828_p10 = pneg %p6827_p9 }
  0x26   : > { %p6833_p12 = pnand %p6831_p11, %p6828_p10 }
  0x28   : > { %6836 = shalt.err (!%p6833_p12)
}
  0x29   : > { %s6837_s16 = scalar_lea.vmem %s7218_s29, 512  ;;  %p6845_p5 = scmp.lt.s32.totalorder %s7218_s29, %s7218_s29 }
  0x2a   : > { %p6838_p13 = scmp.ne.s32.totalorder %s7218_s29, %s6837_s16  ;;  %p6846_p4 = scmp.lt.s32.totalorder %s6837_s16, %s6837_s16 }
  0x2c   : > { %p6840_p0 = pnand %p6838_p13, %p7245_p8  ;;  %p6847_p7 = por %p6846_p4, %p6845_p5 }
  0x2e   : > { %p6841_p2 = pneg %p6840_p0 }
  0x30   : > { %p6848_p9 = pnand %p6847_p7, %p6841_p2 }
  0x32   : > { %6851 = shalt.err (!%p6848_p9)
}
  0x33   : > { %s7077_s17 = smov 128   ;;  %s7078_s14 = smov 8  }
  0x34   : > { %6553 = dma.hbm_to_vmem [thread:$0]  (!%p7229_p6), %s8433_s5, 512, %s7218_s29, [#allocation6], %s7077_s17, %s7077_s17, %s7078_s14  }
  0x35   : > { %s6852_s16 = scalar_lea.hbm %s8403_s9, 512 }
  0x36   : > { %p6853_p4 = scmp.ne.s32.totalorder %s8403_s9, %s6852_s16  ;;  %p6859_p12 = scmp.lt.u32.totalorder %s6852_s16, %s8403_s9 }
  0x38   : > { %p6855_p10 = pnand %p6853_p4, %p7245_p8 }
  0x3a   : > { %p6856_p11 = pneg %p6855_p10 }
  0x3c   : > { %p6861_p13 = pnand %p6859_p12, %p6856_p11 }
  0x3e   : > { %6864 = shalt.err (!%p6861_p13)
}
  0x3f   : > { %s6865_s29 = scalar_lea.vmem %s7233_s19, 512  ;;  %p6873_p7 = scmp.lt.s32.totalorder %s7233_s19, %s7233_s19 }
  0x40   : > { %p6866_p0 = scmp.ne.s32.totalorder %s7233_s19, %s6865_s29  ;;  %p6874_p9 = scmp.lt.s32.totalorder %s6865_s29, %s6865_s29 }
  0x42   : > { %p6868_p2 = pnand %p6866_p0, %p7245_p8  ;;  %p6875_p4 = por %p6874_p9, %p6873_p7 }
  0x44   : > { %p6869_p5 = pneg %p6868_p2 }
  0x46   : > { %p6876_p10 = pnand %p6875_p4, %p6869_p5 }
  0x48   : > { %6879 = shalt.err (!%p6876_p10)
}
  0x49   : > { %6559 = dma.hbm_to_vmem [thread:$0]  (!%p7229_p6), %s8403_s9, 512, %s7233_s19, [#allocation9], %s7077_s17, %s7077_s17, %s7078_s14  }
  0x4a   : > { %s8435_s7 = sld [smem:[#allocation23_spill]] }
  0x50   : > { %s6880_s22 = scalar_lea.hbm %s8435_s7, 512 }
  0x51   : > { %p6881_p11 = scmp.ne.s32.totalorder %s8435_s7, %s6880_s22  ;;  %p6887_p0 = scmp.lt.u32.totalorder %s6880_s22, %s8435_s7 }
  0x53   : > { %p6883_p12 = pnand %p6881_p11, %p7245_p8 }
  0x55   : > { %p6884_p13 = pneg %p6883_p12 }
  0x57   : > { %p6889_p2 = pnand %p6887_p0, %p6884_p13 }
  0x59   : > { %6892 = shalt.err (!%p6889_p2)
}
  0x5a   : > { %s6893_s19 = scalar_lea.vmem %s7235_s21, 512  ;;  %p6901_p4 = scmp.lt.s32.totalorder %s7235_s21, %s7235_s21 }
  0x5b   : > { %p6894_p5 = scmp.ne.s32.totalorder %s7235_s21, %s6893_s19  ;;  %p6902_p10 = scmp.lt.s32.totalorder %s6893_s19, %s6893_s19 }
  0x5d   : > { %p6896_p7 = pnand %p6894_p5, %p7245_p8  ;;  %p6903_p11 = por %p6902_p10, %p6901_p4 }
  0x5f   : > { %p6897_p9 = pneg %p6896_p7 }
  0x61   : > { %p6904_p12 = pnand %p6903_p11, %p6897_p9 }
  0x63   : > { %6907 = shalt.err (!%p6904_p12)
}
  0x64   : > { %6556 = dma.hbm_to_vmem [thread:$0]  (!%p7229_p6), %s8435_s7, 512, %s7235_s21, [#allocation6], %s7077_s17, %s7077_s17, %s7078_s14  }
  0x65   : > { %s7079_s10 = smov [#allocation10]   ;;  %s7080_s15 = smov [#allocation11]  }
  0x66   : > { %s505_s12 = sshll.u32 %s7079_s10, 4  ;;  %s521_s22 = sshll.u32 %s7080_s15, 4  ;;  %s506_s12 = int_to_ptr.vmem [resolvable:$true] %s505_s12  ;;  %s522_s22 = int_to_ptr.vmem [resolvable:$true] %s521_s22 }
  0x67   : > { %s6908_s20 = scalar_lea.hbm %s8405_s11, 512 }
  0x68   : > { %p6909_p13 = scmp.ne.s32.totalorder %s8405_s11, %s6908_s20  ;;  %p6915_p5 = scmp.lt.u32.totalorder %s6908_s20, %s8405_s11 }
  0x6a   : > { %p6911_p0 = pnand %p6909_p13, %p7245_p8 }
  0x6c   : > { %p6912_p2 = pneg %p6911_p0 }
  0x6e   : > { %p6917_p7 = pnand %p6915_p5, %p6912_p2 }
  0x70   : > { %6920 = shalt.err (!%p6917_p7)
}
  0x71   : > { %s6921_s21 = scalar_lea.vmem %s506_s12, 512  ;;  %p6929_p11 = scmp.lt.s32.totalorder %s506_s12, %s506_s12 }
  0x72   : > { %p6922_p9 = scmp.ne.s32.totalorder %s506_s12, %s6921_s21  ;;  %p6930_p12 = scmp.lt.s32.totalorder %s6921_s21, %s6921_s21 }
  0x74   : > { %p6924_p4 = pnand %p6922_p9, %p7245_p8  ;;  %p6931_p1 = por %p6930_p12, %p6929_p11 }
  0x76   : > { %p6925_p10 = pneg %p6924_p4 }
  0x78   : > { %p6932_p3 = pnand %p6931_p1, %p6925_p10 }
  0x7a   : > { %6935 = shalt.err (!%p6932_p3)
}
  0x7b   : > { %6562 = dma.hbm_to_vmem [thread:$0]  (!%p7229_p6), %s8405_s11, 512, %s506_s12, [#allocation9], %s7077_s17, %s7077_s17, %s7078_s14  }
  0x7c   : > { %s6936_s23 = scalar_lea.hbm %s8407_s13, 512 }
  0x7d   : > { %p6937_p1 = scmp.ne.s32.totalorder %s8407_s13, %s6936_s23  ;;  %p6943_p0 = scmp.lt.u32.totalorder %s6936_s23, %s8407_s13 }
  0x7f   : > { %p6939_p3 = pnand %p6937_p1, %p7245_p8 }
  0x81   : > { %p6940_p13 = pneg %p6939_p3 }
  0x83   : > { %p6945_p2 = pnand %p6943_p0, %p6940_p13 }
  0x85   : > { %6948 = shalt.err (!%p6945_p2)
}
  0x86   : > { %s6949_s29 = scalar_lea.vmem %s522_s22, 512  ;;  %p6957_p4 = scmp.lt.s32.totalorder %s522_s22, %s522_s22 }
  0x87   : > { %p6950_p5 = scmp.ne.s32.totalorder %s522_s22, %s6949_s29  ;;  %p6958_p10 = scmp.lt.s32.totalorder %s6949_s29, %s6949_s29 }
  0x89   : > { %p6952_p7 = pnand %p6950_p5, %p7245_p8  ;;  %p6959_p11 = por %p6958_p10, %p6957_p4 }
  0x8b   : > { %p6953_p9 = pneg %p6952_p7 }
  0x8d   : > { %p6960_p12 = pnand %p6959_p11, %p6953_p9 }
  0x8f   : > { %6963 = shalt.err (!%p6960_p12)
}
  0x90   : > { %6565 = dma.hbm_to_vmem [thread:$0]  (!%p7229_p6), %s8407_s13, 512, %s522_s22, [#allocation12], %s7077_s17, %s7077_s17, %s7078_s14  }
  0x91   : > { %s5807_s1 = sadd.s32 4294967294, %s7072_s27   ;;  %s7365_s18 = sadd.s32 1, %s7072_s27  }
  0x92   : > { %s69_s5 = sadd.s32 1, %s7068_s26  ;;  %s66_s2 = ssub.s32 %s7072_s27, %s7365_s18 }
  0x93   : > { %p76_p8 = scmp.ne.s32.totalorder %s7068_s26, %s7064_s25  ;;  %p67_p1 = scmp.eq.s32.totalorder %s66_s2, 0 }
  0x94   : > { %p77_p3 = scmp.eq.s32.totalorder %s7072_s27, 0  ;;  %p82_p13 = scmp.ne.s32.totalorder %s7064_s25, %s7060_s24 }
  0x95   : > { %p426_p0 = scmp.eq.s32.totalorder %s7213_s0, 1  ;;  %p8436_p5 = scmp.eq.s32.totalorder %s7213_s0, 0 }
  0x96   : > { %s7377_s10 = scalar_select %p67_p1, %s7068_s26, %s69_s5  }
  0x97   : > { %p78_p2 = por %p77_p3, %p76_p8  ;;  %p7381_p7 = por %p8436_p5, %p82_p13 }
  0x98   : > { %p7385_p6 = por %p426_p0, %p76_p8  ;;  %p432_p9 = scmp.eq.s32.totalorder %s5807_s1, 1 }
  0x99   : > { %p6579_p4 = scmp.lt.s32.totalorder %s7072_s27, 2  ;;  %s552_s14 = sand.u32 1, %s7068_s26  }
  0x9a   : > { %s8438_s17 = scalar_select %p7385_p6, 1, 0 }
  0x9b   : > { %p7391_p10 = por %p432_p9, %p82_p13  ;;  %s5815_s23 = sshll.u32 %s552_s14, 2 }
  0x9c   : > { %s5816_s28 = sshll.u32 %s7072_s27, 6  ;;  %s8440_s19 = sld [smem:[#allocation20_spill]] }
  0x9d   : > { %s8439_s22 = scalar_select %p7391_p10, 1, 0 }
  0x9e   : > { %s556_s12 = scalar_lea.vmem [#allocation2], %s5815_s23  ;;  %p7401_p11 = pnand %p6579_p4, %p78_p2 }
  0x9f   : > { %s563_s21 = sshll.u32 %s556_s12, 4  ;;  %s553_s5 = scalar_lea.sflag [#allocation3], %s552_s14  ;;  %s7405_s21 = int_to_ptr.vmem [resolvable:$true] %s563_s21 }
  0xa0   : > { %p6966_p8 = pneg %p7401_p11 }
  0xa2   : > { %s7399_s29 = scalar_lea.hbm %s8440_s19, %s5816_s28  ;;  %s6969_s20 = scalar_lea.hbm %s8440_s19, 128 }
  0xa3   : > { %s6964_s2 = scalar_lea.hbm %s7399_s29, 64  ;;  %p6970_p13 = scmp.lt.u32.totalorder %s7399_s29, %s8440_s19 }
  0xa4   : > { %p6965_p12 = scmp.ne.s32.totalorder %s7399_s29, %s6964_s2  ;;  %p6971_p0 = scmp.lt.u32.totalorder %s6969_s20, %s6964_s2 }
  0xa5   : > { %p6973_p5 = scmp.lt.u32.totalorder %s6964_s2, %s7399_s29 }
  0xa6   : > { %p6967_p1 = pnand %p6966_p8, %p6965_p12  ;;  %p6972_p2 = por %p6971_p0, %p6970_p13 }
  0xa8   : > { %p6968_p3 = pneg %p6967_p1  ;;  %p6974_p9 = por %p6973_p5, %p6972_p2 }
  0xaa   : > { %p6975_p4 = pnand %p6974_p9, %p6968_p3 }
  0xac   : > { %6978 = shalt.err (!%p6975_p4)
}
  0xad   : > { %s6979_s14 = scalar_lea.vmem %s7405_s21, 64  ;;  %s7081_s28 = smov [#allocation2]  }
  0xae   : > { %p6980_p12 = scmp.ne.s32.totalorder %s7405_s21, %s6979_s14  ;;  %s6984_s23 = sshll.u32 %s7081_s28, 4  ;;  %s6985_s23 = int_to_ptr.vmem [resolvable:$false] %s6984_s23 }
  0xaf   : > { %s6986_s16 = scalar_lea.vmem %s6985_s23, 128  ;;  %p6987_p6 = scmp.lt.s32.totalorder %s7405_s21, %s6985_s23 }
  0xb0   : > { %p6982_p1 = pnand %p6980_p12, %p6966_p8  ;;  %p6988_p13 = scmp.lt.s32.totalorder %s6986_s16, %s6979_s14 }
  0xb2   : > { %p6983_p10 = pneg %p6982_p1  ;;  %p6989_p0 = por %p6988_p13, %p6987_p6 }
  0xb4   : > { %p6990_p2 = pnand %p6989_p0, %p6983_p10 }
  0xb6   : > { %6993 = shalt.err (!%p6990_p2)
}
  0xb7   : > { %6569 = dma.hbm_to_vmem [thread:$0]  (!%p7401_p11), %s7399_s29, 64, %s7405_s21, %s553_s5  }
  0xb8   : > { %p8442_p3 = scmp.ne.s32.totalorder %s8431_s30, 0 }
  0xb9   : > { %s7435_s2 = sand.u32 (!%p8442_p3), 1, %s7064_s25  }
  0xba   : > { %578 = sbr.rel (%p8442_p3) target bundleno = 6443 (0x192b), region = 88  ;;  %s5818_s20 = sshll.u32 (!%p8442_p3), %s7435_s2, 2 }
  0xbb   : > { %s581_s12 = scalar_lea.sflag (!%p8442_p3), [#allocation3], %s7435_s2  ;;  %s7439_s14 = scalar_lea.vmem (!%p8442_p3), [#allocation2], %s5818_s20 }
  0xc1   : > { %7039 = dma.done.wait (%p7381_p7), %s581_s12, 64  }
  0xc2   : > { %7041 = vsyncadd (%p7381_p7), %s581_s12, 4294967232  ;;  %p8443_p6 = scmp.eq.s32.totalorder %s7213_s0, 0 }
  0xc4   : > { %7043 = dma.done.wait (%p8443_p6), [#allocation6], 1024   ;;  %p8444_p10 = pmov %p8443_p6 }
  0xc5   : > { %p8445_p11 = pmov %p8443_p6 }
  0xc6   : > { %7045 = vsyncadd (%p8444_p10), [#allocation6], 4294966272 }
  0xc7   : > { %7047 = dma.done.wait (%p8445_p11), [#allocation9], 1024   ;;  %p8446_p8 = pmov %p8443_p6 }
  0xc8   : > { %p8447_p5 = pmov %p8443_p6 }
  0xc9   : > { %7049 = vsyncadd (%p8446_p8), [#allocation9], 4294966272 }
  0xca   : > { %7051 = dma.done.wait (%p8447_p5), [#allocation12], 512   ;;  %p8448_p9 = pmov %p8447_p5 }
  0xcb   : > { %p663_p7 = scmp.lt.s32.totalorder %s7213_s0, 1  ;;  %s8449_s1 = sld [smem:[#allocation19_spill]]  ;;  %vm687_vm0 = vcmask 261120   ;;  %v676_v0 = vld [vmem:[%s8397_s3] sm:$0xff]  ;;  %v677_v1 = vld [vmem:[%s8397_s3 + $0x8] sm:$0xff]  ;;  %v678_v2 = vld [vmem:[%s8397_s3 + $0x10] sm:$0xff]  ;;  %v790_v26 = vlaneseq }
  0xcc   : > { %7053 = vsyncadd (%p8448_p9), [#allocation12], 4294966784  ;;  %v6458_v3 = vpack.c.bf16 %v677_v1, %v676_v0  ;;  %v679_v4 = vld [vmem:[%s8397_s3 + $0x18] sm:$0xff]  ;;  %v7082_v10 = vmov 0.0   ;;  %vm7083_vm1 = vmmov 0   ;;  %vm856_vm2 = vcmask 64512  }
  0xcd   : > { %s7459_s30 = scalar_select %p663_p7, %s7213_s0, 1  ;;  %v6462_v6 = vpack.c.bf16 %v679_v4, %v678_v2  ;;  %6134 = vmatprep.subr.mxu1 %v7082_v10  ;;  %6136 = vmatprep.mubr.msk.f32.mxu1 %vm7083_vm1, %v7082_v10  ;;  %v5827_v11 = vld [vmem:[%s8398_s4] ss:$0 sm:$0xff]  ;;  %v7085_v24 = vmov 1966171168   ;;  %v7536_v28 = vshrl.u32 %v790_v26, 7 }
  0xce   : > { %6459 = vmatprep.subr.bf16.mxu0 %v6458_v3  ;;  %v788_v25 = vunpack.c.l.s4 %v7085_v24  ;;  %v675_v29 = vld [vmem:[%s7439_s14] sm:$0xf]  ;;  %v7540_v35 = vand.u32 127, %v790_v26  ;;  %s7086_s14 = smov 64   ;;  %s7087_s28 = smov 88   ;;  %vm3542_vm4 = vcmask 130048  }
  0xcf   : > { %s5952_s15 = sshll.u32 %s7459_s30, 5  ;;  %6461 = vmatpush3.bf16.msra.mxu0 %v6458_v3  ;;  %v785_v30 = vsub.f32 1.0, %v675_v29  ;;  %v7543_v37 = vsub.s32 0, %v7536_v28  ;;  %s7088_s23 = smov 120   ;;  %vm3547_vm5 = vcmask 195584  }
  0xd0   : > { %6463 = vmatprep.subr.bf16.mxu0 %v6462_v6  ;;  %v789_v27 = vunpack.c.0.s8 %v788_v25  ;;  %vm823_vm3 = vcmp.gt.s32.totalorder %v7540_v35, %v7536_v28  ;;  %s7089_s16 = smov 56   ;;  %s7090_s20 = smov 80  }
  0xd1   : > { %s7465_s5 = scalar_lea.vmem %s8449_s1, %s5952_s15  ;;  %s7084_s1 = smov 96   ;;  %v824_v42 = vsel %vm823_vm3, -1e+10, %v7082_v10 }
  0xd2   : > { %v671_v5 = vld [vmem:[%s7465_s5] sm:$0xff]  ;;  %v672_v7 = vld [vmem:[%s7465_s5 + $0x8] sm:$0xff]  ;;  %v673_v8 = vld [vmem:[%s7465_s5 + $0x10] sm:$0xff]  ;;  %v792_v31 = vsub.s32 %v789_v27, %v7536_v28  ;;  %s7091_s12 = smov 112   ;;  %s7092_s15 = smov 48  }
  0xd3   : > { %6128 = vmatprep.mubr.msk.f32.mxu0 %vm687_vm0, %v671_v5  ;;  %6465 = vmatpush3.bf16.msra.mxu0 %v6462_v6  ;;  %v674_v9 = vld [vmem:[%s7465_s5 + $0x18] sm:$0xff]  ;;  %s7093_s29 = smov 72   ;;  %s7094_s7 = smov 104  }
  0xd4   : > { %6149 = vmatprep.subr.mxu0 %v7082_v10  ;;  %v793_v32 = vrot.slane %v785_v30, %v792_v31  ;;  %s7095_s21 = smov 40   ;;  %p8458_p12 = scmp.ne.s32.totalorder %s8438_s17, 0 }
  0xd6   : > { %6129 = vmatmul.mubr.msk.f32.vlgmr.msra.gmra.mrb[0].mxu0 %vm687_vm0, %v672_v7  ;;  %v801_v33 = vrot.slane %v793_v32, %v792_v31  ;;  %v794_v34 = vcombine.high %v793_v32, %v793_v32 }
  0xd7   : > { %6131 = vmatprep.mubr.msk.f32.mxu0 %vm687_vm0, %v673_v8 }
  0xd8   : > { %v815_v36 = vmul.f32 -1e+10, %v801_v33  ;;  %v808_v38 = vrot.slane %v794_v34, %v792_v31  ;;  %v809_v41 = vcombine.high %v801_v33, %v801_v33 }
  0xda   : > { %6132 = vmatmul.mubr.msk.f32.gmra.mrb[2].mxu0 %vm687_vm0, %v674_v9  ;;  %v832_v39 = vrot.slane %v815_v36, %v7543_v37  ;;  %v816_v40 = vmul.f32 -1e+10, %v808_v38  ;;  %v810_v43 = vcombine.high %v808_v38, %v808_v38  ;;  %v817_v46 = vmul.f32 -1e+10, %v809_v41 }
  0xdb   : > { %6151 = vmatprep.mubr.msk.f32.mxu0 %vm7083_vm1, %v7082_v10 }
  0xdc   : > { %v7549_v44 = vadd.f32 %v832_v39, %v824_v42  ;;  %v836_v45 = vrot.slane %v816_v40, %v7543_v37  ;;  %v818_v47 = vmul.f32 -1e+10, %v810_v43  ;;  %v840_v52 = vrot.slane %v817_v46, %v7543_v37 }
  0xde   : > { %v7553_v51 = vadd.f32 %v836_v45, %v824_v42  ;;  %v844_v54 = vrot.slane %v818_v47, %v7543_v37  ;;  %v7559_v58 = vadd.f32 %v840_v52, %v824_v42 }
  0xe0   : > { %v7561_v59 = vadd.f32 %v844_v54, %v824_v42 }
 0x1a9   : > { %v6130_v12 = vpop.f32.mrb[0].mxu0 }
 0x1aa   : > { %v766_v13 = vpop.f32.mrb[1].mxu0  ;;  %v7500_v17 = vadd.f32 %v6130_v12, %v5827_v11 }
 0x1ab   : > { %v7496_v14 = vadd.f32 %v5827_v11, %v766_v13 }
 0x1ad   : > { %v6133_v15 = vpop.f32.mrb[2].mxu0  ;;  %854 = vrot.lane.b32.xlu0 %v7496_v14, %s7084_s1 }
 0x1ae   : > { %v776_v16 = vpop.f32.mrb[3].mxu0  ;;  %v7504_v19 = vadd.f32 %v6133_v15, %v5827_v11 }
 0x1af   : > { %v7502_v18 = vadd.f32 %v5827_v11, %v776_v16 }
 0x1b1   : > { %1009 = vrot.lane.b32.xlu1 %v7502_v18, %s7084_s1  ;;  %932 = vrot.lane.b32.xlu0 %v7500_v17, %s7084_s1 }
 0x1b5   : > { %1086 = vrot.lane.b32.xlu1 %v7504_v19, %s7084_s1 }
 0x21f   : > { %v855_v20 = vpop.permute.xlu0 %854 }
 0x220   : > { %6135 = vmatpush3.xpose.msk.msra.mxu1 %vm856_vm2, %v855_v20 }
 0x221   : > { %6139 = vmatprep.subr.mxu1 %v7082_v10 }
 0x223   : > { %v1010_v21 = vpop.permute.xlu1 %1009  ;;  %6137 = vmatmul.mubr.msk.f32.vlgmr.msra.gmra.mrb[0].mxu1 %vm856_vm2, %v7496_v14  ;;  %v933_v22 = vpop.permute.xlu0 %932 }
 0x224   : > { %6140 = vmatpush3.xpose.msk.msra.mxu1 %vm856_vm2, %v933_v22  ;;  %6141 = vmatprep.mubr.msk.f32.mxu1 %vm7083_vm1, %v7082_v10 }
 0x225   : > { %6144 = vmatprep.subr.mxu1 %v7082_v10 }
 0x227   : > { %v1087_v23 = vpop.permute.xlu1 %1086  ;;  %6142 = vmatmul.mubr.msk.f32.vlgmr.msra.gmra.mrb[2].mxu1 %vm856_vm2, %v7500_v17 }
 0x228   : > { %6145 = vmatpush3.xpose.msk.msra.mxu1 %vm856_vm2, %v1010_v21  ;;  %6150 = vmatpush3.xpose.msk.msra.mxu0 %vm856_vm2, %v1087_v23 }
 0x229   : > { %6146 = vmatprep.mubr.msk.f32.mxu1 %vm7083_vm1, %v7082_v10  ;;  %6154 = vmatprep.subr.mxu1 %v7082_v10 }
 0x22a   : > { %6159 = vmatprep.subr.mxu0 %v7082_v10 }
 0x22b   : > { %6147 = vmatmul.mubr.msk.f32.vlgmr.msra.gmra.mrb[4].mxu1 %vm856_vm2, %v7502_v18  ;;  %6152 = vmatmul.mubr.msk.f32.vlgmr.msra.gmra.mrb[4].mxu0 %vm856_vm2, %v7504_v19 }
 0x22c   : > { %6156 = vmatprep.mubr.msk.f32.mxu1 %vm7083_vm1, %v7082_v10  ;;  %6161 = vmatprep.mubr.msk.f32.mxu0 %vm7083_vm1, %v7082_v10 }
 0x2f6   : > { %v927_v48 = vpop.f32.mrb[0].mxu1 }
 0x2f7   : > { %v928_v49 = vadd.f32 %v927_v48, %v7549_v44  ;;  %v6138_v50 = vpop.f32.mrb[1].mxu1 }
 0x2f9   : > { %v1162_v53 = vsel %vm856_vm2, %v928_v49, -inf }
 0x2fa   : > { %1163 = vmax.xlane.f32.xlu0 %v1162_v53  ;;  %v1004_v55 = vpop.f32.mrb[2].mxu1 }
 0x2fb   : > { %v1005_v56 = vadd.f32 %v1004_v55, %v7553_v51  ;;  %v6143_v57 = vpop.f32.mrb[3].mxu1 }
 0x2fd   : > { %v1165_v60 = vsel %vm856_vm2, %v1005_v56, -inf }
 0x2fe   : > { %v1158_v61 = vpop.f32.mrb[4].mxu0  ;;  %1166 = vmax.xlane.f32.xlu1 %v1165_v60  ;;  %v1081_v62 = vpop.f32.mrb[4].mxu1 }
 0x2ff   : > { %v1082_v63 = vadd.f32 %v1081_v62, %v7559_v58  ;;  %v6148_v0 = vpop.f32.mrb[5].mxu1  ;;  %v6153_v1 = vpop.f32.mrb[5].mxu0  ;;  %v1159_v2 = vadd.f32 %v1158_v61, %v7561_v59 }
 0x301   : > { %v1168_v3 = vsel %vm856_vm2, %v1082_v63, -inf  ;;  %v1171_v4 = vsel %vm856_vm2, %v1159_v2, -inf }
 0x302   : > { %1169 = vmax.xlane.f32.xlu0 %v1168_v3 }
 0x306   : > { %1172 = vmax.xlane.f32.xlu0 %v1171_v4 }
 0x30f   : > { %1206 = vrot.lane.b32.xlu1 %v7496_v14, %s7086_s14 }
 0x313   : > { %1358 = vrot.lane.b32.xlu1 %v7502_v18, %s7086_s14 }
 0x317   : > { %1434 = vrot.lane.b32.xlu1 %v7504_v19, %s7086_s14 }
 0x31c   : > { %1282 = vrot.lane.b32.xlu0 %v7500_v17, %s7086_s14  ;;  %s7096_s14 = smov 8  }
 0x387   : > { %v1164_v5 = vpop.xlane.xlu0 %1163 }
 0x388   : > { %v1174_v6 = vsub.f32 %v928_v49, %v1164_v5 }
 0x38a   : > { %v1178_v7 = vmul.f32 1.442695, %v1174_v6 }
 0x38b   : > { %v1167_v8 = vpop.xlane.xlu1 %1166 }
 0x38c   : > { %6644 = vpow2.f32 %v1178_v7  ;;  %v1175_v12 = vsub.f32 %v1005_v56, %v1167_v8 }
 0x38e   : > { %v1180_v20 = vmul.f32 1.442695, %v1175_v12 }
 0x38f   : > { %v1207_v9 = vpop.permute.xlu1 %1206  ;;  %v1170_v11 = vpop.xlane.xlu0 %1169 }
 0x390   : > { %6155 = vmatpush3.msra.mxu1 %v1207_v9  ;;  %v1176_v29 = vsub.f32 %v1082_v63, %v1170_v11 }
 0x391   : > { %6164 = vmatprep.subr.mxu1 %v7082_v10 }
 0x392   : > { %v1182_v30 = vmul.f32 1.442695, %v1176_v29 }
 0x393   : > { %v1173_v13 = vpop.xlane.xlu0 %1172  ;;  %v1359_v33 = vpop.permute.xlu1 %1358 }
 0x394   : > { %v1177_v15 = vsub.f32 %v1159_v2, %v1173_v13 }
 0x396   : > { %v6645_v16 = vpop.eup %6644  ;;  %v1184_v21 = vmul.f32 1.442695, %v1177_v15 }
 0x397   : > { %v1283_v22 = vpop.permute.xlu0 %1282  ;;  %v1186_v23 = vsel %vm856_vm2, %v6645_v16, 0.0  ;;  %v1435_v34 = vpop.permute.xlu1 %1434 }
 0x398   : > { %6646 = vpow2.f32 %v1184_v21  ;;  %1187 = vadd.xlane.f32.xlu1 %v1186_v23  ;;  %6160 = vmatpush3.msra.mxu0 %v1283_v22 }
 0x399   : > { %6169 = vmatprep.subr.mxu0 %v7082_v10  ;;  %6648 = vpow2.f32 %v1180_v20 }
 0x39a   : > { %6650 = vpow2.f32 %v1182_v30 }
 0x3a2   : > { %v6647_v24 = vpop.eup %6646 }
 0x3a3   : > { %v1195_v25 = vsel %vm856_vm2, %v6647_v24, 0.0  ;;  %v6649_v26 = vpop.eup %6648 }
 0x3a4   : > { %1196 = vadd.xlane.f32.xlu0 %v1195_v25  ;;  %v1189_v27 = vsel %vm856_vm2, %v6649_v26, 0.0  ;;  %v6651_v31 = vpop.eup %6650 }
 0x3a5   : > { %v1192_v32 = vsel %vm856_vm2, %v6651_v31, 0.0 }
 0x3a8   : > { %1190 = vadd.xlane.f32.xlu0 %v1189_v27 }
 0x3a9   : > { %1590 = vrot.lane.b32.xlu1 %v7500_v17, %s7087_s28 }
 0x3ad   : > { %1588 = vrot.lane.b32.xlu1 %v7500_v17, %s7088_s23 }
 0x3be   : > { %1512 = vrot.lane.b32.xlu0 %v7496_v14, %s7087_s28 }
 0x3c2   : > { %1510 = vrot.lane.b32.xlu0 %v7496_v14, %s7088_s23 }
 0x3c6   : > { %1668 = vrot.lane.b32.xlu0 %v7502_v18, %s7087_s28 }
 0x3ca   : > { %1666 = vrot.lane.b32.xlu0 %v7502_v18, %s7088_s23 }
 0x3d1   : > { %1193 = vadd.xlane.f32.xlu1 %v1192_v32 }
 0x3e2   : > { %1746 = vrot.lane.b32.xlu1 %v7504_v19, %s7087_s28 }
 0x3e6   : > { %1744 = vrot.lane.b32.xlu1 %v7504_v19, %s7088_s23 }
 0x425   : > { %v1188_v36 = vpop.xlane.xlu1 %1187 }
 0x426   : > { %6652 = vrcp.f32 %v1188_v36 }
 0x429   : > { %v1591_v47 = vpop.permute.xlu1 %1590 }
 0x42d   : > { %v1589_v48 = vpop.permute.xlu1 %1588 }
 0x430   : > { %v6653_v38 = vpop.eup %6652 }
 0x431   : > { %v1197_v39 = vpop.xlane.xlu0 %1196  ;;  %v1202_v40 = vmul.f32 %v6653_v38, %v6645_v16 }
 0x433   : > { %6157 = vmatmul.mubr.msk.f32.vlgmr.msra.gmra.mrb[6].mxu1 %vm856_vm2, %v1202_v40 }
 0x434   : > { %6165 = vmatpush3.msra.mxu1 %v1359_v33  ;;  %6166 = vmatprep.mubr.msk.f32.mxu1 %vm7083_vm1, %v7082_v10 }
 0x435   : > { %v1191_v41 = vpop.xlane.xlu0 %1190  ;;  %6174 = vmatprep.subr.mxu1 %v7082_v10 }
 0x436   : > { %6654 = vrcp.f32 %v1191_v41 }
 0x437   : > { %6656 = vrcp.f32 %v1197_v39 }
 0x439   : > { %v1513_v50 = vpop.permute.xlu0 %1512 }
 0x43d   : > { %v1511_v54 = vpop.permute.xlu0 %1510 }
 0x440   : > { %v6655_v42 = vpop.eup %6654 }
 0x441   : > { %v1203_v43 = vmul.f32 %v6655_v42, %v6649_v26  ;;  %v6657_v45 = vpop.eup %6656  ;;  %v1669_v57 = vpop.permute.xlu0 %1668 }
 0x442   : > { %v1205_v46 = vmul.f32 %v6657_v45, %v6647_v24 }
 0x443   : > { %6162 = vmatmul.mubr.msk.f32.vlgmr.msra.gmra.mrb[6].mxu0 %vm856_vm2, %v1203_v43 }
 0x444   : > { %6170 = vmatpush3.msra.mxu0 %v1435_v34  ;;  %6171 = vmatprep.mubr.msk.f32.mxu0 %vm7083_vm1, %v7082_v10 }
 0x445   : > { %6179 = vmatprep.subr.mxu0 %v7082_v10  ;;  %v1667_v60 = vpop.permute.xlu0 %1666 }
 0x447   : > { %6172 = vmatmul.mubr.msk.f32.vlgmr.msra.gmra.mrb[8].mxu0 %vm856_vm2, %v1205_v46 }
 0x448   : > { %6181 = vmatprep.mubr.msk.f32.mxu0 %vm7083_vm1, %v7082_v10 }
 0x44b   : > { %6180 = vmatpush3.xpose.msk.msra.mxu0 %vm856_vm2, %v1591_v47 }
 0x44c   : > { %6189 = vmatprep.subr.mxu0 %v7082_v10 }
 0x44e   : > { %6182 = vmatmul.mubr.msk.f32.vlgmr.msra.gmra.mrb[10].mxu0 %vm856_vm2, %v1589_v48 }
 0x44f   : > { %6191 = vmatprep.mubr.msk.f32.mxu0 %vm7083_vm1, %v7082_v10 }
 0x45e   : > { %v1194_v49 = vpop.xlane.xlu1 %1193 }
 0x45f   : > { %6658 = vrcp.f32 %v1194_v49 }
 0x462   : > { %v1747_v52 = vpop.permute.xlu1 %1746 }
 0x463   : > { %6190 = vmatpush3.xpose.msk.msra.mxu0 %vm856_vm2, %v1747_v52 }
 0x464   : > { %6199 = vmatprep.subr.mxu0 %v7082_v10 }
 0x466   : > { %v1745_v53 = vpop.permute.xlu1 %1744 }
 0x467   : > { %6192 = vmatmul.mubr.msk.f32.vlgmr.msra.gmra.mrb[12].mxu0 %vm856_vm2, %v1745_v53 }
 0x468   : > { %6201 = vmatprep.mubr.msk.f32.mxu0 %vm7083_vm1, %v7082_v10 }
 0x469   : > { %v6659_v55 = vpop.eup %6658 }
 0x46a   : > { %v1204_v56 = vmul.f32 %v6659_v55, %v6651_v31 }
 0x46c   : > { %6167 = vmatmul.mubr.msk.f32.vlgmr.msra.gmra.mrb[8].mxu1 %vm856_vm2, %v1204_v56 }
 0x46d   : > { %6175 = vmatpush3.xpose.msk.msra.mxu1 %vm856_vm2, %v1513_v50  ;;  %6176 = vmatprep.mubr.msk.f32.mxu1 %vm7083_vm1, %v7082_v10 }
 0x46e   : > { %6184 = vmatprep.subr.mxu1 %v7082_v10 }
 0x470   : > { %6177 = vmatmul.mubr.msk.f32.vlgmr.msra.gmra.mrb[10].mxu1 %vm856_vm2, %v1511_v54 }
 0x471   : > { %6185 = vmatpush3.xpose.msk.msra.mxu1 %vm856_vm2, %v1669_v57  ;;  %6186 = vmatprep.mubr.msk.f32.mxu1 %vm7083_vm1, %v7082_v10 }
 0x472   : > { %6194 = vmatprep.subr.mxu1 %v7082_v10 }
 0x474   : > { %6187 = vmatmul.mubr.msk.f32.vlgmr.msra.gmra.mrb[12].mxu1 %vm856_vm2, %v1667_v60 }
 0x475   : > { %6196 = vmatprep.mubr.msk.f32.mxu1 %vm7083_vm1, %v7082_v10 }
 0x506   : > { %v7628_v61 = vpop.f32.mrb[6].mxu1 }
 0x507   : > { %v6158_v62 = vpop.f32.mrb[7].mxu1 }
 0x516   : > { %v7630_v63 = vpop.f32.mrb[6].mxu0 }
 0x517   : > { %v6163_v0 = vpop.f32.mrb[7].mxu0 }
 0x51a   : > { %v7632_v1 = vpop.f32.mrb[8].mxu0 }
 0x51b   : > { %v6173_v2 = vpop.f32.mrb[9].mxu0 }
 0x521   : > { %v1662_v3 = vpop.f32.mrb[10].mxu0 }
 0x522   : > { %v1663_v4 = vadd.f32 %v1662_v3, %v7553_v51  ;;  %v6183_v5 = vpop.f32.mrb[11].mxu0 }
 0x524   : > { %v1825_v6 = vsel %vm856_vm2, %v1663_v4, -inf }
 0x525   : > { %1826 = vmax.xlane.f32.xlu1 %v1825_v6 }
 0x536   : > { %1866 = vrot.lane.b32.xlu1 %v7496_v14, %s7089_s16 }
 0x53a   : > { %2018 = vrot.lane.b32.xlu1 %v7502_v18, %s7089_s16  ;;  %v1818_v7 = vpop.f32.mrb[12].mxu0 }
 0x53b   : > { %v6193_v8 = vpop.f32.mrb[13].mxu0  ;;  %v1819_v23 = vadd.f32 %v1818_v7, %v7561_v59 }
 0x53d   : > { %v1831_v25 = vsel %vm856_vm2, %v1819_v23, -inf }
 0x53e   : > { %2094 = vrot.lane.b32.xlu1 %v7504_v19, %s7089_s16 }
 0x53f   : > { %v7639_v9 = vpop.f32.mrb[8].mxu1 }
 0x540   : > { %v6168_v11 = vpop.f32.mrb[9].mxu1 }
 0x542   : > { %2250 = vrot.lane.b32.xlu1 %v7500_v17, %s7090_s20 }
 0x543   : > { %v1584_v12 = vpop.f32.mrb[10].mxu1 }
 0x544   : > { %v1585_v13 = vadd.f32 %v1584_v12, %v7549_v44  ;;  %v6178_v15 = vpop.f32.mrb[11].mxu1 }
 0x546   : > { %v1822_v16 = vsel %vm856_vm2, %v1585_v13, -inf }
 0x547   : > { %1823 = vmax.xlane.f32.xlu0 %v1822_v16  ;;  %v1740_v20 = vpop.f32.mrb[12].mxu1 }
 0x548   : > { %v1741_v21 = vadd.f32 %v1740_v20, %v7559_v58  ;;  %v6188_v22 = vpop.f32.mrb[13].mxu1 }
 0x54a   : > { %v1828_v24 = vsel %vm856_vm2, %v1741_v21, -inf }
 0x54b   : > { %1829 = vmax.xlane.f32.xlu0 %v1828_v24 }
 0x54f   : > { %1832 = vmax.xlane.f32.xlu0 %v1831_v25 }
 0x565   : > { %1942 = vrot.lane.b32.xlu0 %v7500_v17, %s7089_s16  ;;  %s7097_s16 = smov 16  }
 0x569   : > { %2172 = vrot.lane.b32.xlu0 %v7496_v14, %s7090_s20 }
 0x5b2   : > { %v1827_v26 = vpop.xlane.xlu1 %1826 }
 0x5b3   : > { %v1835_v27 = vsub.f32 %v1663_v4, %v1827_v26 }
 0x5b5   : > { %v1840_v29 = vmul.f32 1.442695, %v1835_v27 }
 0x5b6   : > { %v1867_v30 = vpop.permute.xlu1 %1866 }
 0x5b7   : > { %6660 = vpow2.f32 %v1840_v29  ;;  %6195 = vmatpush3.msra.mxu1 %v1867_v30 }
 0x5b8   : > { %6204 = vmatprep.subr.mxu1 %v7082_v10 }
 0x5ba   : > { %v2019_v55 = vpop.permute.xlu1 %2018 }
 0x5be   : > { %v2095_v60 = vpop.permute.xlu1 %2094 }
 0x5c1   : > { %v6661_v31 = vpop.eup %6660 }
 0x5c2   : > { %v1849_v32 = vsel %vm856_vm2, %v6661_v31, 0.0  ;;  %v2251_v62 = vpop.permute.xlu1 %2250 }
 0x5c3   : > { %1850 = vadd.xlane.f32.xlu0 %v1849_v32 }
 0x5d4   : > { %v1824_v33 = vpop.xlane.xlu0 %1823 }
 0x5d5   : > { %v1834_v34 = vsub.f32 %v1585_v13, %v1824_v33 }
 0x5d7   : > { %v1838_v36 = vmul.f32 1.442695, %v1834_v34 }
 0x5d8   : > { %v1830_v38 = vpop.xlane.xlu0 %1829 }
 0x5d9   : > { %6662 = vpow2.f32 %v1838_v36  ;;  %v1836_v39 = vsub.f32 %v1741_v21, %v1830_v38 }
 0x5db   : > { %v1842_v40 = vmul.f32 1.442695, %v1836_v39 }
 0x5dc   : > { %v1833_v41 = vpop.xlane.xlu0 %1832 }
 0x5dd   : > { %6664 = vpow2.f32 %v1842_v40  ;;  %v1837_v42 = vsub.f32 %v1819_v23, %v1833_v41 }
 0x5df   : > { %v1844_v43 = vmul.f32 1.442695, %v1837_v42 }
 0x5e0   : > { %v1943_v45 = vpop.permute.xlu0 %1942 }
 0x5e1   : > { %6666 = vpow2.f32 %v1844_v43  ;;  %6200 = vmatpush3.msra.mxu0 %v1943_v45 }
 0x5e2   : > { %6209 = vmatprep.subr.mxu0 %v7082_v10 }
 0x5e3   : > { %v6663_v46 = vpop.eup %6662 }
 0x5e4   : > { %v1846_v47 = vsel %vm856_vm2, %v6663_v46, 0.0  ;;  %v2173_v53 = vpop.permute.xlu0 %2172 }
 0x5e5   : > { %1847 = vadd.xlane.f32.xlu1 %v1846_v47 }
 0x5e7   : > { %v6665_v48 = vpop.eup %6664 }
 0x5e8   : > { %v1852_v49 = vsel %vm856_vm2, %v6665_v48, 0.0 }
 0x5e9   : > { %1853 = vadd.xlane.f32.xlu1 %v1852_v49 }
 0x5eb   : > { %v6667_v50 = vpop.eup %6666 }
 0x5ec   : > { %v1855_v52 = vsel %vm856_vm2, %v6667_v50, 0.0 }
 0x5ed   : > { %1856 = vadd.xlane.f32.xlu0 %v1855_v52 }
 0x5fa   : > { %2248 = vrot.lane.b32.xlu1 %v7500_v17, %s7091_s12 }
 0x5fe   : > { %2406 = vrot.lane.b32.xlu1 %v7504_v19, %s7090_s20 }
 0x602   : > { %2404 = vrot.lane.b32.xlu1 %v7504_v19, %s7091_s12 }
 0x603   : > { %2170 = vrot.lane.b32.xlu0 %v7496_v14, %s7091_s12 }
 0x606   : > { %2526 = vrot.lane.b32.xlu1 %v7496_v14, %s7092_s15 }
 0x607   : > { %2328 = vrot.lane.b32.xlu0 %v7502_v18, %s7090_s20 }
 0x60a   : > { %2678 = vrot.lane.b32.xlu1 %v7502_v18, %s7092_s15 }
 0x60b   : > { %2326 = vrot.lane.b32.xlu0 %v7502_v18, %s7091_s12 }
 0x60e   : > { %2754 = vrot.lane.b32.xlu1 %v7504_v19, %s7092_s15 }
 0x60f   : > { %2602 = vrot.lane.b32.xlu0 %v7500_v17, %s7092_s15  ;;  %s8418_s15 = smov 24  }
 0x650   : > { %v1851_v54 = vpop.xlane.xlu0 %1850 }
 0x651   : > { %6668 = vrcp.f32 %v1851_v54 }
 0x65b   : > { %v6669_v56 = vpop.eup %6668 }
 0x65c   : > { %v1863_v57 = vmul.f32 %v6669_v56, %v6661_v31 }
 0x65e   : > { %6202 = vmatmul.mubr.msk.f32.vlgmr.msra.gmra.mrb[14].mxu0 %vm856_vm2, %v1863_v57 }
 0x65f   : > { %6210 = vmatpush3.msra.mxu0 %v2095_v60  ;;  %6211 = vmatprep.mubr.msk.f32.mxu0 %vm7083_vm1, %v7082_v10 }
 0x660   : > { %6219 = vmatprep.subr.mxu0 %v7082_v10 }
 0x672   : > { %v1848_v0 = vpop.xlane.xlu1 %1847 }
 0x673   : > { %6670 = vrcp.f32 %v1848_v0 }
 0x676   : > { %v1854_v2 = vpop.xlane.xlu1 %1853 }
 0x677   : > { %6672 = vrcp.f32 %v1854_v2 }
 0x67a   : > { %v1857_v3 = vpop.xlane.xlu0 %1856  ;;  %v2249_v5 = vpop.permute.xlu1 %2248 }
 0x67b   : > { %6674 = vrcp.f32 %v1857_v3 }
 0x67d   : > { %v6671_v4 = vpop.eup %6670 }
 0x67e   : > { %v2171_v6 = vpop.permute.xlu0 %2170  ;;  %v1862_v7 = vmul.f32 %v6671_v4, %v6663_v46  ;;  %v2407_v12 = vpop.permute.xlu1 %2406 }
 0x680   : > { %6197 = vmatmul.mubr.msk.f32.vlgmr.msra.gmra.mrb[14].mxu1 %vm856_vm2, %v1862_v7 }
 0x681   : > { %v6673_v8 = vpop.eup %6672  ;;  %6205 = vmatpush3.msra.mxu1 %v2019_v55  ;;  %6206 = vmatprep.mubr.msk.f32.mxu1 %vm7083_vm1, %v7082_v10 }
 0x682   : > { %v1864_v11 = vmul.f32 %v6673_v8, %v6665_v48  ;;  %6214 = vmatprep.subr.mxu1 %v7082_v10  ;;  %v2329_v13 = vpop.permute.xlu0 %2328  ;;  %v2405_v20 = vpop.permute.xlu1 %2404 }
 0x684   : > { %6207 = vmatmul.mubr.msk.f32.vlgmr.msra.gmra.mrb[16].mxu1 %vm856_vm2, %v1864_v11 }
 0x685   : > { %v6675_v15 = vpop.eup %6674  ;;  %6216 = vmatprep.mubr.msk.f32.mxu1 %vm7083_vm1, %v7082_v10 }
 0x686   : > { %v1865_v16 = vmul.f32 %v6675_v15, %v6667_v50  ;;  %v2327_v21 = vpop.permute.xlu0 %2326  ;;  %v2527_v22 = vpop.permute.xlu1 %2526 }
 0x688   : > { %6215 = vmatpush3.xpose.msk.msra.mxu1 %vm856_vm2, %v2173_v53  ;;  %6212 = vmatmul.mubr.msk.f32.vlgmr.msra.gmra.mrb[16].mxu0 %vm856_vm2, %v1865_v16 }
 0x689   : > { %6220 = vmatpush3.xpose.msk.msra.mxu0 %vm856_vm2, %v2251_v62  ;;  %6224 = vmatprep.subr.mxu1 %v7082_v10 }
 0x68a   : > { %6221 = vmatprep.mubr.msk.f32.mxu0 %vm7083_vm1, %v7082_v10  ;;  %6229 = vmatprep.subr.mxu0 %v7082_v10  ;;  %v2603_v23 = vpop.permute.xlu0 %2602  ;;  %v2679_v53 = vpop.permute.xlu1 %2678 }
 0x68b   : > { %6217 = vmatmul.mubr.msk.f32.vlgmr.msra.gmra.mrb[18].mxu1 %vm856_vm2, %v2171_v6 }
 0x68c   : > { %6225 = vmatpush3.xpose.msk.msra.mxu1 %vm856_vm2, %v2329_v13  ;;  %6222 = vmatmul.mubr.msk.f32.vlgmr.msra.gmra.mrb[18].mxu0 %vm856_vm2, %v2249_v5 }
 0x68d   : > { %6230 = vmatpush3.xpose.msk.msra.mxu0 %vm856_vm2, %v2407_v12  ;;  %6226 = vmatprep.mubr.msk.f32.mxu1 %vm7083_vm1, %v7082_v10 }
 0x68e   : > { %6234 = vmatprep.subr.mxu1 %v7082_v10  ;;  %6231 = vmatprep.mubr.msk.f32.mxu0 %vm7083_vm1, %v7082_v10  ;;  %v2755_v54 = vpop.permute.xlu1 %2754 }
 0x68f   : > { %6227 = vmatmul.mubr.msk.f32.vlgmr.msra.gmra.mrb[20].mxu1 %vm856_vm2, %v2327_v21  ;;  %6239 = vmatprep.subr.mxu0 %v7082_v10 }
 0x690   : > { %6235 = vmatpush3.msra.mxu1 %v2527_v22  ;;  %6232 = vmatmul.mubr.msk.f32.vlgmr.msra.gmra.mrb[20].mxu0 %vm856_vm2, %v2405_v20 }
 0x691   : > { %6240 = vmatpush3.msra.mxu0 %v2603_v23  ;;  %6236 = vmatprep.mubr.msk.f32.mxu1 %vm7083_vm1, %v7082_v10 }
 0x692   : > { %6244 = vmatprep.subr.mxu1 %v7082_v10  ;;  %6241 = vmatprep.mubr.msk.f32.mxu0 %vm7083_vm1, %v7082_v10 }
 0x693   : > { %6249 = vmatprep.subr.mxu0 %v7082_v10 }
 0x731   : > { %v7710_v24 = vpop.f32.mrb[14].mxu0 }
 0x732   : > { %v6203_v25 = vpop.f32.mrb[15].mxu0 }
 0x753   : > { %v7712_v26 = vpop.f32.mrb[14].mxu1 }
 0x754   : > { %v6198_v27 = vpop.f32.mrb[15].mxu1 }
 0x757   : > { %v7714_v29 = vpop.f32.mrb[16].mxu1 }
 0x758   : > { %v6208_v30 = vpop.f32.mrb[17].mxu1 }
 0x75b   : > { %v7716_v31 = vpop.f32.mrb[16].mxu0 }
 0x75c   : > { %v6213_v32 = vpop.f32.mrb[17].mxu0 }
 0x75e   : > { %v2244_v33 = vpop.f32.mrb[18].mxu1 }
 0x75f   : > { %v2245_v34 = vadd.f32 %v2244_v33, %v7549_v44  ;;  %v6218_v36 = vpop.f32.mrb[19].mxu1  ;;  %v2322_v38 = vpop.f32.mrb[18].mxu0 }
 0x760   : > { %v2323_v39 = vadd.f32 %v2322_v38, %v7553_v51  ;;  %v6223_v40 = vpop.f32.mrb[19].mxu0 }
 0x761   : > { %v2482_v41 = vsel %vm856_vm2, %v2245_v34, -inf }
 0x762   : > { %2483 = vmax.xlane.f32.xlu0 %v2482_v41  ;;  %v2400_v42 = vpop.f32.mrb[20].mxu1  ;;  %v2485_v43 = vsel %vm856_vm2, %v2323_v39, -inf }
 0x763   : > { %v2401_v45 = vadd.f32 %v2400_v42, %v7559_v58  ;;  %v6228_v46 = vpop.f32.mrb[21].mxu1  ;;  %2486 = vmax.xlane.f32.xlu1 %v2485_v43  ;;  %v2478_v47 = vpop.f32.mrb[20].mxu0 }
 0x764   : > { %v6233_v48 = vpop.f32.mrb[21].mxu0  ;;  %v2479_v49 = vadd.f32 %v2478_v47, %v7561_v59 }
 0x765   : > { %v2488_v50 = vsel %vm856_vm2, %v2401_v45, -inf }
 0x766   : > { %2489 = vmax.xlane.f32.xlu0 %v2488_v50  ;;  %v2491_v52 = vsel %vm856_vm2, %v2479_v49, -inf }
 0x76a   : > { %2492 = vmax.xlane.f32.xlu0 %v2491_v52 }
 0x774   : > { %2910 = vrot.lane.b32.xlu1 %v7500_v17, %s7093_s29 }
 0x780   : > { %2832 = vrot.lane.b32.xlu0 %v7496_v14, %s7093_s29 }
 0x7ef   : > { %v2484_v55 = vpop.xlane.xlu0 %2483 }
 0x7f0   : > { %v2494_v56 = vsub.f32 %v2245_v34, %v2484_v55  ;;  %v2487_v57 = vpop.xlane.xlu1 %2486 }
 0x7f1   : > { %v2495_v60 = vsub.f32 %v2323_v39, %v2487_v57 }
 0x7f2   : > { %v2498_v62 = vmul.f32 1.442695, %v2494_v56 }
 0x7f3   : > { %v2500_v0 = vmul.f32 1.442695, %v2495_v60  ;;  %v2490_v6 = vpop.xlane.xlu0 %2489 }
 0x7f4   : > { %6676 = vpow2.f32 %v2498_v62  ;;  %v2496_v8 = vsub.f32 %v2401_v45, %v2490_v6  ;;  %v2911_v22 = vpop.permute.xlu1 %2910 }
 0x7f5   : > { %6678 = vpow2.f32 %v2500_v0 }
 0x7f6   : > { %v2502_v12 = vmul.f32 1.442695, %v2496_v8 }
 0x7f7   : > { %v2493_v7 = vpop.xlane.xlu0 %2492 }
 0x7f8   : > { %v2497_v11 = vsub.f32 %v2479_v49, %v2493_v7  ;;  %6680 = vpow2.f32 %v2502_v12 }
 0x7fa   : > { %v2504_v13 = vmul.f32 1.442695, %v2497_v11 }
 0x7fb   : > { %v2833_v23 = vpop.permute.xlu0 %2832 }
 0x7fc   : > { %6682 = vpow2.f32 %v2504_v13 }
 0x7fe   : > { %v6677_v2 = vpop.eup %6676 }
 0x7ff   : > { %v6679_v3 = vpop.eup %6678  ;;  %v2506_v4 = vsel %vm856_vm2, %v6677_v2, 0.0 }
 0x800   : > { %2507 = vadd.xlane.f32.xlu1 %v2506_v4  ;;  %v2509_v5 = vsel %vm856_vm2, %v6679_v3, 0.0 }
 0x801   : > { %2510 = vadd.xlane.f32.xlu0 %v2509_v5 }
 0x802   : > { %v6681_v15 = vpop.eup %6680 }
 0x803   : > { %v2512_v20 = vsel %vm856_vm2, %v6681_v15, 0.0 }
 0x806   : > { %v6683_v16 = vpop.eup %6682 }
 0x807   : > { %v2515_v21 = vsel %vm856_vm2, %v6683_v16, 0.0 }
 0x811   : > { %2908 = vrot.lane.b32.xlu1 %v7500_v17, %s7094_s7 }
 0x817   : > { %2830 = vrot.lane.b32.xlu0 %v7496_v14, %s7094_s7 }
 0x835   : > { %2513 = vadd.xlane.f32.xlu1 %v2512_v20 }
 0x836   : > { %2516 = vadd.xlane.f32.xlu0 %v2515_v21 }
 0x846   : > { %3066 = vrot.lane.b32.xlu1 %v7504_v19, %s7093_s29 }
 0x84a   : > { %3064 = vrot.lane.b32.xlu1 %v7504_v19, %s7094_s7 }
 0x84c   : > { %2988 = vrot.lane.b32.xlu0 %v7502_v18, %s7093_s29 }
 0x850   : > { %2986 = vrot.lane.b32.xlu0 %v7502_v18, %s7094_s7 }
 0x88d   : > { %v2508_v25 = vpop.xlane.xlu1 %2507 }
 0x88e   : > { %6684 = vrcp.f32 %v2508_v25  ;;  %v2511_v27 = vpop.xlane.xlu0 %2510 }
 0x88f   : > { %6686 = vrcp.f32 %v2511_v27 }
 0x891   : > { %v2909_v36 = vpop.permute.xlu1 %2908 }
 0x892   : > { %v2831_v38 = vpop.permute.xlu0 %2830 }
 0x898   : > { %v6685_v30 = vpop.eup %6684 }
 0x899   : > { %v6687_v32 = vpop.eup %6686  ;;  %v2522_v33 = vmul.f32 %v6685_v30, %v6677_v2 }
 0x89a   : > { %v2523_v34 = vmul.f32 %v6687_v32, %v6679_v3 }
 0x89b   : > { %6237 = vmatmul.mubr.msk.f32.vlgmr.msra.gmra.mrb[22].mxu1 %vm856_vm2, %v2522_v33 }
 0x89c   : > { %6245 = vmatpush3.msra.mxu1 %v2679_v53  ;;  %6242 = vmatmul.mubr.msk.f32.vlgmr.msra.gmra.mrb[22].mxu0 %vm856_vm2, %v2523_v34 }
 0x89d   : > { %6250 = vmatpush3.msra.mxu0 %v2755_v54  ;;  %6246 = vmatprep.mubr.msk.f32.mxu1 %vm7083_vm1, %v7082_v10 }
 0x89e   : > { %6254 = vmatprep.subr.mxu1 %v7082_v10  ;;  %6251 = vmatprep.mubr.msk.f32.mxu0 %vm7083_vm1, %v7082_v10 }
 0x89f   : > { %6259 = vmatprep.subr.mxu0 %v7082_v10 }
 0x8c2   : > { %v2514_v39 = vpop.xlane.xlu1 %2513 }
 0x8c3   : > { %6688 = vrcp.f32 %v2514_v39  ;;  %v2517_v40 = vpop.xlane.xlu0 %2516 }
 0x8c4   : > { %6690 = vrcp.f32 %v2517_v40 }
 0x8c6   : > { %v3067_v47 = vpop.permute.xlu1 %3066 }
 0x8c7   : > { %v2989_v46 = vpop.permute.xlu0 %2988 }
 0x8ca   : > { %v3065_v49 = vpop.permute.xlu1 %3064 }
 0x8cb   : > { %v2987_v48 = vpop.permute.xlu0 %2986 }
 0x8cd   : > { %v6689_v41 = vpop.eup %6688 }
 0x8ce   : > { %v6691_v42 = vpop.eup %6690  ;;  %v2524_v43 = vmul.f32 %v6689_v41, %v6681_v15 }
 0x8cf   : > { %v2525_v45 = vmul.f32 %v6691_v42, %v6683_v16 }
 0x8d0   : > { %6247 = vmatmul.mubr.msk.f32.vlgmr.msra.gmra.mrb[24].mxu1 %vm856_vm2, %v2524_v43 }
 0x8d1   : > { %6255 = vmatpush3.xpose.msk.msra.mxu1 %vm856_vm2, %v2833_v23  ;;  %6252 = vmatmul.mubr.msk.f32.vlgmr.msra.gmra.mrb[24].mxu0 %vm856_vm2, %v2525_v45 }
 0x8d2   : > { %6260 = vmatpush3.xpose.msk.msra.mxu0 %vm856_vm2, %v2911_v22  ;;  %6256 = vmatprep.mubr.msk.f32.mxu1 %vm7083_vm1, %v7082_v10 }
 0x8d3   : > { %6264 = vmatprep.subr.mxu1 %v7082_v10  ;;  %6261 = vmatprep.mubr.msk.f32.mxu0 %vm7083_vm1, %v7082_v10 }
 0x8d4   : > { %6257 = vmatmul.mubr.msk.f32.vlgmr.msra.gmra.mrb[26].mxu1 %vm856_vm2, %v2831_v38  ;;  %6269 = vmatprep.subr.mxu0 %v7082_v10 }
 0x8d5   : > { %6265 = vmatpush3.xpose.msk.msra.mxu1 %vm856_vm2, %v2989_v46  ;;  %6262 = vmatmul.mubr.msk.f32.vlgmr.msra.gmra.mrb[26].mxu0 %vm856_vm2, %v2909_v36 }
 0x8d6   : > { %6270 = vmatpush3.xpose.msk.msra.mxu0 %vm856_vm2, %v3067_v47  ;;  %6266 = vmatprep.mubr.msk.f32.mxu1 %vm7083_vm1, %v7082_v10 }
 0x8d7   : > { %6271 = vmatprep.mubr.msk.f32.mxu0 %vm7083_vm1, %v7082_v10  ;;  %6274 = vmatprep.subr.mxu1 %v7082_v10 }
 0x8d8   : > { %6267 = vmatmul.mubr.msk.f32.vlgmr.msra.gmra.mrb[28].mxu1 %vm856_vm2, %v2987_v48  ;;  %6279 = vmatprep.subr.mxu0 %v7082_v10 }
 0x8d9   : > { %6272 = vmatmul.mubr.msk.f32.vlgmr.msra.gmra.mrb[28].mxu0 %vm856_vm2, %v3065_v49  ;;  %6276 = vmatprep.mubr.msk.f32.mxu1 %vm7083_vm1, %v7082_v10 }
 0x8da   : > { %6281 = vmatprep.mubr.msk.f32.mxu0 %vm7083_vm1, %v7082_v10 }
 0x96e   : > { %v7780_v50 = vpop.f32.mrb[22].mxu1 }
 0x96f   : > { %v6238_v52 = vpop.f32.mrb[23].mxu1  ;;  %v7782_v53 = vpop.f32.mrb[22].mxu0 }
 0x970   : > { %v6243_v54 = vpop.f32.mrb[23].mxu0 }
 0x9a3   : > { %v7784_v55 = vpop.f32.mrb[24].mxu1 }
 0x9a4   : > { %v6248_v56 = vpop.f32.mrb[25].mxu1  ;;  %v7786_v57 = vpop.f32.mrb[24].mxu0 }
 0x9a5   : > { %v6253_v60 = vpop.f32.mrb[25].mxu0  ;;  %v3554_v56 = vld [vmem:[#allocation5 + $0x8] sm:$0xff] }
 0x9a7   : > { %v2904_v62 = vpop.f32.mrb[26].mxu1 }
 0x9a8   : > { %v2905_v0 = vadd.f32 %v2904_v62, %v7549_v44  ;;  %v6258_v2 = vpop.f32.mrb[27].mxu1  ;;  %v2982_v3 = vpop.f32.mrb[26].mxu0  ;;  %v3556_v62 = vld [vmem:[#allocation5 + $0x18] sm:$0xff] }
 0x9a9   : > { %v2983_v4 = vadd.f32 %v2982_v3, %v7553_v51  ;;  %v6263_v5 = vpop.f32.mrb[27].mxu0 }
 0x9aa   : > { %v3142_v6 = vsel %vm856_vm2, %v2905_v0, -inf }
 0x9ab   : > { %3143 = vmax.xlane.f32.xlu0 %v3142_v6  ;;  %v3060_v7 = vpop.f32.mrb[28].mxu1  ;;  %v3145_v8 = vsel %vm856_vm2, %v2983_v4, -inf }
 0x9ac   : > { %v3061_v11 = vadd.f32 %v3060_v7, %v7559_v58  ;;  %v6268_v12 = vpop.f32.mrb[29].mxu1  ;;  %3146 = vmax.xlane.f32.xlu1 %v3145_v8  ;;  %v3138_v13 = vpop.f32.mrb[28].mxu0 }
 0x9ad   : > { %v6273_v15 = vpop.f32.mrb[29].mxu0  ;;  %v3139_v16 = vadd.f32 %v3138_v13, %v7561_v59 }
 0x9ae   : > { %v3148_v44 = vsel %vm856_vm2, %v3061_v11, -inf }
 0x9af   : > { %3149 = vmax.xlane.f32.xlu0 %v3148_v44  ;;  %v3151_v51 = vsel %vm856_vm2, %v3139_v16, -inf }
 0x9b3   : > { %3152 = vmax.xlane.f32.xlu0 %v3151_v51 }
 0x9bd   : > { %3186 = vrot.lane.b32.xlu1 %v7496_v14, %s7095_s21 }
 0xa38   : > { %v3144_v20 = vpop.xlane.xlu0 %3143 }
 0xa39   : > { %v3154_v21 = vsub.f32 %v2905_v0, %v3144_v20  ;;  %v3147_v22 = vpop.xlane.xlu1 %3146 }
 0xa3a   : > { %v3155_v58 = vsub.f32 %v2983_v4, %v3147_v22 }
 0xa3b   : > { %v3158_v23 = vmul.f32 1.442695, %v3154_v21 }
 0xa3c   : > { %v3160_v25 = vmul.f32 1.442695, %v3155_v58  ;;  %v3150_v27 = vpop.xlane.xlu0 %3149 }
 0xa3d   : > { %6692 = vpow2.f32 %v3158_v23  ;;  %v3156_v30 = vsub.f32 %v3061_v11, %v3150_v27  ;;  %v3187_v59 = vpop.permute.xlu1 %3186 }
 0xa3e   : > { %6694 = vpow2.f32 %v3160_v25  ;;  %6275 = vmatpush3.msra.mxu1 %v3187_v59 }
 0xa3f   : > { %v3162_v32 = vmul.f32 1.442695, %v3156_v30  ;;  %6284 = vmatprep.subr.mxu1 %v7082_v10 }
 0xa40   : > { %v3153_v33 = vpop.xlane.xlu0 %3152 }
 0xa41   : > { %6696 = vpow2.f32 %v3162_v32  ;;  %v3157_v34 = vsub.f32 %v3139_v16, %v3153_v33 }
 0xa43   : > { %v3164_v36 = vmul.f32 1.442695, %v3157_v34 }
 0xa45   : > { %6698 = vpow2.f32 %v3164_v36 }
 0xa47   : > { %v6693_v14 = vpop.eup %6692 }
 0xa48   : > { %v6695_v38 = vpop.eup %6694  ;;  %v3166_v39 = vsel %vm856_vm2, %v6693_v14, 0.0 }
 0xa49   : > { %3167 = vadd.xlane.f32.xlu1 %v3166_v39  ;;  %v3169_v40 = vsel %vm856_vm2, %v6695_v38, 0.0 }
 0xa4a   : > { %3170 = vadd.xlane.f32.xlu0 %v3169_v40 }
 0xa4b   : > { %v6697_v41 = vpop.eup %6696 }
 0xa4c   : > { %v3172_v42 = vsel %vm856_vm2, %v6697_v41, 0.0 }
 0xa4d   : > { %3173 = vadd.xlane.f32.xlu1 %v3172_v42 }
 0xa4f   : > { %v6699_v43 = vpop.eup %6698 }
 0xa50   : > { %v3175_v45 = vsel %vm856_vm2, %v6699_v43, 0.0 }
 0xa51   : > { %3176 = vadd.xlane.f32.xlu0 %v3175_v45  ;;  %v6820_v45 = vld [vmem:[%s7465_s5 + $0x8] sm:$0xff] }
 0xa5e   : > { %3338 = vrot.lane.b32.xlu1 %v7502_v18, %s7095_s21 }
 0xa62   : > { %3414 = vrot.lane.b32.xlu1 %v7504_v19, %s7095_s21 }
 0xa66   : > { %3496 = vrot.lane.b32.xlu1 %v7710_v24, %s7096_s14 }
 0xa67   : > { %3262 = vrot.lane.b32.xlu0 %v7500_v17, %s7095_s21 }
 0xa6a   : > { %3512 = vrot.lane.b32.xlu1 %v7782_v53, %s7097_s16 }
 0xa6b   : > { %3494 = vrot.lane.b32.xlu0 %v7712_v26, %s7096_s14 }
 0xa6e   : > { %3500 = vrot.lane.b32.xlu1 %v7716_v31, %s7096_s14 }
 0xa6f   : > { %3510 = vrot.lane.b32.xlu0 %v7780_v50, %s7097_s16 }
 0xa72   : > { %3516 = vrot.lane.b32.xlu1 %v7786_v57, %s7097_s16  ;;  %v3555_v57 = vld [vmem:[#allocation5 + $0x10] sm:$0xff] }
 0xa73   : > { %3498 = vrot.lane.b32.xlu0 %v7714_v29, %s7096_s14  ;;  %v6470_v0 = vpack.c.bf16 %v3556_v62, %v3555_v57 }
 0xa77   : > { %3514 = vrot.lane.b32.xlu0 %v7784_v55, %s7097_s16  ;;  %v3553_v55 = vld [vmem:[#allocation5] sm:$0xff] }
 0xa78   : > { %v6466_v60 = vpack.c.bf16 %v3554_v56, %v3553_v55 }
 0xad6   : > { %v3168_v17 = vpop.xlane.xlu1 %3167 }
 0xad7   : > { %6700 = vrcp.f32 %v3168_v17  ;;  %v3171_v18 = vpop.xlane.xlu0 %3170 }
 0xad8   : > { %6702 = vrcp.f32 %v3171_v18  ;;  %v6821_v18 = vld [vmem:[%s7465_s5] sm:$0xff] }
 0xada   : > { %v3174_v19 = vpop.xlane.xlu1 %3173 }
 0xadb   : > { %6704 = vrcp.f32 %v3174_v19 }
 0xade   : > { %v3177_v24 = vpop.xlane.xlu0 %3176  ;;  %v3339_v26 = vpop.permute.xlu1 %3338 }
 0xadf   : > { %6706 = vrcp.f32 %v3177_v24 }
 0xae1   : > { %v6701_v31 = vpop.eup %6700 }
 0xae2   : > { %v6703_v46 = vpop.eup %6702  ;;  %v3263_v47 = vpop.permute.xlu0 %3262  ;;  %v3182_v48 = vmul.f32 %v6701_v31, %v6693_v14 }
 0xae3   : > { %6280 = vmatpush3.msra.mxu0 %v3263_v47  ;;  %v3183_v49 = vmul.f32 %v6703_v46, %v6695_v38  ;;  %v3415_v50 = vpop.permute.xlu1 %3414 }
 0xae4   : > { %6277 = vmatmul.mubr.msk.f32.vlgmr.msra.gmra.mrb[30].mxu1 %vm856_vm2, %v3182_v48  ;;  %6289 = vmatprep.subr.mxu0 %v7082_v10 }
 0xae5   : > { %v6705_v29 = vpop.eup %6704  ;;  %6285 = vmatpush3.msra.mxu1 %v3339_v26  ;;  %6282 = vmatmul.mubr.msk.f32.vlgmr.msra.gmra.mrb[30].mxu0 %vm856_vm2, %v3183_v49  ;;  %v6822_v49 = vld [vmem:[%s7465_s5 + $0x10] sm:$0xff] }
 0xae6   : > { %6290 = vmatpush3.msra.mxu0 %v3415_v50  ;;  %6286 = vmatprep.mubr.msk.f32.mxu1 %vm7083_vm1, %v7082_v10  ;;  %v3184_v52 = vmul.f32 %v6705_v29, %v6697_v41  ;;  %v3495_v12 = vpop.permute.xlu0 %3494 }
 0xae7   : > { %6291 = vmatprep.mubr.msk.f32.mxu0 %vm7083_vm1, %v7082_v10  ;;  %6467 = vmatprep.subr.bf16.mxu1 %v6466_v60  ;;  %v3497_v13 = vpop.permute.xlu1 %3496  ;;  %v3538_v22 = vsel %vm856_vm2, %v7628_v61, %v3495_v12 }
 0xae8   : > { %6287 = vmatmul.mubr.msk.f32.vlgmr.msra.gmra.mrb[32].mxu1 %vm856_vm2, %v3184_v52  ;;  %v3539_v58 = vsel %vm856_vm2, %v7630_v63, %v3497_v13  ;;  %v6823_v52 = vld [vmem:[%s7465_s5 + $0x18] sm:$0xff]  ;;  %s8454_s5 = sld [smem:[#allocation27_spill]] }
 0xae9   : > { %v6707_v53 = vpop.eup %6706  ;;  %6469 = vmatpush3.bf16.msra.mxu1 %v6466_v60 }
 0xaea   : > { %v3185_v54 = vmul.f32 %v6707_v53, %v6699_v43  ;;  %6471 = vmatprep.subr.bf16.mxu1 %v6470_v0  ;;  %v3511_v15 = vpop.permute.xlu0 %3510 }
 0xaeb   : > { %v3513_v16 = vpop.permute.xlu1 %3512  ;;  %v3543_v23 = vsel %vm3542_vm4, %v3538_v22, %v3511_v15  ;;  %v3978_v22 = vld [vmem:[#allocation8 + $0x8] sm:$0xff] }
 0xaec   : > { %6292 = vmatmul.mubr.msk.f32.vlgmr.msra.gmra.mrb[32].mxu0 %vm856_vm2, %v3185_v54  ;;  %v3544_v27 = vsel %vm3542_vm4, %v3539_v58, %v3513_v16  ;;  %v3979_v58 = vld [vmem:[#allocation8 + $0x10] sm:$0xff] }
 0xaed   : > { %6341 = vmatprep.mubr.msk.f32.mxu0 %vm7083_vm1, %v7082_v10  ;;  %6473 = vmatpush3.bf16.msra.mxu1 %v6470_v0 }
 0xaee   : > { %v3499_v44 = vpop.permute.xlu0 %3498 }
 0xaef   : > { %v3501_v51 = vpop.permute.xlu1 %3500  ;;  %v3540_v33 = vsel %vm856_vm2, %v7639_v9, %v3499_v44  ;;  %v7865_v9 = vld [vmem:[%s8400_s6] sm:$0x7] }
 0xaf0   : > { %v3541_v36 = vsel %vm856_vm2, %v7632_v1, %v3501_v51  ;;  %v3560_v40 = vrot.slane %v7865_v9, %v7543_v37 }
 0xaf2   : > { %v3515_v20 = vpop.permute.xlu0 %3514 }
 0xaf3   : > { %v3517_v21 = vpop.permute.xlu1 %3516  ;;  %v3545_v61 = vsel %vm3542_vm4, %v3540_v33, %v3515_v20  ;;  %v7099_v20 = vmov 0.0|0.0  }
 0xaf4   : > { %v3546_v14 = vsel %vm3542_vm4, %v3541_v36, %v3517_v21  ;;  %6474 = vmatprep.subr.bf16.mxu1 %v7099_v20  ;;  %6488 = vmatprep.subr.bf16.mxu0 %v7099_v20  ;;  %v3977_v21 = vld [vmem:[#allocation8] sm:$0xff] }
 0xbb7   : > { %v3258_v2 = vpop.f32.mrb[30].mxu1 }
 0xbb8   : > { %v6278_v3 = vpop.f32.mrb[31].mxu1  ;;  %3526 = vrot.lane.b32.xlu0 %v3258_v2, %s8418_s15  ;;  %v3334_v4 = vpop.f32.mrb[30].mxu0 }
 0xbb9   : > { %3528 = vrot.lane.b32.xlu1 %v3334_v4, %s8418_s15  ;;  %v6283_v5 = vpop.f32.mrb[31].mxu0 }
 0xbbb   : > { %v3410_v6 = vpop.f32.mrb[32].mxu1 }
 0xbbc   : > { %v6288_v7 = vpop.f32.mrb[33].mxu1  ;;  %3530 = vrot.lane.b32.xlu0 %v3410_v6, %s8418_s15 }
 0xbbf   : > { %v3486_v8 = vpop.f32.mrb[32].mxu0 }
 0xbc0   : > { %3532 = vrot.lane.b32.xlu1 %v3486_v8, %s8418_s15  ;;  %v6293_v11 = vpop.f32.mrb[33].mxu0  ;;  %s8450_s15 = sld [smem:[#allocation24_spill]] }
 0xc2a   : > { %v3527_v25 = vpop.permute.xlu0 %3526 }
 0xc2b   : > { %v3548_v30 = vsel %vm3547_vm5, %v3543_v23, %v3527_v25  ;;  %v3529_v59 = vpop.permute.xlu1 %3528  ;;  %v6489_v23 = vpack.c.bf16 %v3978_v22, %v3977_v21  ;;  %v3980_v25 = vld [vmem:[#allocation8 + $0x18] sm:$0xff] }
 0xc2c   : > { %v3549_v32 = vsel %vm3547_vm5, %v3544_v27, %v3529_v59  ;;  %6302 = vmatprep.mubr.msk.f32.mxu1 %vm687_vm0, %v3548_v30  ;;  %v6492_v27 = vpack.c.bf16 %v3980_v25, %v3979_v58  ;;  %v3869_v58 = vld [vmem:[#allocation7] sm:$0xff] }
 0xc2d   : > { %6303 = vmatmul.mubr.msk.f32.vlgmr.msra.gmra.mrb[34].mxu1 %vm687_vm0, %v3549_v32  ;;  %6490 = vmatpush3.bf16.msra.mxu0 %v6489_v23  ;;  %v3870_v23 = vld [vmem:[#allocation7 + $0x8] sm:$0xff] }
 0xc2e   : > { %v3531_v63 = vpop.permute.xlu0 %3530  ;;  %6491 = vmatprep.subr.bf16.mxu0 %v7099_v20 }
 0xc2f   : > { %v3550_v34 = vsel %vm3547_vm5, %v3545_v61, %v3531_v63 }
 0xc30   : > { %6305 = vmatprep.mubr.msk.f32.mxu1 %vm687_vm0, %v3550_v34 }
 0xc31   : > { %6493 = vmatpush3.bf16.msra.mxu0 %v6492_v27 }
 0xc32   : > { %v3533_v38 = vpop.permute.xlu1 %3532 }
 0xc33   : > { %v3551_v39 = vsel %vm3547_vm5, %v3546_v14, %v3533_v38 }
 0xc34   : > { %6306 = vmatmul.mubr.msk.f32.gmra.mrb[36].mxu1 %vm687_vm0, %v3551_v39 }
 0xc35   : > { %6316 = vmatprep.mubr.msk.f32.mxu1 %vm7083_vm1, %v7082_v10 }
 0xd00   : > { %v6304_v41 = vpop.f32.mrb[34].mxu1 }
 0xd01   : > { %v3645_v1 = vadd.f32 %v6304_v41, %v3560_v40  ;;  %v3639_v42 = vpop.f32.mrb[35].mxu1 }
 0xd02   : > { %v3640_v43 = vadd.f32 %v3639_v42, %v3560_v40 }
 0xd03   : > { %v3659_v17 = vadd.f32 %v6820_v45, %v3645_v1 }
 0xd04   : > { %v3658_v19 = vadd.f32 %v6821_v18, %v3640_v43 }
 0xd05   : > { %v3665_v24 = vsel %vm687_vm0, %v3659_v17, 0.0 }
 0xd06   : > { %3666 = vadd.xlane.f32.xlu1 %v3665_v24  ;;  %v3662_v26 = vsel %vm687_vm0, %v3658_v19, 0.0 }
 0xd07   : > { %v6307_v31 = vpop.f32.mrb[36].mxu1  ;;  %3663 = vadd.xlane.f32.xlu0 %v3662_v26 }
 0xd08   : > { %v3649_v46 = vpop.f32.mrb[37].mxu1  ;;  %v3655_v47 = vadd.f32 %v6307_v31, %v3560_v40 }
 0xd09   : > { %v3650_v48 = vadd.f32 %v3649_v46, %v3560_v40 }
 0xd0a   : > { %v3661_v53 = vadd.f32 %v6823_v52, %v3655_v47  ;;  %v7904_v52 = vsub.s32 2, %v7536_v28 }
 0xd0b   : > { %v3660_v29 = vadd.f32 %v6822_v49, %v3650_v48  ;;  %v7901_v48 = vsub.s32 1, %v7536_v28 }
 0xd0c   : > { %v3671_v54 = vsel %vm687_vm0, %v3661_v53, 0.0 }
 0xd0d   : > { %v3668_v50 = vsel %vm687_vm0, %v3660_v29, 0.0 }
 0xd0e   : > { %3669 = vadd.xlane.f32.xlu0 %v3668_v50 }
 0xd12   : > { %3672 = vadd.xlane.f32.xlu0 %v3671_v54 }
 0xd93   : > { %v3667_v55 = vpop.xlane.xlu1 %3666 }
 0xd94   : > { %v3676_v56 = vmul.f32 0.03125, %v3667_v55  ;;  %v3664_v57 = vpop.xlane.xlu0 %3663  ;;  %v3746_v55 = vrot.slane %v7865_v9, %v7901_v48 }
 0xd95   : > { %v3675_v60 = vmul.f32 0.03125, %v3664_v57 }
 0xd96   : > { %v7877_v62 = vsub.f32 %v3659_v17, %v3676_v56 }
 0xd97   : > { %v7879_v0 = vsub.f32 %v3658_v19, %v3675_v60 }
 0xd98   : > { %v3684_v2 = vmul.f32 %v7877_v62, %v7877_v62 }
 0xd99   : > { %v3683_v3 = vmul.f32 %v7879_v0, %v7879_v0 }
 0xd9a   : > { %v3690_v4 = vsel %vm687_vm0, %v3684_v2, 0.0 }
 0xd9b   : > { %v3670_v5 = vpop.xlane.xlu0 %3669  ;;  %3691 = vadd.xlane.f32.xlu0 %v3690_v4  ;;  %v3687_v6 = vsel %vm687_vm0, %v3683_v3, 0.0  ;;  %v3754_v3 = vrot.slane %v7865_v9, %v7904_v52  ;;  %v3759_v9 = vmul.u32 8, %v7536_v28 }
 0xd9c   : > { %v3677_v7 = vmul.f32 0.03125, %v3670_v5  ;;  %3688 = vadd.xlane.f32.xlu1 %v3687_v6 }
 0xd9d   : > { %v3760_v21 = vadd.s32 7, %v3759_v9 }
 0xd9e   : > { %v7887_v8 = vsub.f32 %v3660_v29, %v3677_v7 }
 0xd9f   : > { %v3673_v11 = vpop.xlane.xlu0 %3672  ;;  %vm3761_vm14 = vcmp.eq.s32.totalorder %v7540_v35, %v3760_v21 }
 0xda0   : > { %v3678_v12 = vmul.f32 0.03125, %v3673_v11  ;;  %v3685_v13 = vmul.f32 %v7887_v8, %v7887_v8 }
 0xda2   : > { %v7891_v15 = vsub.f32 %v3661_v53, %v3678_v12  ;;  %v3693_v16 = vsel %vm687_vm0, %v3685_v13, 0.0 }
 0xda3   : > { %3694 = vadd.xlane.f32.xlu1 %v3693_v16 }
 0xda4   : > { %v3686_v44 = vmul.f32 %v7891_v15, %v7891_v15 }
 0xda6   : > { %v3696_v51 = vsel %vm687_vm0, %v3686_v44, 0.0 }
 0xda7   : > { %3697 = vadd.xlane.f32.xlu0 %v3696_v51 }
 0xe28   : > { %v3692_v30 = vpop.xlane.xlu0 %3691 }
 0xe29   : > { %v3700_v59 = vmul.f32 0.032258064, %v3692_v30  ;;  %v3689_v32 = vpop.xlane.xlu1 %3688 }
 0xe2a   : > { %v3699_v33 = vmul.f32 0.032258064, %v3689_v32 }
 0xe2b   : > { %6708 = vrsqrt.f32 %v3700_v59  ;;  %vm3712_vm6 = vcmp.eq.f32.partialorder %v3700_v59, inf  ;;  %v3715_v40 = vand.u32 2147483648, %v3700_v59  ;;  %vm3714_vm7 = vcmp.eq.f32.partialorder %v3700_v59, 0.0 }
 0xe2c   : > { %6710 = vrsqrt.f32 %v3699_v33  ;;  %vm3705_vm8 = vcmp.eq.f32.partialorder %v3699_v33, inf  ;;  %v3708_v42 = vand.u32 2147483648, %v3699_v33  ;;  %vm3707_vm9 = vcmp.eq.f32.partialorder %v3699_v33, 0.0 }
 0xe30   : > { %v3695_v61 = vpop.xlane.xlu1 %3694 }
 0xe31   : > { %v3701_v63 = vmul.f32 0.032258064, %v3695_v61 }
 0xe33   : > { %6712 = vrsqrt.f32 %v3701_v63  ;;  %vm3719_vm10 = vcmp.eq.f32.partialorder %v3701_v63, inf  ;;  %v3722_v31 = vand.u32 2147483648, %v3701_v63  ;;  %vm3721_vm11 = vcmp.eq.f32.partialorder %v3701_v63, 0.0 }
 0xe34   : > { %v3698_v34 = vpop.xlane.xlu0 %3697 }
 0xe35   : > { %v6709_v36 = vpop.eup %6708  ;;  %v3702_v14 = vmul.f32 0.032258064, %v3698_v34 }
 0xe36   : > { %v6711_v38 = vpop.eup %6710  ;;  %v3711_v39 = vmul.f32 %v6709_v36, %v3700_v59 }
 0xe37   : > { %v3704_v41 = vmul.f32 %v6711_v38, %v3699_v33  ;;  %6714 = vrsqrt.f32 %v3702_v14  ;;  %vm3726_vm12 = vcmp.eq.f32.partialorder %v3702_v14, inf  ;;  %v3729_v53 = vand.u32 2147483648, %v3702_v14 }
 0xe38   : > { %v3713_v1 = vsel %vm3712_vm6, %v3700_v59, %v3711_v39  ;;  %vm3728_vm13 = vcmp.eq.f32.partialorder %v3702_v14, 0.0  ;;  %v3871_v59 = vld [vmem:[#allocation7 + $0x10] sm:$0xff] }
 0xe39   : > { %v3716_v43 = vsel %vm3714_vm7, %v3715_v40, %v3713_v1  ;;  %v3706_v45 = vsel %vm3705_vm8, %v3699_v33, %v3704_v41  ;;  %vm4161_vm7 = vcmask 31744   ;;  %vm4220_vm8 = vcmask 1043456  }
 0xe3a   : > { %v3732_v17 = vadd.f32 1e-06, %v3716_v43  ;;  %v3709_v18 = vsel %vm3707_vm9, %v3708_v42, %v3706_v45  ;;  %v5892_v42 = vld [vmem:[%s8450_s15] ss:$0 sm:$0xff] }
 0xe3b   : > { %v3731_v19 = vadd.f32 1e-06, %v3709_v18 }
 0xe3c   : > { %6716 = vrcp.f32 %v3732_v17 }
 0xe3d   : > { %v6713_v24 = vpop.eup %6712  ;;  %6718 = vrcp.f32 %v3731_v19 }
 0xe3e   : > { %v3718_v26 = vmul.f32 %v6713_v24, %v3701_v63 }
 0xe40   : > { %v3720_v46 = vsel %vm3719_vm10, %v3701_v63, %v3718_v26  ;;  %v5887_v63 = vld [vmem:[%s8402_s8] ss:$0 sm:$0xff] }
 0xe41   : > { %v6715_v47 = vpop.eup %6714  ;;  %v3723_v49 = vsel %vm3721_vm11, %v3722_v31, %v3720_v46 }
 0xe42   : > { %v3733_v29 = vadd.f32 1e-06, %v3723_v49  ;;  %v3725_v50 = vmul.f32 %v6715_v47, %v3702_v14 }
 0xe44   : > { %6720 = vrcp.f32 %v3733_v29  ;;  %v3727_v54 = vsel %vm3726_vm12, %v3702_v14, %v3725_v50 }
 0xe45   : > { %v3730_v56 = vsel %vm3728_vm13, %v3729_v53, %v3727_v54 }
 0xe46   : > { %v6717_v57 = vpop.eup %6716  ;;  %v3734_v60 = vadd.f32 1e-06, %v3730_v56 }
 0xe47   : > { %v6719_v2 = vpop.eup %6718  ;;  %v3740_v4 = vmul.f32 %v6717_v57, %v7877_v62 }
 0xe48   : > { %6722 = vrcp.f32 %v3734_v60  ;;  %v3739_v5 = vmul.f32 %v6719_v2, %v7879_v0  ;;  %v3841_v60 = vmul.u32 8, %v7540_v35  ;;  %v3838_v2 = vadd.s32 8, %v7536_v28 }
 0xe49   : > { %v3748_v6 = vmul.f32 %v3746_v55, %v3740_v4  ;;  %v3840_v4 = vadd.s32 24, %v7536_v28 }
 0xe4a   : > { %v3747_v7 = vmul.f32 %v3746_v55, %v3739_v5  ;;  %v3839_v5 = vadd.s32 16, %v7536_v28 }
 0xe4b   : > { %v7912_v11 = vadd.f32 %v3754_v3, %v3748_v6 }
 0xe4c   : > { %v7914_v12 = vadd.f32 %v3754_v3, %v3747_v7 }
 0xe4e   : > { %v6721_v13 = vpop.eup %6720  ;;  %v6475_v16 = vpack.c.bf16 %v7912_v11, %v7914_v12 }
 0xe4f   : > { %v3741_v44 = vmul.f32 %v6721_v13, %v7887_v8  ;;  %v6480_v8 = vpack.c.bf16 %v3870_v23, %v3869_v58 }
 0xe50   : > { %6476 = vmatpush3.bf16.msra.mxu1 %v6475_v16 }
 0xe51   : > { %6477 = vmatprep.subr.bf16.mxu1 %v7099_v20  ;;  %v3749_v51 = vmul.f32 %v3746_v55, %v3741_v44  ;;  %v3872_v20 = vld [vmem:[#allocation7 + $0x18] sm:$0xff] }
 0xe52   : > { %v6723_v62 = vpop.eup %6722  ;;  %v6484_v32 = vpack.c.bf16 %v3872_v20, %v3871_v59 }
 0xe53   : > { %v3742_v0 = vmul.f32 %v6723_v62, %v7891_v15  ;;  %v7922_v25 = vadd.f32 %v3754_v3, %v3749_v51  ;;  %v5884_v15 = vsel %vm3761_vm14, 1.0, %v7082_v10  ;;  %vm5449_vm14 = vcmask 523264  }
 0xe55   : > { %v3750_v22 = vmul.f32 %v3746_v55, %v3742_v0 }
 0xe57   : > { %v7924_v27 = vadd.f32 %v3754_v3, %v3750_v22  ;;  %v3842_v3 = vadd.s32 7, %v3841_v60 }
 0xe59   : > { %v6478_v30 = vpack.c.bf16 %v7924_v27, %v7922_v25  ;;  %vm3844_vm15 = vcmp.le.s32.totalorder %v3842_v3, %v3838_v2  ;;  %vm3843_vm1 = vcmp.le.s32.totalorder %v3842_v3, %v7536_v28  ;;  %vm3846_vm3 = vcmp.le.s32.totalorder %v3842_v3, %v3840_v4 }
 0xe5a   : > { %v3848_v7 = vsel %vm3844_vm15, 1.0, %v7082_v10  ;;  %v3847_v13 = vsel %vm3843_vm1, 1.0, %v7082_v10  ;;  %vm3845_vm6 = vcmp.le.s32.totalorder %v3842_v3, %v3839_v5  ;;  %v3850_v44 = vsel %vm3846_vm3, 1.0, %v7082_v10 }
 0xe5b   : > { %6479 = vmatpush3.bf16.msra.mxu1 %v6478_v30  ;;  %v3849_v9 = vsel %vm3845_vm6, 1.0, %v7082_v10 }
 0xe5c   : > { %6481 = vmatprep.subr.bf16.mxu1 %v6480_v8 }
 0xe5e   : > { %6317 = vmatmul.mubr.msk.f32.vlgmr.msra.gmra.mrb[38].mxu1 %vm687_vm0, %v5884_v15 }
 0xe5f   : > { %6483 = vmatpush3.bf16.msra.mxu1 %v6480_v8  ;;  %6327 = vmatprep.mubr.msk.f32.mxu1 %vm687_vm0, %v7914_v12 }
 0xe60   : > { %6485 = vmatprep.subr.bf16.mxu1 %v6484_v32 }
 0xe63   : > { %6487 = vmatpush3.bf16.msra.mxu1 %v6484_v32 }
 0xe66   : > { %6328 = vmatmul.mubr.msk.f32.vlgmr.msra.gmra.mrb[40].mxu1 %vm687_vm0, %v7912_v11 }
 0xe67   : > { %6330 = vmatprep.mubr.msk.f32.mxu1 %vm687_vm0, %v7922_v25 }
 0xe6a   : > { %6331 = vmatmul.mubr.msk.f32.gmra.mrb[42].mxu1 %vm687_vm0, %v7924_v27 }
 0xf31   : > { %v3833_v33 = vpop.f32.mrb[38].mxu1 }
 0xf32   : > { %v6318_v61 = vpop.f32.mrb[39].mxu1  ;;  %6342 = vmatmul.mubr.msk.f32.vlgmr.msra.gmra.mrb[34].mxu0 %vm687_vm0, %v3833_v33 }
 0xf39   : > { %v6329_v34 = vpop.f32.mrb[40].mxu1 }
 0xf3a   : > { %v3964_v36 = vadd.f32 %v6329_v34, %v5887_v63  ;;  %v3958_v14 = vpop.f32.mrb[41].mxu1 }
 0xf3b   : > { %v3959_v38 = vadd.f32 %v5887_v63, %v3958_v14 }
 0xf3c   : > { %4310 = vrot.lane.b32.xlu1 %v3964_v36, %s7088_s23 }
 0xf3d   : > { %v6332_v39 = vpop.f32.mrb[42].mxu1  ;;  %4308 = vrot.lane.b32.xlu0 %v3959_v38, %s7088_s23  ;;  %6346 = vmatprep.mubr.msk.f32.mxu0 %vm856_vm2, %v3959_v38 }
 0xf3e   : > { %v3974_v40 = vadd.f32 %v6332_v39, %v5887_v63  ;;  %v3968_v41 = vpop.f32.mrb[43].mxu1 }
 0xf3f   : > { %v3969_v1 = vadd.f32 %v5887_v63, %v3968_v41 }
 0xf41   : > { %4314 = vrot.lane.b32.xlu0 %v3974_v40, %s7088_s23 }
 0xf45   : > { %4558 = vrot.lane.b32.xlu0 %v3959_v38, %s7091_s12 }
 0xf49   : > { %4562 = vrot.lane.b32.xlu0 %v3969_v1, %s7091_s12 }
 0xfae   : > { %v4311_v24 = vpop.permute.xlu1 %4310 }
 0xfaf   : > { %v4309_v18 = vpop.permute.xlu0 %4308 }
 0xfb3   : > { %v4315_v19 = vpop.permute.xlu0 %4314 }
 0xfb7   : > { %v4559_v26 = vpop.permute.xlu0 %4558 }
 0xfbb   : > { %v4563_v47 = vpop.permute.xlu0 %4562 }
0x1005   : > { %v4057_v43 = vpop.f32.mrb[34].mxu0 }
0x1006   : > { %v7952_v45 = vadd.f32 %v5892_v42, %v4057_v43  ;;  %v6343_v17 = vpop.f32.mrb[35].mxu0 }
0x1008   : > { %6344 = vmatprep.subr.msk.mxu0 %vm856_vm2, %v7952_v45  ;;  %4316 = vrot.lane.b32.xlu1 %v7952_v45, %s7088_s23 }
0x1009   : > { %4816 = vrot.lane.b32.xlu0 %v7952_v45, %s7094_s7  ;;  %6345 = vmatpush3.xpose.msk.msra.mxu0 %vm856_vm2, %v7952_v45 }
0x100c   : > { %4312 = vrot.lane.b32.xlu1 %v3969_v1, %s7088_s23  ;;  %6347 = vmatmul.mubr.msk.f32.vlgmr.msra.gmra.mrb[36].mxu0 %vm856_vm2, %v3964_v36 }
0x100d   : > { %4810 = vrot.lane.b32.xlu0 %v3964_v36, %s7094_s7  ;;  %6349 = vmatprep.mubr.msk.f32.mxu0 %vm856_vm2, %v3969_v1 }
0x1010   : > { %4566 = vrot.lane.b32.xlu1 %v7952_v45, %s7091_s12  ;;  %6350 = vmatmul.mubr.msk.f32.gmra.mrb[38].mxu0 %vm856_vm2, %v3974_v40 }
0x1011   : > { %4814 = vrot.lane.b32.xlu0 %v3974_v40, %s7094_s7  ;;  %6362 = vmatprep.mubr.msk.f32.mxu0 %vm856_vm2, %v4309_v18 }
0x1014   : > { %4560 = vrot.lane.b32.xlu1 %v3964_v36, %s7091_s12 }
0x1018   : > { %4564 = vrot.lane.b32.xlu1 %v3974_v40, %s7091_s12 }
0x101c   : > { %4808 = vrot.lane.b32.xlu1 %v3959_v38, %s7094_s7 }
0x1020   : > { %4812 = vrot.lane.b32.xlu1 %v3969_v1, %s7094_s7  ;;  %s8451_s7 = sld [smem:[#allocation21_spill]] }
0x1026   : > { %s670_s21 = scalar_lea.vmem %s8451_s7, %s7459_s30  ;;  %s8452_s30 = smov 24  }
0x1027   : > { %v5886_v6 = vld [vmem:[%s670_s21] ss:$0 sm:$0xff]  ;;  %s8457_s21 = sld [smem:[#allocation29_spill]] }
0x1028   : > { %v3858_v35 = vmul.f32 %v5886_v6, %v3848_v7  ;;  %v3857_v16 = vmul.f32 %v5886_v6, %v3847_v13  ;;  %v3860_v0 = vmul.f32 %v5886_v6, %v3850_v44  ;;  %v3859_v21 = vmul.f32 %v5886_v6, %v3849_v9 }
0x102a   : > { %v3862_v62 = vsub.f32 1.0, %v3858_v35  ;;  %v3861_v51 = vsub.f32 1.0, %v3857_v16  ;;  %v3864_v58 = vsub.f32 1.0, %v3860_v0  ;;  %v3863_v23 = vsub.f32 1.0, %v3859_v21 }
0x102c   : > { %v3866_v22 = vmul.f32 -1e+10, %v3862_v62  ;;  %v3865_v28 = vmul.f32 -1e+10, %v3861_v51  ;;  %v3868_v20 = vmul.f32 -1e+10, %v3864_v58 }
0x102d   : > { %v3867_v32 = vmul.f32 -1e+10, %v3863_v23 }
0x107a   : > { %v4317_v31 = vpop.permute.xlu1 %4316 }
0x107b   : > { %6360 = vmatprep.subr.msk.mxu0 %vm856_vm2, %v4317_v31  ;;  %v4817_v29 = vpop.permute.xlu0 %4816 }
0x107c   : > { %6361 = vmatpush3.xpose.msk.msra.mxu0 %vm856_vm2, %v4317_v31 }
0x107e   : > { %v4313_v46 = vpop.permute.xlu1 %4312 }
0x107f   : > { %6363 = vmatmul.mubr.msk.f32.vlgmr.msra.gmra.mrb[40].mxu0 %vm856_vm2, %v4311_v24  ;;  %v4811_v54 = vpop.permute.xlu0 %4810 }
0x1080   : > { %6365 = vmatprep.mubr.msk.f32.mxu0 %vm856_vm2, %v4313_v46 }
0x1082   : > { %v4567_v49 = vpop.permute.xlu1 %4566 }
0x1083   : > { %6366 = vmatmul.mubr.msk.f32.gmra.mrb[42].mxu0 %vm856_vm2, %v4315_v19  ;;  %6376 = vmatprep.subr.msk.mxu0 %vm856_vm2, %v4567_v49  ;;  %v4815_v57 = vpop.permute.xlu0 %4814 }
0x1084   : > { %6377 = vmatpush3.xpose.msk.msra.mxu0 %vm856_vm2, %v4567_v49  ;;  %6378 = vmatprep.mubr.msk.f32.mxu0 %vm856_vm2, %v4559_v26 }
0x1085   : > { %6392 = vmatprep.subr.msk.mxu0 %vm856_vm2, %v4817_v29 }
0x1086   : > { %v4561_v50 = vpop.permute.xlu1 %4560 }
0x1087   : > { %6379 = vmatmul.mubr.msk.f32.vlgmr.msra.gmra.mrb[44].mxu0 %vm856_vm2, %v4561_v50 }
0x1088   : > { %6381 = vmatprep.mubr.msk.f32.mxu0 %vm856_vm2, %v4563_v47  ;;  %6393 = vmatpush3.xpose.msk.msra.mxu0 %vm856_vm2, %v4817_v29 }
0x108a   : > { %v4565_v53 = vpop.permute.xlu1 %4564 }
0x108b   : > { %6382 = vmatmul.mubr.msk.f32.gmra.mrb[46].mxu0 %vm856_vm2, %v4565_v53 }
0x108e   : > { %v4809_v55 = vpop.permute.xlu1 %4808 }
0x108f   : > { %6394 = vmatprep.mubr.msk.f32.mxu0 %vm856_vm2, %v4809_v55 }
0x1090   : > { %6395 = vmatmul.mubr.msk.f32.vlgmr.msra.gmra.mrb[48].mxu0 %vm856_vm2, %v4811_v54 }
0x1092   : > { %v4813_v56 = vpop.permute.xlu1 %4812 }
0x1093   : > { %6397 = vmatprep.mubr.msk.f32.mxu0 %vm856_vm2, %v4813_v56 }
0x1094   : > { %6398 = vmatmul.mubr.msk.f32.gmra.mrb[50].mxu0 %vm856_vm2, %v4815_v57 }
0x10df   : > { %v6348_v8 = vpop.f32.mrb[36].mxu0 }
0x10e0   : > { %v8005_v30 = vadd.f32 %v6348_v8, %v3866_v22  ;;  %v4142_v59 = vpop.f32.mrb[37].mxu0 }
0x10e1   : > { %v8007_v15 = vadd.f32 %v4142_v59, %v3865_v28 }
0x10e2   : > { %v4165_v10 = vsel %vm4161_vm7, %v8005_v30, -inf }
0x10e3   : > { %4166 = vmax.xlane.f32.xlu0 %v4165_v10  ;;  %v6351_v33 = vpop.f32.mrb[38].mxu0  ;;  %v4162_v61 = vsel %vm4161_vm7, %v8007_v15, -inf }
0x10e4   : > { %v8013_v63 = vadd.f32 %v6351_v33, %v3868_v20  ;;  %v4152_v34 = vpop.f32.mrb[39].mxu0  ;;  %4163 = vmax.xlane.f32.xlu1 %v4162_v61 }
0x10e5   : > { %v8015_v36 = vadd.f32 %v4152_v34, %v3867_v32 }
0x10e6   : > { %v4171_v14 = vsel %vm4161_vm7, %v8013_v63, -inf }
0x10e7   : > { %v4168_v38 = vsel %vm4161_vm7, %v8015_v36, -inf }
0x10e8   : > { %4169 = vmax.xlane.f32.xlu0 %v4168_v38  ;;  %4172 = vmax.xlane.f32.xlu1 %v4171_v14 }
0x1152   : > { %v6364_v39 = vpop.f32.mrb[40].mxu0 }
0x1153   : > { %v8021_v40 = vadd.f32 %v6364_v39, %v3866_v22  ;;  %v4394_v41 = vpop.f32.mrb[41].mxu0 }
0x1154   : > { %v8023_v1 = vadd.f32 %v4394_v41, %v3865_v28 }
0x1155   : > { %v4416_v42 = vsel %vm4161_vm7, %v8021_v40, -inf }
0x1156   : > { %v6367_v43 = vpop.f32.mrb[42].mxu0  ;;  %4417 = vmax.xlane.f32.xlu1 %v4416_v42  ;;  %v4413_v17 = vsel %vm4161_vm7, %v8023_v1, -inf }
0x1157   : > { %v8029_v18 = vadd.f32 %v6367_v43, %v3868_v20  ;;  %v4404_v19 = vpop.f32.mrb[43].mxu0  ;;  %4414 = vmax.xlane.f32.xlu0 %v4413_v17 }
0x1158   : > { %v8031_v24 = vadd.f32 %v4404_v19, %v3867_v32 }
0x1159   : > { %v4422_v26 = vsel %vm4161_vm7, %v8029_v18, -inf }
0x115a   : > { %v6380_v31 = vpop.f32.mrb[44].mxu0  ;;  %4423 = vmax.xlane.f32.xlu1 %v4422_v26  ;;  %v4419_v46 = vsel %vm4161_vm7, %v8031_v24, -inf }
0x115b   : > { %v8037_v47 = vadd.f32 %v6380_v31, %v3866_v22  ;;  %v4644_v49 = vpop.f32.mrb[45].mxu0  ;;  %4420 = vmax.xlane.f32.xlu0 %v4419_v46 }
0x115c   : > { %v8039_v29 = vadd.f32 %v4644_v49, %v3865_v28 }
0x115d   : > { %v4666_v50 = vsel %vm4161_vm7, %v8037_v47, -inf }
0x115e   : > { %v6383_v53 = vpop.f32.mrb[46].mxu0  ;;  %4667 = vmax.xlane.f32.xlu1 %v4666_v50  ;;  %v4663_v54 = vsel %vm4161_vm7, %v8039_v29, -inf }
0x115f   : > { %v8045_v55 = vadd.f32 %v6383_v53, %v3868_v20  ;;  %v4654_v56 = vpop.f32.mrb[47].mxu0  ;;  %4664 = vmax.xlane.f32.xlu0 %v4663_v54 }
0x1160   : > { %v8047_v57 = vadd.f32 %v4654_v56, %v3867_v32 }
0x1161   : > { %v4672_v60 = vsel %vm4161_vm7, %v8045_v55, -inf }
0x1162   : > { %4673 = vmax.xlane.f32.xlu1 %v4672_v60  ;;  %v4669_v2 = vsel %vm4161_vm7, %v8047_v57, -inf }
0x1163   : > { %v6396_v3 = vpop.f32.mrb[48].mxu0  ;;  %4670 = vmax.xlane.f32.xlu0 %v4669_v2 }
0x1164   : > { %v8053_v4 = vadd.f32 %v6396_v3, %v3866_v22  ;;  %v4894_v5 = vpop.f32.mrb[49].mxu0 }
0x1165   : > { %v8055_v6 = vadd.f32 %v4894_v5, %v3865_v28 }
0x1166   : > { %v4916_v7 = vsel %vm4161_vm7, %v8053_v4, -inf }
0x1167   : > { %v6399_v13 = vpop.f32.mrb[50].mxu0  ;;  %4917 = vmax.xlane.f32.xlu1 %v4916_v7  ;;  %v4913_v35 = vsel %vm4161_vm7, %v8055_v6, -inf }
0x1168   : > { %v8061_v16 = vadd.f32 %v6399_v13, %v3868_v20  ;;  %v4904_v44 = vpop.f32.mrb[51].mxu0  ;;  %4914 = vmax.xlane.f32.xlu0 %v4913_v35 }
0x1169   : > { %v8063_v9 = vadd.f32 %v4904_v44, %v3867_v32 }
0x116a   : > { %v4922_v62 = vsel %vm4161_vm7, %v8061_v16, -inf }
0x116b   : > { %4923 = vmax.xlane.f32.xlu1 %v4922_v62  ;;  %v4919_v0 = vsel %vm4161_vm7, %v8063_v9, -inf }
0x116c   : > { %4920 = vmax.xlane.f32.xlu0 %v4919_v0 }
0x1170   : > { %v4167_v51 = vpop.xlane.xlu0 %4166 }
0x1171   : > { %v4175_v21 = vsub.f32 %v8005_v30, %v4167_v51  ;;  %v4164_v22 = vpop.xlane.xlu1 %4163 }
0x1172   : > { %v4174_v10 = vsub.f32 %v8007_v15, %v4164_v22 }
0x1173   : > { %v4180_v58 = vmul.f32 1.442695, %v4175_v21 }
0x1174   : > { %v4178_v61 = vmul.f32 1.442695, %v4174_v10 }
0x1175   : > { %6724 = vpow2.f32 %v4180_v58  ;;  %v4173_v28 = vpop.xlane.xlu1 %4172  ;;  %v4170_v33 = vpop.xlane.xlu0 %4169 }
0x1176   : > { %v4177_v23 = vsub.f32 %v8013_v63, %v4173_v28  ;;  %v4176_v63 = vsub.f32 %v8015_v36, %v4170_v33 }
0x1178   : > { %v4184_v8 = vmul.f32 1.442695, %v4177_v23  ;;  %v4182_v34 = vmul.f32 1.442695, %v4176_v63 }
0x117a   : > { %6726 = vpow2.f32 %v4184_v8 }
0x117b   : > { %6728 = vpow2.f32 %v4178_v61 }
0x117c   : > { %6730 = vpow2.f32 %v4182_v34 }
0x117f   : > { %v8071_v59 = vpop.eup %6724 }
0x1180   : > { %v4189_v20 = vsel %vm4161_vm7, %v8071_v59, 0.0 }
0x1181   : > { %4190 = vadd.xlane.f32.xlu1 %v4189_v20 }
0x1182   : > { %4206 = vrot.lane.b32.xlu0 %v7952_v45, %s7084_s1 }
0x1184   : > { %v8077_v32 = vpop.eup %6726 }
0x1185   : > { %v4195_v30 = vsel %vm4161_vm7, %v8077_v32, 0.0  ;;  %v8083_v14 = vpop.eup %6728 }
0x1186   : > { %4196 = vadd.xlane.f32.xlu1 %v4195_v30  ;;  %v4186_v38 = vsel %vm4161_vm7, %v8083_v14, 0.0  ;;  %v8087_v39 = vpop.eup %6730 }
0x1187   : > { %v4192_v41 = vsel %vm4161_vm7, %v8087_v39, 0.0 }
0x11a1   : > { %4187 = vadd.xlane.f32.xlu0 %v4186_v38 }
0x11a5   : > { %4193 = vadd.xlane.f32.xlu0 %v4192_v41 }
0x11e3   : > { %v4418_v15 = vpop.xlane.xlu1 %4417 }
0x11e4   : > { %v4426_v42 = vsub.f32 %v8021_v40, %v4418_v15  ;;  %v4415_v43 = vpop.xlane.xlu0 %4414 }
0x11e5   : > { %v4425_v36 = vsub.f32 %v8023_v1, %v4415_v43 }
0x11e6   : > { %v4431_v17 = vmul.f32 1.442695, %v4426_v42 }
0x11e7   : > { %v4429_v19 = vmul.f32 1.442695, %v4425_v36  ;;  %v4424_v26 = vpop.xlane.xlu1 %4423 }
0x11e8   : > { %6732 = vpow2.f32 %v4431_v17  ;;  %v4428_v31 = vsub.f32 %v8029_v18, %v4424_v26  ;;  %v4421_v46 = vpop.xlane.xlu0 %4420 }
0x11e9   : > { %6734 = vpow2.f32 %v4429_v19  ;;  %v4427_v49 = vsub.f32 %v8031_v24, %v4421_v46 }
0x11ea   : > { %v4435_v50 = vmul.f32 1.442695, %v4428_v31 }
0x11eb   : > { %v4433_v53 = vmul.f32 1.442695, %v4427_v49  ;;  %v4668_v54 = vpop.xlane.xlu1 %4667 }
0x11ec   : > { %6736 = vpow2.f32 %v4435_v50  ;;  %v4676_v56 = vsub.f32 %v8037_v47, %v4668_v54  ;;  %v4665_v40 = vpop.xlane.xlu0 %4664 }
0x11ed   : > { %6738 = vpow2.f32 %v4433_v53  ;;  %v4675_v1 = vsub.f32 %v8039_v29, %v4665_v40 }
0x11ee   : > { %v4681_v60 = vmul.f32 1.442695, %v4676_v56 }
0x11ef   : > { %v4679_v2 = vmul.f32 1.442695, %v4675_v1  ;;  %v4674_v3 = vpop.xlane.xlu1 %4673 }
0x11f0   : > { %6740 = vpow2.f32 %v4681_v60  ;;  %v4678_v18 = vsub.f32 %v8045_v55, %v4674_v3  ;;  %v4671_v5 = vpop.xlane.xlu0 %4670 }
0x11f1   : > { %6742 = vpow2.f32 %v4679_v2  ;;  %v4677_v24 = vsub.f32 %v8047_v57, %v4671_v5 }
0x11f2   : > { %v8099_v7 = vpop.eup %6732  ;;  %v4685_v13 = vmul.f32 1.442695, %v4678_v18 }
0x11f3   : > { %v8101_v35 = vpop.eup %6734  ;;  %v4683_v47 = vmul.f32 1.442695, %v4677_v24  ;;  %v4440_v44 = vsel %vm4161_vm7, %v8099_v7, 0.0 }
0x11f4   : > { %6744 = vpow2.f32 %v4685_v13  ;;  %4441 = vadd.xlane.f32.xlu1 %v4440_v44  ;;  %v4918_v29 = vpop.xlane.xlu1 %4917  ;;  %v4437_v62 = vsel %vm4161_vm7, %v8101_v35, 0.0 }
0x11f5   : > { %6746 = vpow2.f32 %v4683_v47  ;;  %v4926_v55 = vsub.f32 %v8053_v4, %v4918_v29  ;;  %v4915_v0 = vpop.xlane.xlu0 %4914  ;;  %4438 = vadd.xlane.f32.xlu0 %v4437_v62 }
0x11f6   : > { %v8108_v57 = vpop.eup %6736  ;;  %v4925_v51 = vsub.f32 %v8055_v6, %v4915_v0 }
0x11f7   : > { %v8111_v21 = vpop.eup %6738  ;;  %v4931_v22 = vmul.f32 1.442695, %v4926_v55  ;;  %v4446_v58 = vsel %vm4161_vm7, %v8108_v57, 0.0 }
0x11f8   : > { %v4929_v28 = vmul.f32 1.442695, %v4925_v51  ;;  %4447 = vadd.xlane.f32.xlu1 %v4446_v58  ;;  %v4924_v23 = vpop.xlane.xlu1 %4923  ;;  %v4443_v8 = vsel %vm4161_vm7, %v8111_v21, 0.0 }
0x11f9   : > { %6748 = vpow2.f32 %v4931_v22  ;;  %v4928_v4 = vsub.f32 %v8061_v16, %v4924_v23  ;;  %v4921_v20 = vpop.xlane.xlu0 %4920  ;;  %4444 = vadd.xlane.f32.xlu0 %v4443_v8 }
0x11fa   : > { %v8118_v30 = vpop.eup %6740  ;;  %6750 = vpow2.f32 %v4929_v28  ;;  %v4927_v6 = vsub.f32 %v8063_v9, %v4921_v20 }
0x11fb   : > { %v8121_v10 = vpop.eup %6742  ;;  %v4935_v33 = vmul.f32 1.442695, %v4928_v4  ;;  %v4690_v61 = vsel %vm4161_vm7, %v8118_v30, 0.0 }
0x11fc   : > { %v4933_v63 = vmul.f32 1.442695, %v4927_v6  ;;  %4691 = vadd.xlane.f32.xlu1 %v4690_v61  ;;  %v4687_v34 = vsel %vm4161_vm7, %v8121_v10, 0.0 }
0x11fd   : > { %6752 = vpow2.f32 %v4935_v33  ;;  %v4207_v16 = vpop.permute.xlu0 %4206  ;;  %4688 = vadd.xlane.f32.xlu0 %v4687_v34 }
0x11fe   : > { %v8127_v38 = vpop.eup %6744  ;;  %6352 = vmatprep.subr.msk.mxu1 %vm4220_vm8, %v4207_v16  ;;  %6754 = vpow2.f32 %v4933_v63 }
0x11ff   : > { %v8130_v9 = vpop.eup %6746  ;;  %6353 = vmatpush3.msk.msra.mxu1 %vm4220_vm8, %v4207_v16  ;;  %v4696_v41 = vsel %vm4161_vm7, %v8127_v38, 0.0 }
0x1200   : > { %4697 = vadd.xlane.f32.xlu1 %v4696_v41  ;;  %v4693_v15 = vsel %vm4161_vm7, %v8130_v9, 0.0 }
0x1201   : > { %4694 = vadd.xlane.f32.xlu0 %v4693_v15 }
0x1203   : > { %v8137_v42 = vpop.eup %6748 }
0x1204   : > { %v8139_v43 = vpop.eup %6750  ;;  %v4940_v36 = vsel %vm4161_vm7, %v8137_v42, 0.0 }
0x1205   : > { %4941 = vadd.xlane.f32.xlu1 %v4940_v36  ;;  %v4937_v17 = vsel %vm4161_vm7, %v8139_v43, 0.0 }
0x1206   : > { %4938 = vadd.xlane.f32.xlu0 %v4937_v17 }
0x1207   : > { %v8145_v19 = vpop.eup %6752 }
0x1208   : > { %v4946_v26 = vsel %vm4161_vm7, %v8145_v19, 0.0  ;;  %v8149_v31 = vpop.eup %6754 }
0x1209   : > { %4947 = vadd.xlane.f32.xlu1 %v4946_v26  ;;  %v4943_v46 = vsel %vm4161_vm7, %v8149_v31, 0.0 }
0x120d   : > { %4944 = vadd.xlane.f32.xlu1 %v4943_v46 }
0x120e   : > { %v4191_v49 = vpop.xlane.xlu1 %4190 }
0x120f   : > { %6756 = vrcp.f32 %v4191_v49 }
0x1213   : > { %v4197_v53 = vpop.xlane.xlu1 %4196 }
0x1219   : > { %v6757_v56 = vpop.eup %6756 }
0x121a   : > { %v4203_v60 = vmul.f32 %v6757_v56, %v8071_v59 }
0x121c   : > { %4707 = vrot.lane.b32.xlu0 %v7952_v45, %s7090_s20  ;;  %s8453_s20 = sld [smem:[#allocation25_spill]] }
0x121e   : > { %4457 = vrot.lane.b32.xlu1 %v7952_v45, %s7087_s28  ;;  %s7100_s28 = smov [#allocation13]  }
0x1220   : > { %4957 = vrot.lane.b32.xlu0 %v7952_v45, %s7093_s29  ;;  %s5824_s29 = sshll.u32 %s7435_s2, 5 }
0x1221   : > { %s662_s15 = scalar_lea.vmem [#allocation13], %s5824_s29 }
0x1222   : > { %s5665_s23 = sshll.u32 %s662_s15, 4  ;;  %s8347_s23 = int_to_ptr.vmem [resolvable:$true] %s5665_s23 }
0x1223   : > { %s6994_s1 = scalar_lea.vmem %s8347_s23, 512 }
0x1224   : > { %p6995_p4 = scmp.ne.s32.totalorder %s8347_s23, %s6994_s1 }
0x1226   : > { %p6996_p1 = pnand %p6995_p4, %p8458_p12 }
0x1228   : > { %p6997_p13 = pneg %p6996_p1 }
0x122e   : > { %v4188_v50 = vpop.xlane.xlu0 %4187 }
0x122f   : > { %6758 = vrcp.f32 %v4188_v50  ;;  %v5119_v50 = vld [vmem:[#allocation10] sm:$0xff] }
0x1230   : > { %6760 = vrcp.f32 %v4197_v53  ;;  %v5120_v53 = vld [vmem:[#allocation10 + $0x8] sm:$0xff] }
0x1232   : > { %v4194_v54 = vpop.xlane.xlu0 %4193 }
0x1233   : > { %6762 = vrcp.f32 %v4194_v54  ;;  %v6494_v54 = vpack.c.bf16 %v5120_v53, %v5119_v50 }
0x1235   : > { %6495 = vmatprep.subr.bf16.mxu0 %v6494_v54 }
0x1236   : > { %6497 = vmatpush3.bf16.msra.mxu0 %v6494_v54 }
0x1239   : > { %v6759_v40 = vpop.eup %6758 }
0x123a   : > { %v4202_v1 = vmul.f32 %v6759_v40, %v8083_v14  ;;  %v6761_v2 = vpop.eup %6760  ;;  %v5122_v40 = vld [vmem:[#allocation10 + $0x18] sm:$0xff] }
0x123b   : > { %v4205_v18 = vmul.f32 %v6761_v2, %v8077_v32 }
0x123c   : > { %6354 = vmatprep.mubr.msk.f32.mxu1 %vm4161_vm7, %v4202_v1 }
0x123d   : > { %v6763_v3 = vpop.eup %6762  ;;  %6355 = vmatmul.mubr.msk.f32.vlgmr.msra.gmra.mrb[44].mxu1 %vm4161_vm7, %v4203_v60 }
0x123e   : > { %v4204_v45 = vmul.f32 %v6763_v3, %v8087_v39 }
0x1240   : > { %6357 = vmatprep.mubr.msk.f32.mxu1 %vm4161_vm7, %v4204_v45 }
0x1241   : > { %6358 = vmatmul.mubr.msk.f32.gmra.mrb[46].mxu1 %vm4161_vm7, %v4205_v18 }
0x1281   : > { %v4442_v5 = vpop.xlane.xlu1 %4441 }
0x1282   : > { %v4439_v24 = vpop.xlane.xlu0 %4438 }
0x1283   : > { %6764 = vrcp.f32 %v4439_v24 }
0x1284   : > { %6766 = vrcp.f32 %v4442_v5 }
0x1285   : > { %v4448_v14 = vpop.xlane.xlu1 %4447 }
0x1286   : > { %v4445_v13 = vpop.xlane.xlu0 %4444 }
0x1287   : > { %6768 = vrcp.f32 %v4445_v13 }
0x1288   : > { %6770 = vrcp.f32 %v4448_v14 }
0x1289   : > { %v4692_v59 = vpop.xlane.xlu1 %4691 }
0x128a   : > { %v4689_v47 = vpop.xlane.xlu0 %4688 }
0x128b   : > { %6772 = vrcp.f32 %v4689_v47 }
0x128c   : > { %6774 = vrcp.f32 %v4692_v59 }
0x128d   : > { %v6765_v44 = vpop.eup %6764  ;;  %v4698_v29 = vpop.xlane.xlu1 %4697 }
0x128e   : > { %v4453_v62 = vmul.f32 %v6765_v44, %v8101_v35  ;;  %v4695_v55 = vpop.xlane.xlu0 %4694  ;;  %v6767_v22 = vpop.eup %6766 }
0x128f   : > { %6776 = vrcp.f32 %v4695_v55  ;;  %v4454_v35 = vmul.f32 %v6767_v22, %v8099_v7 }
0x1290   : > { %6370 = vmatprep.mubr.msk.f32.mxu1 %vm4161_vm7, %v4453_v62  ;;  %6778 = vrcp.f32 %v4698_v29 }
0x1291   : > { %v6769_v28 = vpop.eup %6768 }
0x1292   : > { %v4942_v32 = vpop.xlane.xlu1 %4941  ;;  %v6771_v8 = vpop.eup %6770  ;;  %v4455_v4 = vmul.f32 %v6769_v28, %v8111_v21 }
0x1293   : > { %v4939_v39 = vpop.xlane.xlu0 %4938  ;;  %v4456_v7 = vmul.f32 %v6771_v8, %v8108_v57 }
0x1294   : > { %6780 = vrcp.f32 %v4939_v39 }
0x1295   : > { %v6773_v20 = vpop.eup %6772  ;;  %6782 = vrcp.f32 %v4942_v32 }
0x1296   : > { %v4948_v0 = vpop.xlane.xlu1 %4947  ;;  %v6775_v33 = vpop.eup %6774  ;;  %v4703_v61 = vmul.f32 %v6773_v20, %v8121_v10 }
0x1297   : > { %v4708_v58 = vpop.permute.xlu0 %4707  ;;  %v4704_v63 = vmul.f32 %v6775_v33, %v8118_v30 }
0x1299   : > { %v6777_v21 = vpop.eup %6776 }
0x129a   : > { %v4945_v51 = vpop.xlane.xlu1 %4944  ;;  %v6779_v34 = vpop.eup %6778  ;;  %v4705_v16 = vmul.f32 %v6777_v21, %v8130_v9 }
0x129b   : > { %v4958_v6 = vpop.permute.xlu0 %4957  ;;  %6784 = vrcp.f32 %v4945_v51  ;;  %v4706_v57 = vmul.f32 %v6779_v34, %v8127_v38  ;;  %v8228_v34 = vld [vmem:[%s8453_s20] sm:$0x7]  ;;  %s8456_s20 = sld [smem:[#allocation28_spill]] }
0x129c   : > { %6786 = vrcp.f32 %v4948_v0 }
0x129e   : > { %v4458_v23 = vpop.permute.xlu1 %4457  ;;  %v6781_v41 = vpop.eup %6780 }
0x129f   : > { %6368 = vmatprep.subr.msk.mxu1 %vm4220_vm8, %v4458_v23  ;;  %v6783_v10 = vpop.eup %6782  ;;  %v4953_v15 = vmul.f32 %v6781_v41, %v8139_v43 }
0x12a0   : > { %6369 = vmatpush3.msk.msra.mxu1 %vm4220_vm8, %v4458_v23  ;;  %v4954_v30 = vmul.f32 %v6783_v10, %v8137_v42 }
0x12a1   : > { %6371 = vmatmul.mubr.msk.f32.vlgmr.msra.gmra.mrb[48].mxu1 %vm4161_vm7, %v4454_v35  ;;  %6384 = vmatprep.subr.msk.mxu1 %vm4220_vm8, %v4708_v58 }
0x12a2   : > { %6373 = vmatprep.mubr.msk.f32.mxu1 %vm4161_vm7, %v4455_v4  ;;  %6385 = vmatpush3.msk.msra.mxu1 %vm4220_vm8, %v4708_v58 }
0x12a3   : > { %6400 = vmatprep.subr.msk.mxu1 %vm4220_vm8, %v4958_v6 }
0x12a5   : > { %6374 = vmatmul.mubr.msk.f32.gmra.mrb[50].mxu1 %vm4161_vm7, %v4456_v7  ;;  %v6785_v36 = vpop.eup %6784 }
0x12a6   : > { %6386 = vmatprep.mubr.msk.f32.mxu1 %vm4161_vm7, %v4703_v61  ;;  %v6787_v9 = vpop.eup %6786  ;;  %v4955_v17 = vmul.f32 %v6785_v36, %v8149_v31  ;;  %v5121_v31 = vld [vmem:[#allocation10 + $0x10] sm:$0xff] }
0x12a7   : > { %v4956_v26 = vmul.f32 %v6787_v9, %v8145_v19  ;;  %v6498_v19 = vpack.c.bf16 %v5122_v40, %v5121_v31 }
0x12a9   : > { %6387 = vmatmul.mubr.msk.f32.vlgmr.msra.gmra.mrb[52].mxu1 %vm4161_vm7, %v4704_v63  ;;  %6499 = vmatprep.subr.bf16.mxu0 %v6498_v19 }
0x12aa   : > { %6401 = vmatpush3.msk.msra.mxu1 %vm4220_vm8, %v4958_v6  ;;  %6389 = vmatprep.mubr.msk.f32.mxu1 %vm4161_vm7, %v4705_v16  ;;  %v5126_v16 = vrot.slane %v8228_v34, %v7543_v37 }
0x12ab   : > { %6501 = vmatpush3.bf16.msra.mxu0 %v6498_v19 }
0x12ad   : > { %6390 = vmatmul.mubr.msk.f32.gmra.mrb[54].mxu1 %vm4161_vm7, %v4706_v57 }
0x12ae   : > { %6402 = vmatprep.mubr.msk.f32.mxu1 %vm4161_vm7, %v4953_v15 }
0x12b1   : > { %6403 = vmatmul.mubr.msk.f32.vlgmr.msra.gmra.mrb[56].mxu1 %vm4161_vm7, %v4954_v30 }
0x12b2   : > { %6405 = vmatprep.mubr.msk.f32.mxu1 %vm4161_vm7, %v4955_v17 }
0x12b5   : > { %6406 = vmatmul.mubr.msk.f32.gmra.mrb[58].mxu1 %vm4161_vm7, %v4956_v26 }
0x1310   : > { %v6356_v38 = vpop.f32.mrb[44].mxu1 }
0x1311   : > { %v4289_v43 = vpop.f32.mrb[45].mxu1 }
0x1314   : > { %v6359_v46 = vpop.f32.mrb[46].mxu1 }
0x1315   : > { %v4299_v49 = vpop.f32.mrb[47].mxu1 }
0x1374   : > { %v6372_v56 = vpop.f32.mrb[48].mxu1 }
0x1375   : > { %5064 = vrot.lane.b32.xlu0 %v6372_v56, %s7096_s14  ;;  %v4539_v42 = vpop.f32.mrb[49].mxu1 }
0x1376   : > { %5062 = vrot.lane.b32.xlu1 %v4539_v42, %s7096_s14 }
0x1378   : > { %v6375_v1 = vpop.f32.mrb[50].mxu1 }
0x1379   : > { %5068 = vrot.lane.b32.xlu0 %v6375_v1, %s7096_s14  ;;  %v4549_v60 = vpop.f32.mrb[51].mxu1 }
0x137a   : > { %5066 = vrot.lane.b32.xlu1 %v4549_v60, %s7096_s14 }
0x137c   : > { %v6388_v2 = vpop.f32.mrb[52].mxu1 }
0x137d   : > { %5080 = vrot.lane.b32.xlu0 %v6388_v2, %s7097_s16  ;;  %v4789_v3 = vpop.f32.mrb[53].mxu1 }
0x137e   : > { %5078 = vrot.lane.b32.xlu1 %v4789_v3, %s7097_s16 }
0x1380   : > { %v6391_v45 = vpop.f32.mrb[54].mxu1 }
0x1381   : > { %5084 = vrot.lane.b32.xlu0 %v6391_v45, %s7097_s16  ;;  %v4799_v18 = vpop.f32.mrb[55].mxu1 }
0x1382   : > { %5082 = vrot.lane.b32.xlu1 %v4799_v18, %s7097_s16  ;;  %s5953_s16 = sshll.u32 %s7213_s0, 9  ;;  %s5652_s0 = scalar_lea.sflag [#allocation4], %s7435_s2 }
0x1384   : > { %v6404_v5 = vpop.f32.mrb[56].mxu1 }
0x1385   : > { %5096 = vrot.lane.b32.xlu0 %v6404_v5, %s8452_s30  ;;  %v5039_v24 = vpop.f32.mrb[57].mxu1 }
0x1386   : > { %5094 = vrot.lane.b32.xlu1 %v5039_v24, %s8452_s30 }
0x1388   : > { %v6407_v14 = vpop.f32.mrb[58].mxu1 }
0x1389   : > { %5100 = vrot.lane.b32.xlu0 %v6407_v14, %s8452_s30  ;;  %v5049_v13 = vpop.f32.mrb[59].mxu1 }
0x138a   : > { %5098 = vrot.lane.b32.xlu1 %v5049_v13, %s8452_s30  ;;  %s8455_s30 = sld [smem:[#allocation26_spill]] }
0x13e7   : > { %v5065_v59 = vpop.permute.xlu0 %5064 }
0x13e8   : > { %v5063_v47 = vpop.permute.xlu1 %5062  ;;  %v5107_v22 = vsel %vm856_vm2, %v6356_v38, %v5065_v59 }
0x13e9   : > { %v5106_v0 = vsel %vm856_vm2, %v4289_v43, %v5063_v47  ;;  %v5324_v47 = vld [vmem:[#allocation11] sm:$0xff] }
0x13eb   : > { %v5069_v44 = vpop.permute.xlu0 %5068 }
0x13ec   : > { %v5067_v29 = vpop.permute.xlu1 %5066  ;;  %v5109_v6 = vsel %vm856_vm2, %v6359_v46, %v5069_v44  ;;  %v5325_v44 = vld [vmem:[#allocation11 + $0x8] sm:$0xff] }
0x13ed   : > { %v5108_v4 = vsel %vm856_vm2, %v4299_v49, %v5067_v29  ;;  %v5326_v29 = vld [vmem:[#allocation11 + $0x10] sm:$0xff] }
0x13ef   : > { %v5081_v62 = vpop.permute.xlu0 %5080 }
0x13f0   : > { %v5079_v55 = vpop.permute.xlu1 %5078  ;;  %v5111_v23 = vsel %vm3542_vm4, %v5107_v22, %v5081_v62  ;;  %v6502_v62 = vpack.c.bf16 %v5325_v44, %v5324_v47 }
0x13f1   : > { %v5110_v58 = vsel %vm3542_vm4, %v5106_v0, %v5079_v55  ;;  %v5327_v55 = vld [vmem:[#allocation11 + $0x18] sm:$0xff]  ;;  %v5438_v0 = vld [vmem:[%s8454_s5 + $0x8] sm:$0xff] }
0x13f2   : > { %6503 = vmatprep.subr.bf16.mxu1 %v6502_v62 }
0x13f3   : > { %v5085_v32 = vpop.permute.xlu0 %5084  ;;  %6505 = vmatpush3.bf16.msra.mxu1 %v6502_v62 }
0x13f4   : > { %v5083_v39 = vpop.permute.xlu1 %5082  ;;  %v5113_v61 = vsel %vm3542_vm4, %v5109_v6, %v5085_v32  ;;  %v6506_v32 = vpack.c.bf16 %v5327_v55, %v5326_v29 }
0x13f5   : > { %v5112_v7 = vsel %vm3542_vm4, %v5108_v4, %v5083_v39  ;;  %v5437_v39 = vld [vmem:[%s8454_s5] sm:$0xff] }
0x13f6   : > { %6507 = vmatprep.subr.bf16.mxu1 %v6506_v32  ;;  %v6510_v22 = vpack.c.bf16 %v5438_v0, %v5437_v39  ;;  %v5938_v0 = vld [vmem:[%s8455_s30] ss:$0 sm:$0xff]  ;;  %s8345_s30 = scalar_lea.hbm %s8457_s21, %s5953_s16 }
0x13f7   : > { %v5097_v51 = vpop.permute.xlu0 %5096  ;;  %6509 = vmatpush3.bf16.msra.mxu1 %v6506_v32 }
0x13f8   : > { %v5095_v28 = vpop.permute.xlu1 %5094  ;;  %v5115_v8 = vsel %vm3547_vm5, %v5111_v23, %v5097_v51  ;;  %v5439_v51 = vld [vmem:[%s8454_s5 + $0x10] sm:$0xff]  ;;  %v5441_v23 = vld [vmem:[%s8454_s5 + $0x20] sm:$0xff]  ;;  %6511 = vmatprep.subr.bf16.mxu0 %v6510_v22 }
0x13f9   : > { %v5114_v35 = vsel %vm3547_vm5, %v5110_v58, %v5095_v28  ;;  %v5440_v58 = vld [vmem:[%s8454_s5 + $0x18] sm:$0xff] }
0x13fa   : > { %6416 = vmatprep.mubr.msk.f32.mxu0 %vm687_vm0, %v5114_v35  ;;  %v6514_v28 = vpack.c.bf16 %v5440_v58, %v5439_v51  ;;  %v5442_v35 = vld [vmem:[%s8454_s5 + $0x28] sm:$0xff] }
0x13fb   : > { %6417 = vmatmul.mubr.msk.f32.vlgmr.msra.gmra.mrb[52].mxu0 %vm687_vm0, %v5115_v8  ;;  %v5101_v20 = vpop.permute.xlu0 %5100  ;;  %v6518_v8 = vpack.c.bf16 %v5442_v35, %v5441_v23 }
0x13fc   : > { %v5099_v33 = vpop.permute.xlu1 %5098  ;;  %v5117_v63 = vsel %vm3547_vm5, %v5113_v61, %v5101_v20  ;;  %6513 = vmatpush3.bf16.msra.mxu0 %v6510_v22 }
0x13fd   : > { %v5116_v21 = vsel %vm3547_vm5, %v5112_v7, %v5099_v33  ;;  %6515 = vmatprep.subr.bf16.mxu0 %v6514_v28 }
0x13fe   : > { %6419 = vmatprep.mubr.msk.f32.mxu0 %vm687_vm0, %v5116_v21 }
0x13ff   : > { %6420 = vmatmul.mubr.msk.f32.gmra.mrb[54].mxu0 %vm687_vm0, %v5117_v63 }
0x1400   : > { %6517 = vmatpush3.bf16.msra.mxu0 %v6514_v28 }
0x1401   : > { %6519 = vmatprep.subr.bf16.mxu0 %v6518_v8 }
0x1404   : > { %6521 = vmatpush3.bf16.msra.mxu0 %v6518_v8 }
0x14ce   : > { %v6418_v41 = vpop.f32.mrb[52].mxu0 }
0x14cf   : > { %v5211_v57 = vadd.f32 %v6418_v41, %v5126_v16  ;;  %v5205_v10 = vpop.f32.mrb[53].mxu0 }
0x14d0   : > { %v5206_v15 = vadd.f32 %v5205_v10, %v5126_v16 }
0x14d1   : > { %v5225_v36 = vadd.f32 %v5211_v57, %v7912_v11 }
0x14d2   : > { %v5224_v30 = vadd.f32 %v5206_v15, %v7914_v12  ;;  %v6421_v9 = vpop.f32.mrb[54].mxu0 }
0x14d3   : > { %v5221_v17 = vadd.f32 %v6421_v9, %v5126_v16  ;;  %v5215_v26 = vpop.f32.mrb[55].mxu0  ;;  %v5231_v38 = vsel %vm687_vm0, %v5225_v36, 0.0 }
0x14d4   : > { %v5216_v43 = vadd.f32 %v5215_v26, %v5126_v16  ;;  %5232 = vadd.xlane.f32.xlu0 %v5231_v38  ;;  %v5228_v46 = vsel %vm687_vm0, %v5224_v30, 0.0 }
0x14d5   : > { %v5227_v49 = vadd.f32 %v5221_v17, %v7924_v27  ;;  %5229 = vadd.xlane.f32.xlu1 %v5228_v46 }
0x14d6   : > { %v5226_v50 = vadd.f32 %v5216_v43, %v7922_v25 }
0x14d7   : > { %v5237_v53 = vsel %vm687_vm0, %v5227_v49, 0.0 }
0x14d8   : > { %v5234_v11 = vsel %vm687_vm0, %v5226_v50, 0.0 }
0x14d9   : > { %5238 = vadd.xlane.f32.xlu1 %v5237_v53  ;;  %5235 = vadd.xlane.f32.xlu0 %v5234_v11 }
0x1561   : > { %v5233_v12 = vpop.xlane.xlu0 %5232 }
0x1562   : > { %v5241_v54 = vmul.f32 0.03125, %v5233_v12  ;;  %v5230_v56 = vpop.xlane.xlu1 %5229 }
0x1563   : > { %v5240_v42 = vmul.f32 0.03125, %v5230_v56 }
0x1564   : > { %v8240_v31 = vsub.f32 %v5225_v36, %v5241_v54 }
0x1565   : > { %v8242_v40 = vsub.f32 %v5224_v30, %v5240_v42 }
0x1566   : > { %v5236_v19 = vpop.xlane.xlu0 %5235  ;;  %v5239_v1 = vpop.xlane.xlu1 %5238  ;;  %v5249_v27 = vmul.f32 %v8240_v31, %v8240_v31 }
0x1567   : > { %v5242_v25 = vmul.f32 0.03125, %v5236_v19  ;;  %v5243_v60 = vmul.f32 0.03125, %v5239_v1  ;;  %v5248_v2 = vmul.f32 %v8242_v40, %v8242_v40 }
0x1568   : > { %v5255_v3 = vsel %vm687_vm0, %v5249_v27, 0.0 }
0x1569   : > { %v8249_v45 = vsub.f32 %v5226_v50, %v5242_v25  ;;  %v8251_v18 = vsub.f32 %v5227_v49, %v5243_v60  ;;  %5256 = vadd.xlane.f32.xlu1 %v5255_v3  ;;  %v5252_v5 = vsel %vm687_vm0, %v5248_v2, 0.0  ;;  %v5311_v25 = vrot.slane %v8228_v34, %v7901_v48 }
0x156a   : > { %5253 = vadd.xlane.f32.xlu0 %v5252_v5  ;;  %v5319_v5 = vrot.slane %v8228_v34, %v7904_v52 }
0x156b   : > { %v5250_v24 = vmul.f32 %v8249_v45, %v8249_v45  ;;  %v5251_v14 = vmul.f32 %v8251_v18, %v8251_v18 }
0x156d   : > { %v5258_v13 = vsel %vm687_vm0, %v5250_v24, 0.0  ;;  %v5261_v59 = vsel %vm687_vm0, %v5251_v14, 0.0 }
0x156e   : > { %5259 = vadd.xlane.f32.xlu0 %v5258_v13  ;;  %5262 = vadd.xlane.f32.xlu1 %v5261_v59 }
0x15f6   : > { %v5257_v4 = vpop.xlane.xlu1 %5256 }
0x15f7   : > { %v5265_v20 = vmul.f32 0.032258064, %v5257_v4  ;;  %v5254_v6 = vpop.xlane.xlu0 %5253 }
0x15f8   : > { %v5264_v7 = vmul.f32 0.032258064, %v5254_v6 }
0x15f9   : > { %6788 = vrsqrt.f32 %v5265_v20  ;;  %vm5277_vm2 = vcmp.eq.f32.partialorder %v5265_v20, inf  ;;  %v5280_v10 = vand.u32 2147483648, %v5265_v20  ;;  %vm5279_vm4 = vcmp.eq.f32.partialorder %v5265_v20, 0.0 }
0x15fa   : > { %6790 = vrsqrt.f32 %v5264_v7  ;;  %vm5270_vm5 = vcmp.eq.f32.partialorder %v5264_v7, inf  ;;  %v5273_v30 = vand.u32 2147483648, %v5264_v7  ;;  %vm5272_vm9 = vcmp.eq.f32.partialorder %v5264_v7, 0.0 }
0x15fb   : > { %v5260_v33 = vpop.xlane.xlu0 %5259  ;;  %v5263_v61 = vpop.xlane.xlu1 %5262 }
0x15fc   : > { %v5266_v21 = vmul.f32 0.032258064, %v5260_v33  ;;  %v5267_v63 = vmul.f32 0.032258064, %v5263_v61  ;;  %v8302_v61 = vld [vmem:[%s8456_s20] sm:$0x7] }
0x15fd   : > { %s6998_s20 = sshll.u32 %s7100_s28, 4  ;;  %s6999_s20 = int_to_ptr.vmem [resolvable:$false] %s6998_s20 }
0x15fe   : > { %6792 = vrsqrt.f32 %v5266_v21  ;;  %vm5284_vm10 = vcmp.eq.f32.partialorder %v5266_v21, inf  ;;  %vm5286_vm11 = vcmp.eq.f32.partialorder %v5266_v21, 0.0  ;;  %v5287_v53 = vand.u32 2147483648, %v5266_v21  ;;  %s7000_s29 = scalar_lea.vmem %s6999_s20, 1024  ;;  %p7001_p0 = scmp.lt.s32.totalorder %s8347_s23, %s6999_s20 }
0x15ff   : > { %6794 = vrsqrt.f32 %v5267_v63  ;;  %vm5291_vm12 = vcmp.eq.f32.partialorder %v5267_v63, inf  ;;  %v5294_v54 = vand.u32 2147483648, %v5267_v63  ;;  %vm5293_vm13 = vcmp.eq.f32.partialorder %v5267_v63, 0.0  ;;  %p7002_p2 = scmp.lt.s32.totalorder %s7000_s29, %s6994_s1 }
0x1601   : > { %p7003_p3 = por %p7002_p2, %p7001_p0 }
0x1603   : > { %v6789_v16 = vpop.eup %6788  ;;  %p7004_p6 = pnand %p7003_p3, %p6997_p13 }
0x1604   : > { %v6791_v41 = vpop.eup %6790  ;;  %v5276_v57 = vmul.f32 %v6789_v16, %v5265_v20 }
0x1605   : > { %v5269_v15 = vmul.f32 %v6791_v41, %v5264_v7 }
0x1606   : > { %v5278_v36 = vsel %vm5277_vm2, %v5265_v20, %v5276_v57 }
0x1607   : > { %v5281_v9 = vsel %vm5279_vm4, %v5280_v10, %v5278_v36  ;;  %v5271_v17 = vsel %vm5270_vm5, %v5264_v7, %v5269_v15 }
0x1608   : > { %v6793_v26 = vpop.eup %6792  ;;  %v5297_v38 = vadd.f32 1e-06, %v5281_v9  ;;  %v5274_v43 = vsel %vm5272_vm9, %v5273_v30, %v5271_v17 }
0x1609   : > { %v6795_v46 = vpop.eup %6794  ;;  %v5296_v49 = vadd.f32 1e-06, %v5274_v43  ;;  %v5283_v50 = vmul.f32 %v6793_v26, %v5266_v21 }
0x160a   : > { %6796 = vrcp.f32 %v5297_v38  ;;  %v5290_v11 = vmul.f32 %v6795_v46, %v5267_v63 }
0x160b   : > { %6798 = vrcp.f32 %v5296_v49  ;;  %v5285_v12 = vsel %vm5284_vm10, %v5266_v21, %v5283_v50  ;;  %v5448_v21 = vrot.slane %v8302_v61, %v7543_v37 }
0x160c   : > { %v5288_v56 = vsel %vm5286_vm11, %v5287_v53, %v5285_v12  ;;  %v5292_v42 = vsel %vm5291_vm12, %v5267_v63, %v5290_v11 }
0x160d   : > { %v5298_v19 = vadd.f32 1e-06, %v5288_v56  ;;  %v5295_v1 = vsel %vm5293_vm13, %v5294_v54, %v5292_v42 }
0x160e   : > { %v5299_v27 = vadd.f32 1e-06, %v5295_v1 }
0x160f   : > { %6800 = vrcp.f32 %v5298_v19 }
0x1610   : > { %6802 = vrcp.f32 %v5299_v27 }
0x1614   : > { %v6797_v60 = vpop.eup %6796 }
0x1615   : > { %v6799_v2 = vpop.eup %6798  ;;  %v5305_v3 = vmul.f32 %v6797_v60, %v8240_v31 }
0x1616   : > { %v5304_v24 = vmul.f32 %v6799_v2, %v8242_v40  ;;  %v5443_v40 = vld [vmem:[%s8454_s5 + $0x30] sm:$0xff] }
0x1617   : > { %v5313_v14 = vmul.f32 %v5311_v25, %v5305_v3 }
0x1618   : > { %v5312_v13 = vmul.f32 %v5311_v25, %v5304_v24 }
0x1619   : > { %v6801_v59 = vpop.eup %6800  ;;  %v5321_v62 = vadd.f32 %v5319_v5, %v5313_v14 }
0x161a   : > { %v6803_v47 = vpop.eup %6802  ;;  %v5320_v44 = vadd.f32 %v5319_v5, %v5312_v13  ;;  %v5306_v29 = vmul.f32 %v6801_v59, %v8249_v45  ;;  %v5444_v45 = vld [vmem:[%s8454_s5 + $0x38] sm:$0xff] }
0x161b   : > { %v5307_v55 = vmul.f32 %v6803_v47, %v8251_v18  ;;  %v6522_v18 = vpack.c.bf16 %v5444_v45, %v5443_v40 }
0x161c   : > { %6430 = vmatprep.mubr.msk.f32.mxu1 %vm687_vm0, %v5320_v44  ;;  %v5314_v32 = vmul.f32 %v5311_v25, %v5306_v29 }
0x161d   : > { %6431 = vmatmul.mubr.msk.f32.vlgmr.msra.gmra.mrb[60].mxu1 %vm687_vm0, %v5321_v62  ;;  %v5315_v31 = vmul.f32 %v5311_v25, %v5307_v55  ;;  %6523 = vmatprep.subr.bf16.mxu0 %v6522_v18 }
0x161e   : > { %v5322_v39 = vadd.f32 %v5319_v5, %v5314_v32  ;;  %6525 = vmatpush3.bf16.msra.mxu0 %v6522_v18 }
0x161f   : > { %v5323_v34 = vadd.f32 %v5319_v5, %v5315_v31 }
0x1620   : > { %6433 = vmatprep.mubr.msk.f32.mxu1 %vm687_vm0, %v5322_v39 }
0x1621   : > { %6434 = vmatmul.mubr.msk.f32.gmra.mrb[62].mxu1 %vm687_vm0, %v5323_v34 }
0x16f0   : > { %v6432_v51 = vpop.f32.mrb[60].mxu1 }
0x16f1   : > { %v5419_v22 = vadd.f32 %v6432_v51, %v5938_v0  ;;  %v5413_v58 = vpop.f32.mrb[61].mxu1 }
0x16f2   : > { %v5414_v28 = vadd.f32 %v5938_v0, %v5413_v58 }
0x16f3   : > { %v5433_v8 = vmax.f32 %v5419_v22, 0.0 }
0x16f4   : > { %v5432_v23 = vmax.f32 %v5414_v28, 0.0  ;;  %v6435_v35 = vpop.f32.mrb[62].mxu1 }
0x16f5   : > { %v5429_v4 = vadd.f32 %v6435_v35, %v5938_v0  ;;  %v5423_v20 = vpop.f32.mrb[63].mxu1 }
0x16f6   : > { %v5424_v6 = vadd.f32 %v5938_v0, %v5423_v20  ;;  %6452 = vmatprep.mubr.msk.f32.mxu0 %vm5449_vm14, %v5432_v23 }
0x16f7   : > { %6453 = vmatmul.mubr.msk.f32.vlgmr.msra.gmra.mrb[56].mxu0 %vm5449_vm14, %v5433_v8  ;;  %v5435_v33 = vmax.f32 %v5429_v4, 0.0 }
0x16f8   : > { %v5434_v7 = vmax.f32 %v5424_v6, 0.0 }
0x16fa   : > { %6455 = vmatprep.mubr.msk.f32.mxu0 %vm5449_vm14, %v5434_v7 }
0x16fb   : > { %6456 = vmatmul.mubr.msk.f32.gmra.mrb[58].mxu0 %vm5449_vm14, %v5435_v33 }
0x17ca   : > { %v6454_v63 = vpop.f32.mrb[56].mxu0 }
0x17cb   : > { %v5534_v16 = vadd.f32 %v6454_v63, %v5448_v21  ;;  %v5528_v41 = vpop.f32.mrb[57].mxu0 }
0x17cc   : > { %v5529_v57 = vadd.f32 %v5528_v41, %v5448_v21 }
0x17cd   : > { %v5548_v10 = vadd.f32 %v5534_v16, %v5321_v62 }
0x17ce   : > { %v5547_v15 = vadd.f32 %v5529_v57, %v5320_v44  ;;  %v6457_v36 = vpop.f32.mrb[58].mxu0 }
0x17cf   : > { %v5544_v30 = vadd.f32 %v6457_v36, %v5448_v21  ;;  %v5538_v9 = vpop.f32.mrb[59].mxu0  ;;  %v5554_v17 = vsel %vm687_vm0, %v5548_v10, 0.0 }
0x17d0   : > { %v5539_v26 = vadd.f32 %v5538_v9, %v5448_v21  ;;  %5555 = vadd.xlane.f32.xlu1 %v5554_v17  ;;  %v5551_v38 = vsel %vm687_vm0, %v5547_v15, 0.0 }
0x17d1   : > { %v5550_v43 = vadd.f32 %v5544_v30, %v5323_v34  ;;  %5552 = vadd.xlane.f32.xlu0 %v5551_v38  ;;  %v5634_v30 = vrot.slane %v8302_v61, %v7901_v48 }
0x17d2   : > { %v5549_v46 = vadd.f32 %v5539_v26, %v5322_v39  ;;  %v5642_v26 = vrot.slane %v8302_v61, %v7904_v52 }
0x17d3   : > { %v5560_v37 = vsel %vm687_vm0, %v5550_v43, 0.0 }
0x17d4   : > { %5561 = vadd.xlane.f32.xlu1 %v5560_v37  ;;  %v5557_v49 = vsel %vm687_vm0, %v5549_v46, 0.0 }
0x17d5   : > { %5558 = vadd.xlane.f32.xlu0 %v5557_v49 }
0x185d   : > { %v5556_v50 = vpop.xlane.xlu1 %5555 }
0x185e   : > { %v5564_v53 = vmul.f32 0.03125, %v5556_v50  ;;  %v5553_v11 = vpop.xlane.xlu0 %5552 }
0x185f   : > { %v5563_v12 = vmul.f32 0.03125, %v5553_v11 }
0x1860   : > { %v8310_v54 = vsub.f32 %v5548_v10, %v5564_v53 }
0x1861   : > { %v8312_v56 = vsub.f32 %v5547_v15, %v5563_v12  ;;  %v5562_v42 = vpop.xlane.xlu1 %5561 }
0x1862   : > { %v5566_v19 = vmul.f32 0.03125, %v5562_v42  ;;  %v5559_v1 = vpop.xlane.xlu0 %5558  ;;  %v5572_v27 = vmul.f32 %v8310_v54, %v8310_v54 }
0x1863   : > { %v5565_v25 = vmul.f32 0.03125, %v5559_v1  ;;  %v5571_v60 = vmul.f32 %v8312_v56, %v8312_v56 }
0x1864   : > { %v8318_v2 = vsub.f32 %v5550_v43, %v5566_v19  ;;  %v5578_v3 = vsel %vm687_vm0, %v5572_v27, 0.0 }
0x1865   : > { %v8321_v5 = vsub.f32 %v5549_v46, %v5565_v25  ;;  %5579 = vadd.xlane.f32.xlu1 %v5578_v3  ;;  %v5575_v24 = vsel %vm687_vm0, %v5571_v60, 0.0 }
0x1866   : > { %5576 = vadd.xlane.f32.xlu0 %v5575_v24  ;;  %v5574_v14 = vmul.f32 %v8318_v2, %v8318_v2 }
0x1867   : > { %v5573_v13 = vmul.f32 %v8321_v5, %v8321_v5 }
0x1868   : > { %v5584_v59 = vsel %vm687_vm0, %v5574_v14, 0.0 }
0x1869   : > { %5585 = vadd.xlane.f32.xlu1 %v5584_v59  ;;  %v5581_v47 = vsel %vm687_vm0, %v5573_v13, 0.0 }
0x186a   : > { %5582 = vadd.xlane.f32.xlu0 %v5581_v47 }
0x18f2   : > { %v5580_v44 = vpop.xlane.xlu1 %5579 }
0x18f3   : > { %v5588_v29 = vmul.f32 0.032258064, %v5580_v44  ;;  %v5577_v62 = vpop.xlane.xlu0 %5576 }
0x18f4   : > { %v5587_v55 = vmul.f32 0.032258064, %v5577_v62 }
0x18f5   : > { %6804 = vrsqrt.f32 %v5588_v29  ;;  %vm5600_vm15 = vcmp.eq.f32.partialorder %v5588_v29, inf  ;;  %v5603_v0 = vand.u32 2147483648, %v5588_v29  ;;  %vm5602_vm1 = vcmp.eq.f32.partialorder %v5588_v29, 0.0 }
0x18f6   : > { %6806 = vrsqrt.f32 %v5587_v55  ;;  %v5586_v32 = vpop.xlane.xlu1 %5585  ;;  %vm5593_vm3 = vcmp.eq.f32.partialorder %v5587_v55, inf  ;;  %v5596_v58 = vand.u32 2147483648, %v5587_v55  ;;  %vm5595_vm6 = vcmp.eq.f32.partialorder %v5587_v55, 0.0 }
0x18f7   : > { %v5590_v31 = vmul.f32 0.032258064, %v5586_v32  ;;  %v5583_v39 = vpop.xlane.xlu0 %5582 }
0x18f8   : > { %v5589_v34 = vmul.f32 0.032258064, %v5583_v39 }
0x18f9   : > { %6808 = vrsqrt.f32 %v5590_v31  ;;  %vm5614_vm7 = vcmp.eq.f32.partialorder %v5590_v31, inf  ;;  %vm5616_vm8 = vcmp.eq.f32.partialorder %v5590_v31, 0.0  ;;  %v5617_v33 = vand.u32 2147483648, %v5590_v31 }
0x18fa   : > { %6810 = vrsqrt.f32 %v5589_v34  ;;  %vm5607_vm2 = vcmp.eq.f32.partialorder %v5589_v34, inf  ;;  %v5610_v16 = vand.u32 2147483648, %v5589_v34  ;;  %vm5609_vm4 = vcmp.eq.f32.partialorder %v5589_v34, 0.0 }
0x18ff   : > { %v6805_v40 = vpop.eup %6804 }
0x1900   : > { %v6807_v45 = vpop.eup %6806  ;;  %v5599_v18 = vmul.f32 %v6805_v40, %v5588_v29 }
0x1901   : > { %v5592_v51 = vmul.f32 %v6807_v45, %v5587_v55 }
0x1902   : > { %v5601_v22 = vsel %vm5600_vm15, %v5588_v29, %v5599_v18 }
0x1903   : > { %v6809_v28 = vpop.eup %6808  ;;  %v5604_v23 = vsel %vm5602_vm1, %v5603_v0, %v5601_v22  ;;  %v5594_v35 = vsel %vm5593_vm3, %v5587_v55, %v5592_v51 }
0x1904   : > { %v6811_v8 = vpop.eup %6810  ;;  %v5620_v4 = vadd.f32 1e-06, %v5604_v23  ;;  %v5597_v20 = vsel %vm5595_vm6, %v5596_v58, %v5594_v35  ;;  %v5613_v6 = vmul.f32 %v6809_v28, %v5590_v31 }
0x1905   : > { %v5619_v7 = vadd.f32 1e-06, %v5597_v20  ;;  %v5606_v21 = vmul.f32 %v6811_v8, %v5589_v34 }
0x1906   : > { %6812 = vrcp.f32 %v5620_v4  ;;  %v5615_v63 = vsel %vm5614_vm7, %v5590_v31, %v5613_v6 }
0x1907   : > { %6814 = vrcp.f32 %v5619_v7  ;;  %v5618_v41 = vsel %vm5616_vm8, %v5617_v33, %v5615_v63  ;;  %v5608_v57 = vsel %vm5607_vm2, %v5589_v34, %v5606_v21 }
0x1908   : > { %v5622_v10 = vadd.f32 1e-06, %v5618_v41  ;;  %v5611_v15 = vsel %vm5609_vm4, %v5610_v16, %v5608_v57 }
0x1909   : > { %v5621_v36 = vadd.f32 1e-06, %v5611_v15 }
0x190a   : > { %6816 = vrcp.f32 %v5622_v10 }
0x190b   : > { %6818 = vrcp.f32 %v5621_v36 }
0x1910   : > { %v6813_v9 = vpop.eup %6812 }
0x1911   : > { %v6815_v17 = vpop.eup %6814  ;;  %v5628_v38 = vmul.f32 %v6813_v9, %v8310_v54 }
0x1912   : > { %v5627_v43 = vmul.f32 %v6815_v17, %v8312_v56 }
0x1913   : > { %v5636_v46 = vmul.f32 %v5634_v30, %v5628_v38 }
0x1914   : > { %v6817_v37 = vpop.eup %6816  ;;  %v5635_v49 = vmul.f32 %v5634_v30, %v5627_v43 }
0x1915   : > { %v6819_v50 = vpop.eup %6818  ;;  %v5630_v53 = vmul.f32 %v6817_v37, %v8318_v2  ;;  %v5644_v11 = vadd.f32 %v5642_v26, %v5636_v46 }
0x1916   : > { %v5629_v48 = vmul.f32 %v6819_v50, %v8321_v5  ;;  %v5643_v12 = vadd.f32 %v5642_v26, %v5635_v49 }
0x1917   : > { %v5638_v42 = vmul.f32 %v5634_v30, %v5630_v53  ;;  %5648 = vst.msk [vmem:[%s662_s15 + $0x8] sm:$0xff] %vm687_vm0, %v5644_v11 }
0x1918   : > { %v5637_v52 = vmul.f32 %v5634_v30, %v5629_v48  ;;  %5647 = vst.msk [vmem:[%s662_s15] sm:$0xff] %vm687_vm0, %v5643_v12 }
0x1919   : > { %v5646_v61 = vadd.f32 %v5642_v26, %v5638_v42 }
0x191a   : > { %v5645_v54 = vadd.f32 %v5642_v26, %v5637_v52 }
0x191b   : > { %5650 = vst.msk [vmem:[%s662_s15 + $0x18] sm:$0xff] %vm687_vm0, %v5646_v61 }
0x191c   : > { %5649 = vst.msk [vmem:[%s662_s15 + $0x10] sm:$0xff] %vm687_vm0, %v5645_v54 }
0x191d   : > { %7007 = shalt.err (!%p7004_p6)
}
0x191e   : > { %s7008_s16 = scalar_lea.hbm %s8345_s30, 512  ;;  %s7012_s7 = scalar_lea.hbm %s8457_s21, 1024 }
0x191f   : > { %p7009_p10 = scmp.ne.s32.totalorder %s8345_s30, %s7008_s16  ;;  %p7013_p5 = scmp.lt.u32.totalorder %s8345_s30, %s8457_s21 }
0x1920   : > { %p7014_p9 = scmp.lt.u32.totalorder %s7012_s7, %s7008_s16  ;;  %p7016_p4 = scmp.lt.u32.totalorder %s7008_s16, %s8345_s30 }
0x1921   : > { %p7010_p11 = pnand %p7009_p10, %p8458_p12 }
0x1922   : > { %p7015_p7 = por %p7014_p9, %p7013_p5 }
0x1923   : > { %p7011_p8 = pneg %p7010_p11 }
0x1924   : > { %p7017_p1 = por %p7016_p4, %p7015_p7 }
0x1926   : > { %p7018_p13 = pnand %p7017_p1, %p7011_p8 }
0x1928   : > { %7021 = shalt.err (!%p7018_p13)
}
0x1929   : > { %s7101_s1 = smov 128  }
0x192a   : > { %6548 = dma.vmem_to_hbm [thread:$0]  (%p8458_p12), %s8347_s23, 512, %s8345_s30, %s5652_s0, %s7101_s1, %s7101_s1, %s7096_s14  }
0x192b PF: > { %s5680_s29 = sand.u32 1, %s7060_s24   ;;  %p8459_p0 = scmp.ne.s32.totalorder %s8439_s22, 0 }
0x192c   : > { %p8460_p2 = scmp.ge.s32.totalorder %s7072_s27, 2  ;;  %s5681_s16 = scalar_lea.sflag [#allocation4], %s5680_s29 }
0x192e   : > { %p6571_p3 = pnand %p8460_p2, %p8459_p0 }
0x1930   : > { %7055 = dma.done.wait (!%p6571_p3), %s5681_s16, 512  }
0x1931   : > { %7057 = vsyncadd (!%p6571_p3), %s5681_s16, 4294966784  ;;  %p33_p6 = scmp.ge.s32.totalorder %s7365_s18, 4   ;;  %s8461_s24 = smov %s7064_s25 }
0x1932   : > { %s8462_s25 = smov %s7068_s26  ;;  %s8463_s26 = smov %s7377_s10 }
0x1933   : > { %s8464_s27 = smov %s7365_s18  ;;  %35 = sbr.rel (!%p33_p6) target bundleno = 20 (0x14), region = 159 }
0x193a   :  { %5686 = vsyncpa [#allocation3], 1 }
0x193b   :  { %5688 = vsyncpa [#allocation3 + $0x1], 1 }
0x193c   :  { %5689 = vsyncpa [#allocation6], 1 }
0x193d   :  { %5690 = vsyncpa [#allocation9], 1 }
0x193e   :  { %5691 = vsyncpa [#allocation12], 1 }
0x193f   :  { %5692 = vsyncpa [#allocation4], 1 }
0x1940   :  { %5694 = vsyncpa [#allocation4 + $0x1], 1 }

</bundles_post_ra>
